<compile_context>
chip_gen: v6e
topology: v6e:2x2x1
jax: 0.10.0
libtpu: 0.0.40
codegen_flags: <defaults>
</compile_context>

<pallas_src>
import functools

import numpy as np
import jax
import jax.numpy as jnp
from jax import lax
from jax.experimental import pallas as pl
from jax.experimental.pallas import tpu as pltpu

HIGHEST = jax.lax.Precision.HIGHEST   # only used by the pure-JAX reference

_VMEM_LIMIT = 48 * 1024 * 1024        # explicit scoped-VMEM limit (v7x has 64 MiB)


# ----------------------------- numeric helpers -----------------------------

def _split_bf16(x):
    """f32 -> (bf16 hi, bf16 lo) with hi + lo ~= x (for 3-pass MXU matmul)."""
    x = x.astype(jnp.float32)
    hi = x.astype(jnp.bfloat16)
    lo = (x - hi.astype(jnp.float32)).astype(jnp.bfloat16)
    return hi, lo


def _dot3(a_hl, b_hl):
    """~f32-accurate matmul from pre-split bf16 hi/lo operands (3 MXU passes)."""
    a_hi, a_lo = a_hl
    b_hi, b_lo = b_hl
    d = functools.partial(jnp.dot, preferred_element_type=jnp.float32)
    return d(a_hi, b_hi) + d(a_lo, b_hi) + d(a_hi, b_lo)


def _cat_hl(parts):
    """Concatenate hi/lo pairs along the K (lane) axis."""
    return (jnp.concatenate([p[0] for p in parts], axis=-1),
            jnp.concatenate([p[1] for p in parts], axis=-1))


def _stack_hl(parts):
    """Concatenate hi/lo pairs along the M (sublane) axis."""
    return (jnp.concatenate([p[0] for p in parts], axis=0),
            jnp.concatenate([p[1] for p in parts], axis=0))


# ----------------------------- Pallas kernels -----------------------------

def _fireup_s2_kernel(xm_ref, xt_ref, xb_ref,
                      sqw_hi_ref, sqw_lo_ref, sqb_ref,
                      uew_hi_ref, uew_lo_ref, uow_hi_ref, uow_lo_ref, ub_ref,
                      w1_hi_ref, w1_lo_ref, w3_hi_ref, w3_lo_ref, bq_ref,
                      skip_ref, o_ref):
    """Fused squeeze + upconv(parity) + expand1x1/3x3 + bias + ReLU + skip.

    xm: (1, TH*W, Cin) main rows; xt/xb: (1, W, Cin) clamped halo rows.
    Output block: (1, TH*W, 2*(C1+C3)) = [even e1 | even e3 | odd e1 | odd e3].
    """
    M = xm_ref.shape[1]                 # TH * W output pixels (pre-upsample)
    W = xt_ref.shape[1]
    C3 = w3_hi_ref.shape[2]
    M2 = M + 2 * W                      # incl. one halo H-row on each side

    hb = pl.program_id(1)
    nhb = pl.num_programs(1)

    # ---- squeeze 1x1 + bias + ReLU on TH+2 rows (halo rows recomputed) ------
    x_all = jnp.concatenate([xt_ref[0], xm_ref[0], xb_ref[0]], axis=0)   # (M2, Cin)
    sq = jnp.maximum(
        _dot3(_split_bf16(x_all), (sqw_hi_ref[...], sqw_lo_ref[...])) + sqb_ref[...],
        0.0)

    # ---- boundary masks / halo gates ---------------------------------------
    ridx = lax.broadcasted_iota(jnp.int32, (M2, 1), 0)
    col = ridx % W
    mask_l = (col != 0).astype(jnp.float32)        # kills W-wrap of roll(+1)
    mask_r = (col != W - 1).astype(jnp.float32)    # kills W-wrap of roll(-1)
    gtop = (hb > 0).astype(jnp.float32)
    gbot = (hb < nhb - 1).astype(jnp.float32)
    gate = jnp.where(ridx < W, gtop, 1.0) * jnp.where(ridx >= M + W, gbot, 1.0)

    # ---- ConvTranspose2d([1,4], s=[1,2], p=[0,1]) + ReLU, by output parity --
    #   up[., 2j]   = sq[., j-1] @ Wk3 + sq[., j]   @ Wk1
    #   up[., 2j+1] = sq[., j]   @ Wk2 + sq[., j+1] @ Wk0
    sq_l = pltpu.roll(sq, shift=1, axis=0) * mask_l          # sq[., j-1]
    sq_r = pltpu.roll(sq, shift=M2 - 1, axis=0) * mask_r     # sq[., j+1]
    sq_hl = _split_bf16(sq)
    sql_hl = _split_bf16(sq_l)
    sqr_hl = _split_bf16(sq_r)
    ub = ub_ref[...]
    ue = jnp.maximum(_dot3(_cat_hl([sql_hl, sq_hl]),
                           (uew_hi_ref[...], uew_lo_ref[...])) + ub, 0.0)
    uo = jnp.maximum(_dot3(_cat_hl([sq_hl, sqr_hl]),
                           (uow_hi_ref[...], uow_lo_ref[...])) + ub, 0.0)
    # halo up-rows that fall outside the image are the 3x3 conv's zero padding
    ue = ue * gate
    uo = uo * gate

    # shifted up-columns needed by the 3x3 taps (zero at the W edges)
    uo_l = pltpu.roll(uo, shift=1, axis=0) * mask_l          # up[., 2j-1]
    ue_r = pltpu.roll(ue, shift=M2 - 1, axis=0) * mask_r     # up[., 2j+2]
    ue_hl = _split_bf16(ue)
    uo_hl = _split_bf16(uo)
    uol_hl = _split_bf16(uo_l)
    uer_hl = _split_bf16(ue_r)

    def rows(hl, dy):        # up rows (r + dy - 1) for output rows r = 0..TH-1
        return tuple(a[dy * W:dy * W + M] for a in hl)

    # ---- expand1x1 on the centre rows, both parities stacked along M --------
    e1 = _dot3(_stack_hl([rows(ue_hl, 1), rows(uo_hl, 1)]),
               (w1_hi_ref[...], w1_lo_ref[...]))             # (2M, C1)

    # ---- expand3x3 (padding=1): dx taps folded into K, parities stacked -----
    e3 = jnp.zeros((2 * M, C3), jnp.float32)
    for dy in range(3):
        ev_in = _cat_hl([rows(uol_hl, dy), rows(ue_hl, dy), rows(uo_hl, dy)])
        od_in = _cat_hl([rows(ue_hl, dy), rows(uo_hl, dy), rows(uer_hl, dy)])
        e3 = e3 + _dot3(_stack_hl([ev_in, od_in]),
                        (w3_hi_ref[dy], w3_lo_ref[dy]))      # (2M, C3)

    # ---- bias + ReLU + residual skip, lane-dense 2*(C1+C3) store ------------
    ev = jnp.concatenate([e1[:M], e3[:M]], axis=-1)
    od = jnp.concatenate([e1[M:], e3[M:]], axis=-1)
    out = jnp.concatenate([ev, od], axis=-1)
    o_ref[0] = jnp.maximum(out + bq_ref[...], 0.0) + skip_ref[0]


def _fireup_s1_kernel(xm_ref, xt_ref, xb_ref,
                      sqw_hi_ref, sqw_lo_ref, sqb_ref,
                      w1_hi_ref, w1_lo_ref, w3_hi_ref, w3_lo_ref, bc_ref,
                      o_ref):
    """stride==1 FireUp: fused squeeze + expand1x1 + expand3x3 + bias + ReLU."""
    M = xm_ref.shape[1]
    W = xt_ref.shape[1]
    C3 = w3_hi_ref.shape[2]
    M2 = M + 2 * W

    hb = pl.program_id(1)
    nhb = pl.num_programs(1)

    x_all = jnp.concatenate([xt_ref[0], xm_ref[0], xb_ref[0]], axis=0)
    sq = jnp.maximum(
        _dot3(_split_bf16(x_all), (sqw_hi_ref[...], sqw_lo_ref[...])) + sqb_ref[...],
        0.0)

    ridx = lax.broadcasted_iota(jnp.int32, (M2, 1), 0)
    col = ridx % W
    mask_l = (col != 0).astype(jnp.float32)
    mask_r = (col != W - 1).astype(jnp.float32)
    gtop = (hb > 0).astype(jnp.float32)
    gbot = (hb < nhb - 1).astype(jnp.float32)
    gate = jnp.where(ridx < W, gtop, 1.0) * jnp.where(ridx >= M + W, gbot, 1.0)

    sq = sq * gate                     # out-of-image halo rows = 3x3 zero padding
    sq_l = pltpu.roll(sq, shift=1, axis=0) * mask_l
    sq_r = pltpu.roll(sq, shift=M2 - 1, axis=0) * mask_r
    sq_hl = _split_bf16(sq)
    sql_hl = _split_bf16(sq_l)
    sqr_hl = _split_bf16(sq_r)

    def rows(hl, dy):
        return tuple(a[dy * W:dy * W + M] for a in hl)

    e1 = _dot3(rows(sq_hl, 1), (w1_hi_ref[...], w1_lo_ref[...]))
    e3 = jnp.zeros((M, C3), jnp.float32)
    for dy in range(3):
        cat = _cat_hl([rows(sql_hl, dy), rows(sq_hl, dy), rows(sqr_hl, dy)])
        e3 = e3 + _dot3(cat, (w3_hi_ref[dy], w3_lo_ref[dy]))

    out = jnp.concatenate([e1, e3], axis=-1)
    o_ref[0] = jnp.maximum(out + bc_ref[...], 0.0)


# ----------------------------- pallas_call wrappers -----------------------------

def _pick_th(H, per_row_bytes, cap=8, budget=6 * 1024 * 1024):
    """Largest divisor of H (<= cap) whose (TH+2)-row working set fits the budget."""
    th = 1
    for d in range(1, min(H, cap) + 1):
        if H % d == 0 and (d + 2) * per_row_bytes <= budget:
            th = d
    return th
    # TODO(synk): very wide inputs (W*Cin rows > budget) would additionally need
    # W-tiling with column halos; not required for these shapes.


def fireup_s2(x3, q, skip3, H, W):
    """x3: (N, H*W, Cin); skip3: (N, H*W, 2*(C1+C3)).  Returns (N, H*W, 2*(C1+C3))."""
    N, _, Cin = x3.shape
    Csq = q['sq_b'].shape[-1]
    C1 = q['w1'][0].shape[-1]
    C3 = q['w3'][0].shape[-1]
    Ctot2 = 2 * (C1 + C3)
    assert W % 8 == 0, "width must be a multiple of 8 (sublane tiling)"

    per_row = 4 * W * (2 * Cin + 24 * Csq + 3 * Ctot2)
    TH = _pick_th(H, per_row)
    M = TH * W
    nhb = H // TH

    xmap = lambda n, hb: (n, hb, 0)
    tmap = lambda n, hb: (n, jnp.maximum(hb * TH - 1, 0), 0)       # clamped halo row
    bmap = lambda n, hb: (n, jnp.minimum(hb * TH + TH, H - 1), 0)  # clamped halo row
    wmap2 = lambda n, hb: (0, 0)
    wmap3 = lambda n, hb: (0, 0, 0)

    P = N * (H + 2 * nhb) * W           # pixels processed incl. recomputed halos
    Q = N * H * W                       # output pixels (pre-upsample)
    mxu = (P * Cin * Csq + 2 * P * (2 * Csq) * Csq
           + 2 * Q * Csq * C1 + 3 * (2 * Q) * (3 * Csq) * C3)
    flops = 3 * 2 * mxu                 # 3 bf16 passes per logical dot
    wbytes = 2 * 2 * Csq * (Cin + 4 * Csq + C1 + 9 * C3)
    bytes_acc = 4 * (P * Cin + 2 * Q * Ctot2) + wbytes

    return pl.pallas_call(
        _fireup_s2_kernel,
        out_shape=jax.ShapeDtypeStruct((N, H * W, Ctot2), jnp.float32),
        grid=(N, nhb),
        in_specs=[
            pl.BlockSpec((1, M, Cin), xmap),          # main TH rows
            pl.BlockSpec((1, W, Cin), tmap),          # top halo row
            pl.BlockSpec((1, W, Cin), bmap),          # bottom halo row
            pl.BlockSpec((Cin, Csq), wmap2),          # squeeze w hi
            pl.BlockSpec((Cin, Csq), wmap2),          # squeeze w lo
            pl.BlockSpec((1, Csq), wmap2),            # squeeze b
            pl.BlockSpec((2 * Csq, Csq), wmap2),      # upconv even hi
            pl.BlockSpec((2 * Csq, Csq), wmap2),      # upconv even lo
            pl.BlockSpec((2 * Csq, Csq), wmap2),      # upconv odd hi
            pl.BlockSpec((2 * Csq, Csq), wmap2),      # upconv odd lo
            pl.BlockSpec((1, Csq), wmap2),            # upconv b
            pl.BlockSpec((Csq, C1), wmap2),           # expand1x1 w hi
            pl.BlockSpec((Csq, C1), wmap2),           # expand1x1 w lo
            pl.BlockSpec((3, 3 * Csq, C3), wmap3),    # expand3x3 w hi
            pl.BlockSpec((3, 3 * Csq, C3), wmap3),    # expand3x3 w lo
            pl.BlockSpec((1, Ctot2), wmap2),          # concat bias (x2 parity)
            pl.BlockSpec((1, M, Ctot2), xmap),        # residual skip (parity-folded)
        ],
        out_specs=pl.BlockSpec((1, M, Ctot2), xmap),
        compiler_params=pltpu.CompilerParams(
            dimension_semantics=("parallel", "parallel"),
            vmem_limit_bytes=_VMEM_LIMIT),
        cost_estimate=pl.CostEstimate(flops=int(flops), transcendentals=0,
                                      bytes_accessed=int(bytes_acc)),
    )(x3, x3, x3,
      q['sq_w'][0], q['sq_w'][1], q['sq_b'],
      q['u_even'][0], q['u_even'][1], q['u_odd'][0], q['u_odd'][1], q['b_up'],
      q['w1'][0], q['w1'][1], q['w3'][0], q['w3'][1], q['b_quad'], skip3)


def fireup_s1(x3, q, H, W):
    N, _, Cin = x3.shape
    Csq = q['sq_b'].shape[-1]
    C1 = q['w1'][0].shape[-1]
    C3 = q['w3'][0].shape[-1]
    Ctot = C1 + C3
    assert W % 8 == 0, "width must be a multiple of 8 (sublane tiling)"

    per_row = 4 * W * (2 * Cin + 16 * Csq + 2 * Ctot)
    TH = _pick_th(H, per_row)
    M = TH * W
    nhb = H // TH

    xmap = lambda n, hb: (n, hb, 0)
    tmap = lambda n, hb: (n, jnp.maximum(hb * TH - 1, 0), 0)
    bmap = lambda n, hb: (n, jnp.minimum(hb * TH + TH, H - 1), 0)
    wmap2 = lambda n, hb: (0, 0)
    wmap3 = lambda n, hb: (0, 0, 0)

    P = N * (H + 2 * nhb) * W
    Q = N * H * W
    mxu = P * Cin * Csq + Q * Csq * C1 + 3 * Q * (3 * Csq) * C3
    flops = 3 * 2 * mxu
    wbytes = 2 * 2 * Csq * (Cin + C1 + 9 * C3)
    bytes_acc = 4 * (P * Cin + Q * Ctot) + wbytes

    return pl.pallas_call(
        _fireup_s1_kernel,
        out_shape=jax.ShapeDtypeStruct((N, H * W, Ctot), jnp.float32),
        grid=(N, nhb),
        in_specs=[
            pl.BlockSpec((1, M, Cin), xmap),
            pl.BlockSpec((1, W, Cin), tmap),
            pl.BlockSpec((1, W, Cin), bmap),
            pl.BlockSpec((Cin, Csq), wmap2),
            pl.BlockSpec((Cin, Csq), wmap2),
            pl.BlockSpec((1, Csq), wmap2),
            pl.BlockSpec((Csq, C1), wmap2),
            pl.BlockSpec((Csq, C1), wmap2),
            pl.BlockSpec((3, 3 * Csq, C3), wmap3),
            pl.BlockSpec((3, 3 * Csq, C3), wmap3),
            pl.BlockSpec((1, Ctot), wmap2),
        ],
        out_specs=pl.BlockSpec((1, M, Ctot), xmap),
        compiler_params=pltpu.CompilerParams(
            dimension_semantics=("parallel", "parallel"),
            vmem_limit_bytes=_VMEM_LIMIT),
        cost_estimate=pl.CostEstimate(flops=int(flops), transcendentals=0,
                                      bytes_accessed=int(bytes_acc)),
    )(x3, x3, x3,
      q['sq_w'][0], q['sq_w'][1], q['sq_b'],
      q['w1'][0], q['w1'][1], q['w3'][0], q['w3'][1], q['b_cat'])


# ----------------------------- model definition -----------------------------

def layer_cfg(feature_depth):
    # (inplanes, squeeze_planes, expand1x1_planes, expand3x3_planes)
    return [(feature_depth, 64, 128, 128),
            (256, 32, 64, 64),
            (128, 16, 32, 32),
            (64, 16, 32, 32)]


def compute_strides(output_stride):
    # faithful port of SqueezeDecoder.__init__ stride adjustment
    strides = [2, 2, 2, 2]
    cur = float(np.prod(strides))
    for i, s in enumerate(strides):
        if int(cur) != output_stride:
            if s == 2:
                cur /= 2
                strides[i] = 1
            if int(cur) == output_stride:
                break
    return strides


def init_fireup_params(key, inplanes, squeeze, e1, e3, stride):
    ks = jax.random.split(key, 8)

    def conv_w(k, cout, cin, kh, kw):
        return jax.random.normal(k, (cout, cin, kh, kw), jnp.float32) / np.sqrt(cin * kh * kw)

    p = {
        'sq_w': conv_w(ks[0], squeeze, inplanes, 1, 1),
        'sq_b': 0.01 * jax.random.normal(ks[1], (squeeze,), jnp.float32),
        'e1_w': conv_w(ks[2], e1, squeeze, 1, 1),
        'e1_b': 0.01 * jax.random.normal(ks[3], (e1,), jnp.float32),
        'e3_w': conv_w(ks[4], e3, squeeze, 3, 3),
        'e3_b': 0.01 * jax.random.normal(ks[5], (e3,), jnp.float32),
    }
    if stride == 2:
        # ConvTranspose2d weight shape (in_channels, out_channels, 1, 4)
        p['up_w'] = jax.random.normal(ks[6], (squeeze, squeeze, 1, 4), jnp.float32) / np.sqrt(4 * squeeze)
        p['up_b'] = 0.01 * jax.random.normal(ks[7], (squeeze,), jnp.float32)
    return p


def _split_w(w):
    w = jnp.asarray(w, jnp.float32)
    hi = w.astype(jnp.bfloat16)
    lo = (w - hi.astype(jnp.float32)).astype(jnp.bfloat16)
    return hi, lo


def prep_fireup_params(p):
    """PyTorch-shaped params -> kernel layouts (bf16 hi/lo split, folded 3x3 taps)."""
    Csq = p['e1_w'].shape[1]
    C1 = p['e1_w'].shape[0]
    C3 = p['e3_w'].shape[0]
    w3 = jnp.transpose(p['e3_w'], (2, 3, 1, 0)).reshape(3, 3 * Csq, C3)  # dy,(dx*Csq),C3
    q = {
        'sq_w': _split_w(jnp.transpose(p['sq_w'][:, :, 0, 0])),          # (Cin, Csq)
        'sq_b': p['sq_b'].reshape(1, Csq),
        'w1': _split_w(jnp.transpose(p['e1_w'][:, :, 0, 0])),            # (Csq, C1)
        'w3': _split_w(w3),                                              # (3, 3Csq, C3)
        'b_cat': jnp.concatenate([p['e1_b'], p['e3_b']]).reshape(1, C1 + C3),
    }
    if 'up_w' in p:
        wk = jnp.transpose(p['up_w'][:, :, 0, :], (2, 0, 1))             # (4, Csq, Csq)
        q['u_even'] = _split_w(jnp.concatenate([wk[3], wk[1]], axis=0))  # [sq[j-1], sq[j]]
        q['u_odd'] = _split_w(jnp.concatenate([wk[2], wk[0]], axis=0))   # [sq[j], sq[j+1]]
        q['b_up'] = p['up_b'].reshape(1, Csq)
        q['b_quad'] = jnp.concatenate([q['b_cat'], q['b_cat']], axis=-1)
    return q


def fire_up_forward(x, q, stride, skip=None):
    """x: (N,H,W,Cin) NHWC.  Returns NHWC output of one FireUp (+skip if stride 2)."""
    N, H, W, Cin = x.shape
    x3 = x.reshape(N, H * W, Cin)                       # free row-major reshape
    C1 = q['w1'][0].shape[-1]
    C3 = q['w3'][0].shape[-1]
    Ctot = C1 + C3
    if stride == 2:
        # (N,H,2W,Ctot) <-> (N,H*W,2*Ctot) is a free reshape: the kernel stores the
        # even/odd output columns side by side along the lane axis.
        skip3 = skip.reshape(N, H * W, 2 * Ctot)
        out = fireup_s2(x3, q, skip3, H, W)
        return out.reshape(N, H, 2 * W, Ctot)
    out = fireup_s1(x3, q, H, W)
    return out.reshape(N, H, W, Ctot)


def squeeze_decoder_forward(x_nchw, skips_nchw, qparams, strides, output_stride):
    # boundary: NCHW (PyTorch convention) -> NHWC (kernel layout)
    x = jnp.transpose(x_nchw, (0, 2, 3, 1))
    skips = {k: jnp.transpose(v, (0, 2, 3, 1)) for k, v in skips_nchw.items()}
    os = output_stride
    for q, stride in zip(qparams, strides):
        skip = None
        if stride == 2:                 # width doubles -> decoder adds the skip tensor
            os //= 2
            skip = skips[os]
        x = fire_up_forward(x, q, stride, skip)
    # TODO(synk): nn.Dropout2d treated as identity (eval mode); train-mode
    # per-channel masking/scaling not implemented.
    return jnp.transpose(x, (0, 3, 1, 2))


# ----------------------------- pure-JAX reference -----------------------------

def _ref_conv(x, w, b, padding):
    out = lax.conv_general_dilated(x, w, window_strides=(1, 1), padding=padding,
                                   dimension_numbers=('NCHW', 'OIHW', 'NCHW'),
                                   precision=HIGHEST)
    return out + b[None, :, None, None]


def _ref_upconv(x, w, b):
    wf = jnp.flip(jnp.transpose(w, (1, 0, 2, 3)), axis=(2, 3))
    out = lax.conv_general_dilated(x, wf, window_strides=(1, 1),
                                   padding=((0, 0), (2, 2)), lhs_dilation=(1, 2),
                                   dimension_numbers=('NCHW', 'OIHW', 'NCHW'),
                                   precision=HIGHEST)
    return out + b[None, :, None, None]


def ref_fireup(x, p, stride):
    relu = jax.nn.relu
    x = relu(_ref_conv(x, p['sq_w'], p['sq_b'], 'VALID'))
    if stride == 2:
        x = relu(_ref_upconv(x, p['up_w'], p['up_b']))
    e1 = relu(_ref_conv(x, p['e1_w'], p['e1_b'], 'VALID'))
    e3 = relu(_ref_conv(x, p['e3_w'], p['e3_b'], ((1, 1), (1, 1))))
    return jnp.concatenate([e1, e3], axis=1)


def ref_decoder(x, skips, params, strides, output_stride):
    os = output_stride
    for p, stride in zip(params, strides):
        feats = ref_fireup(x, p, stride)
        if feats.shape[-1] > x.shape[-1]:
            os //= 2
            feats = feats + skips[os]
        x = feats
    return x


# ----------------------------- main -----------------------------

def _run_case(output_stride, feature_depth, N, H, W, seed):
    strides = compute_strides(output_stride)
    cfg = layer_cfg(feature_depth)

    key = jax.random.PRNGKey(seed)
    kx, ksk, kp = jax.random.split(key, 3)
    pkeys = jax.random.split(kp, len(cfg))
    torch_params = [init_fireup_params(k, *c, stride=s)
                    for k, c, s in zip(pkeys, cfg, strides)]
    qparams = [prep_fireup_params(p) for p in torch_params]

    x = jax.random.normal(kx, (N, feature_depth, H, W), jnp.float32)  # NCHW

    # Skip tensors (NCHW) at every upsampled resolution the decoder will visit.
    skips = {}
    os, w = output_stride, W
    skeys = jax.random.split(ksk, len(cfg))
    out_channels = [c[2] + c[3] for c in cfg]
    for i, stride in enumerate(strides):
        if stride == 2:
            os //= 2
            w *= 2
            skips[os] = jax.random.normal(skeys[i], (N, out_channels[i], H, w), jnp.float32)

    out = squeeze_decoder_forward(x, skips, qparams, strides, output_stride)
    out = jax.block_until_ready(out)

    ref = ref_decoder(x, skips, torch_params, strides, output_stride)
    np.testing.assert_allclose(np.asarray(out), np.asarray(ref), rtol=1e-3, atol=1e-3)

    n_up = sum(1 for s in strides if s == 2)
    assert out.shape == (N, 64, H, W * (2 ** n_up)), out.shape
    return out


if __name__ == "__main__":
    # output_stride=16 keeps strides [2,2,2,2]: fused squeeze+upconv+expand+skip path.
    _run_case(output_stride=16, feature_depth=64, N=2, H=4, W=8, seed=0)
    # output_stride=32 degrades strides to [1,1,1,1]: fused squeeze+expand path, no skips.
    _run_case(output_stride=32, feature_depth=32, N=1, H=4, W=8, seed=1)
    print("KERNEL_OK")
</pallas_src>

<mosaic_0001>
module attributes {stable_mosaic.version = 11 : i64} {
  func.func @_fireup_s2_kernel(%arg0: i32, %arg1: i32, %arg2: memref<1x32x64xf32, #tpu.memory_space<vmem>>, %arg3: memref<1x8x64xf32, #tpu.memory_space<vmem>>, %arg4: memref<1x8x64xf32, #tpu.memory_space<vmem>>, %arg5: memref<64x64xbf16, #tpu.memory_space<vmem>>, %arg6: memref<64x64xbf16, #tpu.memory_space<vmem>>, %arg7: memref<1x64xf32, #tpu.memory_space<vmem>>, %arg8: memref<128x64xbf16, #tpu.memory_space<vmem>>, %arg9: memref<128x64xbf16, #tpu.memory_space<vmem>>, %arg10: memref<128x64xbf16, #tpu.memory_space<vmem>>, %arg11: memref<128x64xbf16, #tpu.memory_space<vmem>>, %arg12: memref<1x64xf32, #tpu.memory_space<vmem>>, %arg13: memref<64x128xbf16, #tpu.memory_space<vmem>>, %arg14: memref<64x128xbf16, #tpu.memory_space<vmem>>, %arg15: memref<3x192x128xbf16, #tpu.memory_space<vmem>>, %arg16: memref<3x192x128xbf16, #tpu.memory_space<vmem>>, %arg17: memref<1x512xf32, #tpu.memory_space<vmem>>, %arg18: memref<1x32x512xf32, #tpu.memory_space<vmem>>, %arg19: memref<1x32x512xf32, #tpu.memory_space<vmem>>) attributes {dimension_semantics = [#tpu.dimension_semantics<parallel>, #tpu.dimension_semantics<parallel>], iteration_bounds = array<i64: 2, 1>, scalar_prefetch = 0 : i64, scratch_operands = 0 : i64, tpu.core_type = #tpu.core_type<tc>, window_params = [{transform_indices = @transform_0, window_bounds = array<i64: 1, 32, 64>}, {transform_indices = @transform_1, window_bounds = array<i64: 1, 8, 64>}, {transform_indices = @transform_2, window_bounds = array<i64: 1, 8, 64>}, {pipeline_mode = #tpu.pipeline_mode<synchronous>, transform_indices = @transform_3, window_bounds = array<i64: 64, 64>}, {pipeline_mode = #tpu.pipeline_mode<synchronous>, transform_indices = @transform_4, window_bounds = array<i64: 64, 64>}, {pipeline_mode = #tpu.pipeline_mode<synchronous>, transform_indices = @transform_5, window_bounds = array<i64: 1, 64>}, {pipeline_mode = #tpu.pipeline_mode<synchronous>, transform_indices = @transform_6, window_bounds = array<i64: 128, 64>}, {pipeline_mode = #tpu.pipeline_mode<synchronous>, transform_indices = @transform_7, window_bounds = array<i64: 128, 64>}, {pipeline_mode = #tpu.pipeline_mode<synchronous>, transform_indices = @transform_8, window_bounds = array<i64: 128, 64>}, {pipeline_mode = #tpu.pipeline_mode<synchronous>, transform_indices = @transform_9, window_bounds = array<i64: 128, 64>}, {pipeline_mode = #tpu.pipeline_mode<synchronous>, transform_indices = @transform_10, window_bounds = array<i64: 1, 64>}, {pipeline_mode = #tpu.pipeline_mode<synchronous>, transform_indices = @transform_11, window_bounds = array<i64: 64, 128>}, {pipeline_mode = #tpu.pipeline_mode<synchronous>, transform_indices = @transform_12, window_bounds = array<i64: 64, 128>}, {pipeline_mode = #tpu.pipeline_mode<synchronous>, transform_indices = @transform_13, window_bounds = array<i64: 3, 192, 128>}, {pipeline_mode = #tpu.pipeline_mode<synchronous>, transform_indices = @transform_14, window_bounds = array<i64: 3, 192, 128>}, {pipeline_mode = #tpu.pipeline_mode<synchronous>, transform_indices = @transform_15, window_bounds = array<i64: 1, 512>}, {transform_indices = @transform_16, window_bounds = array<i64: 1, 32, 512>}, {transform_indices = @transform_17, window_bounds = array<i64: 1, 32, 512>}]} {
    %c0 = arith.constant 0 : index
    %c0_0 = arith.constant 0 : index
    %c0_1 = arith.constant 0 : index
    %0 = vector.load %arg3[%c0, %c0_0, %c0_1] : memref<1x8x64xf32, #tpu.memory_space<vmem>>, vector<1x8x64xf32>
    %1 = vector.shape_cast %0 : vector<1x8x64xf32> to vector<8x64xf32>
    %c0_2 = arith.constant 0 : index
    %c0_3 = arith.constant 0 : index
    %c0_4 = arith.constant 0 : index
    %2 = vector.load %arg2[%c0_2, %c0_3, %c0_4] : memref<1x32x64xf32, #tpu.memory_space<vmem>>, vector<1x32x64xf32>
    %3 = vector.shape_cast %2 : vector<1x32x64xf32> to vector<32x64xf32>
    %c0_5 = arith.constant 0 : index
    %c0_6 = arith.constant 0 : index
    %c0_7 = arith.constant 0 : index
    %4 = vector.load %arg4[%c0_5, %c0_6, %c0_7] : memref<1x8x64xf32, #tpu.memory_space<vmem>>, vector<1x8x64xf32>
    %5 = vector.shape_cast %4 : vector<1x8x64xf32> to vector<8x64xf32>
    %6 = tpu.concatenate %1, %3, %5 in 0 : vector<8x64xf32>, vector<32x64xf32>, vector<8x64xf32> -> vector<48x64xf32>
    %7 = arith.truncf %6 : vector<48x64xf32> to vector<48x64xbf16>
    %8 = arith.extf %7 : vector<48x64xbf16> to vector<48x64xf32>
    %9 = arith.subf %6, %8 : vector<48x64xf32>
    %10 = arith.truncf %9 : vector<48x64xf32> to vector<48x64xbf16>
    %c0_8 = arith.constant 0 : index
    %c0_9 = arith.constant 0 : index
    %11 = vector.load %arg5[%c0_8, %c0_9] : memref<64x64xbf16, #tpu.memory_space<vmem>>, vector<64x64xbf16>
    %c0_10 = arith.constant 0 : index
    %c0_11 = arith.constant 0 : index
    %12 = vector.load %arg6[%c0_10, %c0_11] : memref<64x64xbf16, #tpu.memory_space<vmem>>, vector<64x64xbf16>
    %cst = arith.constant dense<0.000000e+00> : vector<48x64xf32>
    %13 = tpu.matmul %7, %11, %cst {dimension_numbers = #tpu.dot_dimension_numbers<[1], [0], [0], [1], [0, 0, 1, 1], [], []>} : vector<48x64xbf16>, vector<64x64xbf16>, vector<48x64xf32> -> vector<48x64xf32>
    %cst_12 = arith.constant dense<0.000000e+00> : vector<48x64xf32>
    %14 = tpu.matmul %10, %11, %cst_12 {dimension_numbers = #tpu.dot_dimension_numbers<[1], [0], [0], [1], [0, 0, 1, 1], [], []>} : vector<48x64xbf16>, vector<64x64xbf16>, vector<48x64xf32> -> vector<48x64xf32>
    %15 = arith.addf %13, %14 : vector<48x64xf32>
    %cst_13 = arith.constant dense<0.000000e+00> : vector<48x64xf32>
    %16 = tpu.matmul %7, %12, %cst_13 {dimension_numbers = #tpu.dot_dimension_numbers<[1], [0], [0], [1], [0, 0, 1, 1], [], []>} : vector<48x64xbf16>, vector<64x64xbf16>, vector<48x64xf32> -> vector<48x64xf32>
    %17 = arith.addf %15, %16 : vector<48x64xf32>
    %c0_14 = arith.constant 0 : index
    %c0_15 = arith.constant 0 : index
    %18 = vector.load %arg7[%c0_14, %c0_15] : memref<1x64xf32, #tpu.memory_space<vmem>>, vector<1x64xf32>
    %19 = vector.broadcast %18 : vector<1x64xf32> to vector<48x64xf32>
    %20 = arith.addf %17, %19 : vector<48x64xf32>
    %cst_16 = arith.constant 0.000000e+00 : f32
    %21 = vector.broadcast %cst_16 : f32 to vector<48x64xf32>
    %22 = arith.maximumf %20, %21 : vector<48x64xf32>
    %23 = tpu.iota {dimensions = array<i32: 0>} : vector<48x1xi32>
    %c8_i32 = arith.constant 8 : i32
    %c0_i32 = arith.constant 0 : i32
    %24 = arith.cmpi eq, %c8_i32, %c0_i32 : i32
    %c1_i32 = arith.constant 1 : i32
    %25 = arith.select %24, %c1_i32, %c8_i32 : i32
    %26 = vector.broadcast %25 : i32 to vector<48x1xi32>
    %27 = arith.remsi %23, %26 : vector<48x1xi32>
    %c0_i32_17 = arith.constant 0 : i32
    %28 = vector.broadcast %c0_i32_17 : i32 to vector<48x1xi32>
    %29 = arith.cmpi ne, %27, %28 : vector<48x1xi32>
    %c0_i32_18 = arith.constant 0 : i32
    %30 = vector.broadcast %c0_i32_18 : i32 to vector<48x1xi32>
    %31 = arith.cmpi slt, %27, %30 : vector<48x1xi32>
    %c0_i32_19 = arith.constant 0 : i32
    %32 = arith.cmpi slt, %25, %c0_i32_19 : i32
    %33 = vector.broadcast %32 : i1 to vector<48x1xi1>
    %34 = vector.broadcast %33 : vector<48x1xi1> to vector<48x1xi1>
    %35 = arith.xori %31, %34 : vector<48x1xi1>
    %36 = arith.andi %35, %29 : vector<48x1xi1>
    %37 = vector.broadcast %25 : i32 to vector<48x1xi32>
    %38 = arith.addi %27, %37 : vector<48x1xi32>
    %39 = arith.select %36, %38, %27 : vector<48x1xi1>, vector<48x1xi32>
    %c0_i32_20 = arith.constant 0 : i32
    %40 = vector.broadcast %c0_i32_20 : i32 to vector<48x1xi32>
    %41 = arith.cmpi ne, %39, %40 : vector<48x1xi32>
    %42 = arith.extui %41 : vector<48x1xi1> to vector<48x1xi32>
    %43 = arith.sitofp %42 : vector<48x1xi32> to vector<48x1xf32>
    %c7_i32 = arith.constant 7 : i32
    %44 = vector.broadcast %c7_i32 : i32 to vector<48x1xi32>
    %45 = arith.cmpi ne, %39, %44 : vector<48x1xi32>
    %46 = arith.extui %45 : vector<48x1xi1> to vector<48x1xi32>
    %47 = arith.sitofp %46 : vector<48x1xi32> to vector<48x1xf32>
    %c0_i32_21 = arith.constant 0 : i32
    %48 = arith.cmpi sgt, %arg1, %c0_i32_21 : i32
    %49 = arith.extui %48 : i1 to i32
    %50 = arith.sitofp %49 : i32 to f32
    %c0_i32_22 = arith.constant 0 : i32
    %51 = arith.cmpi slt, %arg1, %c0_i32_22 : i32
    %52 = arith.extui %51 : i1 to i32
    %53 = arith.sitofp %52 : i32 to f32
    %c8_i32_23 = arith.constant 8 : i32
    %54 = vector.broadcast %c8_i32_23 : i32 to vector<48x1xi32>
    %55 = arith.cmpi slt, %23, %54 : vector<48x1xi32>
    %cst_24 = arith.constant 1.000000e+00 : f32
    %56 = vector.broadcast %50 : f32 to vector<48x1xf32>
    %57 = vector.broadcast %cst_24 : f32 to vector<48x1xf32>
    %58 = arith.select %55, %56, %57 : vector<48x1xi1>, vector<48x1xf32>
    %c40_i32 = arith.constant 40 : i32
    %59 = vector.broadcast %c40_i32 : i32 to vector<48x1xi32>
    %60 = arith.cmpi sge, %23, %59 : vector<48x1xi32>
    %cst_25 = arith.constant 1.000000e+00 : f32
    %61 = vector.broadcast %53 : f32 to vector<48x1xf32>
    %62 = vector.broadcast %cst_25 : f32 to vector<48x1xf32>
    %63 = arith.select %60, %61, %62 : vector<48x1xi1>, vector<48x1xf32>
    %64 = arith.mulf %58, %63 : vector<48x1xf32>
    %c1_i32_26 = arith.constant 1 : i32
    %65 = tpu.dynamic_rotate %22 by %c1_i32_26 dim 0 : vector<48x64xf32>, i32 -> vector<48x64xf32>
    %66 = vector.broadcast %43 : vector<48x1xf32> to vector<48x64xf32>
    %67 = arith.mulf %65, %66 : vector<48x64xf32>
    %c47_i32 = arith.constant 47 : i32
    %68 = tpu.dynamic_rotate %22 by %c47_i32 dim 0 : vector<48x64xf32>, i32 -> vector<48x64xf32>
    %69 = vector.broadcast %47 : vector<48x1xf32> to vector<48x64xf32>
    %70 = arith.mulf %68, %69 : vector<48x64xf32>
    %71 = arith.truncf %22 : vector<48x64xf32> to vector<48x64xbf16>
    %72 = arith.extf %71 : vector<48x64xbf16> to vector<48x64xf32>
    %73 = arith.subf %22, %72 : vector<48x64xf32>
    %74 = arith.truncf %73 : vector<48x64xf32> to vector<48x64xbf16>
    %75 = arith.truncf %67 : vector<48x64xf32> to vector<48x64xbf16>
    %76 = arith.extf %75 : vector<48x64xbf16> to vector<48x64xf32>
    %77 = arith.subf %67, %76 : vector<48x64xf32>
    %78 = arith.truncf %77 : vector<48x64xf32> to vector<48x64xbf16>
    %79 = arith.truncf %70 : vector<48x64xf32> to vector<48x64xbf16>
    %80 = arith.extf %79 : vector<48x64xbf16> to vector<48x64xf32>
    %81 = arith.subf %70, %80 : vector<48x64xf32>
    %82 = arith.truncf %81 : vector<48x64xf32> to vector<48x64xbf16>
    %c0_27 = arith.constant 0 : index
    %c0_28 = arith.constant 0 : index
    %83 = vector.load %arg12[%c0_27, %c0_28] : memref<1x64xf32, #tpu.memory_space<vmem>>, vector<1x64xf32>
    %84 = tpu.concatenate %75, %71 in 1 : vector<48x64xbf16>, vector<48x64xbf16> -> vector<48x128xbf16>
    %85 = tpu.concatenate %78, %74 in 1 : vector<48x64xbf16>, vector<48x64xbf16> -> vector<48x128xbf16>
    %c0_29 = arith.constant 0 : index
    %c0_30 = arith.constant 0 : index
    %86 = vector.load %arg8[%c0_29, %c0_30] : memref<128x64xbf16, #tpu.memory_space<vmem>>, vector<128x64xbf16>
    %c0_31 = arith.constant 0 : index
    %c0_32 = arith.constant 0 : index
    %87 = vector.load %arg9[%c0_31, %c0_32] : memref<128x64xbf16, #tpu.memory_space<vmem>>, vector<128x64xbf16>
    %cst_33 = arith.constant dense<0.000000e+00> : vector<48x64xf32>
    %88 = tpu.matmul %84, %86, %cst_33 {dimension_numbers = #tpu.dot_dimension_numbers<[1], [0], [0], [1], [0, 0, 1, 1], [], []>} : vector<48x128xbf16>, vector<128x64xbf16>, vector<48x64xf32> -> vector<48x64xf32>
    %cst_34 = arith.constant dense<0.000000e+00> : vector<48x64xf32>
    %89 = tpu.matmul %85, %86, %cst_34 {dimension_numbers = #tpu.dot_dimension_numbers<[1], [0], [0], [1], [0, 0, 1, 1], [], []>} : vector<48x128xbf16>, vector<128x64xbf16>, vector<48x64xf32> -> vector<48x64xf32>
    %90 = arith.addf %88, %89 : vector<48x64xf32>
    %cst_35 = arith.constant dense<0.000000e+00> : vector<48x64xf32>
    %91 = tpu.matmul %84, %87, %cst_35 {dimension_numbers = #tpu.dot_dimension_numbers<[1], [0], [0], [1], [0, 0, 1, 1], [], []>} : vector<48x128xbf16>, vector<128x64xbf16>, vector<48x64xf32> -> vector<48x64xf32>
    %92 = arith.addf %90, %91 : vector<48x64xf32>
    %93 = vector.broadcast %83 : vector<1x64xf32> to vector<48x64xf32>
    %94 = arith.addf %92, %93 : vector<48x64xf32>
    %cst_36 = arith.constant 0.000000e+00 : f32
    %95 = vector.broadcast %cst_36 : f32 to vector<48x64xf32>
    %96 = arith.maximumf %94, %95 : vector<48x64xf32>
    %97 = tpu.concatenate %71, %79 in 1 : vector<48x64xbf16>, vector<48x64xbf16> -> vector<48x128xbf16>
    %98 = tpu.concatenate %74, %82 in 1 : vector<48x64xbf16>, vector<48x64xbf16> -> vector<48x128xbf16>
    %c0_37 = arith.constant 0 : index
    %c0_38 = arith.constant 0 : index
    %99 = vector.load %arg10[%c0_37, %c0_38] : memref<128x64xbf16, #tpu.memory_space<vmem>>, vector<128x64xbf16>
    %c0_39 = arith.constant 0 : index
    %c0_40 = arith.constant 0 : index
    %100 = vector.load %arg11[%c0_39, %c0_40] : memref<128x64xbf16, #tpu.memory_space<vmem>>, vector<128x64xbf16>
    %cst_41 = arith.constant dense<0.000000e+00> : vector<48x64xf32>
    %101 = tpu.matmul %97, %99, %cst_41 {dimension_numbers = #tpu.dot_dimension_numbers<[1], [0], [0], [1], [0, 0, 1, 1], [], []>} : vector<48x128xbf16>, vector<128x64xbf16>, vector<48x64xf32> -> vector<48x64xf32>
    %cst_42 = arith.constant dense<0.000000e+00> : vector<48x64xf32>
    %102 = tpu.matmul %98, %99, %cst_42 {dimension_numbers = #tpu.dot_dimension_numbers<[1], [0], [0], [1], [0, 0, 1, 1], [], []>} : vector<48x128xbf16>, vector<128x64xbf16>, vector<48x64xf32> -> vector<48x64xf32>
    %103 = arith.addf %101, %102 : vector<48x64xf32>
    %cst_43 = arith.constant dense<0.000000e+00> : vector<48x64xf32>
    %104 = tpu.matmul %97, %100, %cst_43 {dimension_numbers = #tpu.dot_dimension_numbers<[1], [0], [0], [1], [0, 0, 1, 1], [], []>} : vector<48x128xbf16>, vector<128x64xbf16>, vector<48x64xf32> -> vector<48x64xf32>
    %105 = arith.addf %103, %104 : vector<48x64xf32>
    %106 = vector.broadcast %83 : vector<1x64xf32> to vector<48x64xf32>
    %107 = arith.addf %105, %106 : vector<48x64xf32>
    %cst_44 = arith.constant 0.000000e+00 : f32
    %108 = vector.broadcast %cst_44 : f32 to vector<48x64xf32>
    %109 = arith.maximumf %107, %108 : vector<48x64xf32>
    %110 = vector.broadcast %64 : vector<48x1xf32> to vector<48x64xf32>
    %111 = arith.mulf %96, %110 : vector<48x64xf32>
    %112 = vector.broadcast %64 : vector<48x1xf32> to vector<48x64xf32>
    %113 = arith.mulf %109, %112 : vector<48x64xf32>
    %c1_i32_45 = arith.constant 1 : i32
    %114 = tpu.dynamic_rotate %113 by %c1_i32_45 dim 0 : vector<48x64xf32>, i32 -> vector<48x64xf32>
    %115 = vector.broadcast %43 : vector<48x1xf32> to vector<48x64xf32>
    %116 = arith.mulf %114, %115 : vector<48x64xf32>
    %c47_i32_46 = arith.constant 47 : i32
    %117 = tpu.dynamic_rotate %111 by %c47_i32_46 dim 0 : vector<48x64xf32>, i32 -> vector<48x64xf32>
    %118 = vector.broadcast %47 : vector<48x1xf32> to vector<48x64xf32>
    %119 = arith.mulf %117, %118 : vector<48x64xf32>
    %120 = arith.truncf %111 : vector<48x64xf32> to vector<48x64xbf16>
    %121 = arith.extf %120 : vector<48x64xbf16> to vector<48x64xf32>
    %122 = arith.subf %111, %121 : vector<48x64xf32>
    %123 = arith.truncf %122 : vector<48x64xf32> to vector<48x64xbf16>
    %124 = arith.truncf %113 : vector<48x64xf32> to vector<48x64xbf16>
    %125 = arith.extf %124 : vector<48x64xbf16> to vector<48x64xf32>
    %126 = arith.subf %113, %125 : vector<48x64xf32>
    %127 = arith.truncf %126 : vector<48x64xf32> to vector<48x64xbf16>
    %128 = arith.truncf %116 : vector<48x64xf32> to vector<48x64xbf16>
    %129 = arith.extf %128 : vector<48x64xbf16> to vector<48x64xf32>
    %130 = arith.subf %116, %129 : vector<48x64xf32>
    %131 = arith.truncf %130 : vector<48x64xf32> to vector<48x64xbf16>
    %132 = arith.truncf %119 : vector<48x64xf32> to vector<48x64xbf16>
    %133 = arith.extf %132 : vector<48x64xbf16> to vector<48x64xf32>
    %134 = arith.subf %119, %133 : vector<48x64xf32>
    %135 = arith.truncf %134 : vector<48x64xf32> to vector<48x64xbf16>
    %136 = vector.extract_strided_slice %120 {offsets = [8, 0], sizes = [32, 64], strides = [1, 1]} : vector<48x64xbf16> to vector<32x64xbf16>
    %137 = vector.extract_strided_slice %123 {offsets = [8, 0], sizes = [32, 64], strides = [1, 1]} : vector<48x64xbf16> to vector<32x64xbf16>
    %138 = vector.extract_strided_slice %124 {offsets = [8, 0], sizes = [32, 64], strides = [1, 1]} : vector<48x64xbf16> to vector<32x64xbf16>
    %139 = vector.extract_strided_slice %127 {offsets = [8, 0], sizes = [32, 64], strides = [1, 1]} : vector<48x64xbf16> to vector<32x64xbf16>
    %140 = tpu.concatenate %136, %138 in 0 : vector<32x64xbf16>, vector<32x64xbf16> -> vector<64x64xbf16>
    %141 = tpu.concatenate %137, %139 in 0 : vector<32x64xbf16>, vector<32x64xbf16> -> vector<64x64xbf16>
    %c0_47 = arith.constant 0 : index
    %c0_48 = arith.constant 0 : index
    %142 = vector.load %arg13[%c0_47, %c0_48] : memref<64x128xbf16, #tpu.memory_space<vmem>>, vector<64x128xbf16>
    %c0_49 = arith.constant 0 : index
    %c0_50 = arith.constant 0 : index
    %143 = vector.load %arg14[%c0_49, %c0_50] : memref<64x128xbf16, #tpu.memory_space<vmem>>, vector<64x128xbf16>
    %cst_51 = arith.constant dense<0.000000e+00> : vector<64x128xf32>
    %144 = tpu.matmul %140, %142, %cst_51 {dimension_numbers = #tpu.dot_dimension_numbers<[1], [0], [0], [1], [0, 0, 1, 1], [], []>} : vector<64x64xbf16>, vector<64x128xbf16>, vector<64x128xf32> -> vector<64x128xf32>
    %cst_52 = arith.constant dense<0.000000e+00> : vector<64x128xf32>
    %145 = tpu.matmul %141, %142, %cst_52 {dimension_numbers = #tpu.dot_dimension_numbers<[1], [0], [0], [1], [0, 0, 1, 1], [], []>} : vector<64x64xbf16>, vector<64x128xbf16>, vector<64x128xf32> -> vector<64x128xf32>
    %146 = arith.addf %144, %145 : vector<64x128xf32>
    %cst_53 = arith.constant dense<0.000000e+00> : vector<64x128xf32>
    %147 = tpu.matmul %140, %143, %cst_53 {dimension_numbers = #tpu.dot_dimension_numbers<[1], [0], [0], [1], [0, 0, 1, 1], [], []>} : vector<64x64xbf16>, vector<64x128xbf16>, vector<64x128xf32> -> vector<64x128xf32>
    %148 = arith.addf %146, %147 : vector<64x128xf32>
    %cst_54 = arith.constant 0.000000e+00 : f32
    %149 = vector.broadcast %cst_54 : f32 to vector<64x128xf32>
    %150 = vector.extract_strided_slice %128 {offsets = [0, 0], sizes = [32, 64], strides = [1, 1]} : vector<48x64xbf16> to vector<32x64xbf16>
    %151 = vector.extract_strided_slice %131 {offsets = [0, 0], sizes = [32, 64], strides = [1, 1]} : vector<48x64xbf16> to vector<32x64xbf16>
    %152 = vector.extract_strided_slice %120 {offsets = [0, 0], sizes = [32, 64], strides = [1, 1]} : vector<48x64xbf16> to vector<32x64xbf16>
    %153 = vector.extract_strided_slice %123 {offsets = [0, 0], sizes = [32, 64], strides = [1, 1]} : vector<48x64xbf16> to vector<32x64xbf16>
    %154 = vector.extract_strided_slice %124 {offsets = [0, 0], sizes = [32, 64], strides = [1, 1]} : vector<48x64xbf16> to vector<32x64xbf16>
    %155 = vector.extract_strided_slice %127 {offsets = [0, 0], sizes = [32, 64], strides = [1, 1]} : vector<48x64xbf16> to vector<32x64xbf16>
    %156 = tpu.concatenate %150, %152, %154 in 1 : vector<32x64xbf16>, vector<32x64xbf16>, vector<32x64xbf16> -> vector<32x192xbf16>
    %157 = tpu.concatenate %151, %153, %155 in 1 : vector<32x64xbf16>, vector<32x64xbf16>, vector<32x64xbf16> -> vector<32x192xbf16>
    %158 = vector.extract_strided_slice %120 {offsets = [0, 0], sizes = [32, 64], strides = [1, 1]} : vector<48x64xbf16> to vector<32x64xbf16>
    %159 = vector.extract_strided_slice %123 {offsets = [0, 0], sizes = [32, 64], strides = [1, 1]} : vector<48x64xbf16> to vector<32x64xbf16>
    %160 = vector.extract_strided_slice %124 {offsets = [0, 0], sizes = [32, 64], strides = [1, 1]} : vector<48x64xbf16> to vector<32x64xbf16>
    %161 = vector.extract_strided_slice %127 {offsets = [0, 0], sizes = [32, 64], strides = [1, 1]} : vector<48x64xbf16> to vector<32x64xbf16>
    %162 = vector.extract_strided_slice %132 {offsets = [0, 0], sizes = [32, 64], strides = [1, 1]} : vector<48x64xbf16> to vector<32x64xbf16>
    %163 = vector.extract_strided_slice %135 {offsets = [0, 0], sizes = [32, 64], strides = [1, 1]} : vector<48x64xbf16> to vector<32x64xbf16>
    %164 = tpu.concatenate %158, %160, %162 in 1 : vector<32x64xbf16>, vector<32x64xbf16>, vector<32x64xbf16> -> vector<32x192xbf16>
    %165 = tpu.concatenate %159, %161, %163 in 1 : vector<32x64xbf16>, vector<32x64xbf16>, vector<32x64xbf16> -> vector<32x192xbf16>
    %166 = tpu.concatenate %156, %164 in 0 : vector<32x192xbf16>, vector<32x192xbf16> -> vector<64x192xbf16>
    %167 = tpu.concatenate %157, %165 in 0 : vector<32x192xbf16>, vector<32x192xbf16> -> vector<64x192xbf16>
    %c0_55 = arith.constant 0 : index
    %c0_56 = arith.constant 0 : index
    %c0_57 = arith.constant 0 : index
    %168 = vector.load %arg15[%c0_55, %c0_56, %c0_57] : memref<3x192x128xbf16, #tpu.memory_space<vmem>>, vector<1x192x128xbf16>
    %169 = vector.shape_cast %168 : vector<1x192x128xbf16> to vector<192x128xbf16>
    %c0_58 = arith.constant 0 : index
    %c0_59 = arith.constant 0 : index
    %c0_60 = arith.constant 0 : index
    %170 = vector.load %arg16[%c0_58, %c0_59, %c0_60] : memref<3x192x128xbf16, #tpu.memory_space<vmem>>, vector<1x192x128xbf16>
    %171 = vector.shape_cast %170 : vector<1x192x128xbf16> to vector<192x128xbf16>
    %cst_61 = arith.constant dense<0.000000e+00> : vector<64x128xf32>
    %172 = tpu.matmul %166, %169, %cst_61 {dimension_numbers = #tpu.dot_dimension_numbers<[1], [0], [0], [1], [0, 0, 1, 1], [], []>} : vector<64x192xbf16>, vector<192x128xbf16>, vector<64x128xf32> -> vector<64x128xf32>
    %cst_62 = arith.constant dense<0.000000e+00> : vector<64x128xf32>
    %173 = tpu.matmul %167, %169, %cst_62 {dimension_numbers = #tpu.dot_dimension_numbers<[1], [0], [0], [1], [0, 0, 1, 1], [], []>} : vector<64x192xbf16>, vector<192x128xbf16>, vector<64x128xf32> -> vector<64x128xf32>
    %174 = arith.addf %172, %173 : vector<64x128xf32>
    %cst_63 = arith.constant dense<0.000000e+00> : vector<64x128xf32>
    %175 = tpu.matmul %166, %171, %cst_63 {dimension_numbers = #tpu.dot_dimension_numbers<[1], [0], [0], [1], [0, 0, 1, 1], [], []>} : vector<64x192xbf16>, vector<192x128xbf16>, vector<64x128xf32> -> vector<64x128xf32>
    %176 = arith.addf %174, %175 : vector<64x128xf32>
    %177 = arith.addf %149, %176 : vector<64x128xf32>
    %178 = vector.extract_strided_slice %128 {offsets = [8, 0], sizes = [32, 64], strides = [1, 1]} : vector<48x64xbf16> to vector<32x64xbf16>
    %179 = vector.extract_strided_slice %131 {offsets = [8, 0], sizes = [32, 64], strides = [1, 1]} : vector<48x64xbf16> to vector<32x64xbf16>
    %180 = vector.extract_strided_slice %120 {offsets = [8, 0], sizes = [32, 64], strides = [1, 1]} : vector<48x64xbf16> to vector<32x64xbf16>
    %181 = vector.extract_strided_slice %123 {offsets = [8, 0], sizes = [32, 64], strides = [1, 1]} : vector<48x64xbf16> to vector<32x64xbf16>
    %182 = vector.extract_strided_slice %124 {offsets = [8, 0], sizes = [32, 64], strides = [1, 1]} : vector<48x64xbf16> to vector<32x64xbf16>
    %183 = vector.extract_strided_slice %127 {offsets = [8, 0], sizes = [32, 64], strides = [1, 1]} : vector<48x64xbf16> to vector<32x64xbf16>
    %184 = tpu.concatenate %178, %180, %182 in 1 : vector<32x64xbf16>, vector<32x64xbf16>, vector<32x64xbf16> -> vector<32x192xbf16>
    %185 = tpu.concatenate %179, %181, %183 in 1 : vector<32x64xbf16>, vector<32x64xbf16>, vector<32x64xbf16> -> vector<32x192xbf16>
    %186 = vector.extract_strided_slice %120 {offsets = [8, 0], sizes = [32, 64], strides = [1, 1]} : vector<48x64xbf16> to vector<32x64xbf16>
    %187 = vector.extract_strided_slice %123 {offsets = [8, 0], sizes = [32, 64], strides = [1, 1]} : vector<48x64xbf16> to vector<32x64xbf16>
    %188 = vector.extract_strided_slice %124 {offsets = [8, 0], sizes = [32, 64], strides = [1, 1]} : vector<48x64xbf16> to vector<32x64xbf16>
    %189 = vector.extract_strided_slice %127 {offsets = [8, 0], sizes = [32, 64], strides = [1, 1]} : vector<48x64xbf16> to vector<32x64xbf16>
    %190 = vector.extract_strided_slice %132 {offsets = [8, 0], sizes = [32, 64], strides = [1, 1]} : vector<48x64xbf16> to vector<32x64xbf16>
    %191 = vector.extract_strided_slice %135 {offsets = [8, 0], sizes = [32, 64], strides = [1, 1]} : vector<48x64xbf16> to vector<32x64xbf16>
    %192 = tpu.concatenate %186, %188, %190 in 1 : vector<32x64xbf16>, vector<32x64xbf16>, vector<32x64xbf16> -> vector<32x192xbf16>
    %193 = tpu.concatenate %187, %189, %191 in 1 : vector<32x64xbf16>, vector<32x64xbf16>, vector<32x64xbf16> -> vector<32x192xbf16>
    %194 = tpu.concatenate %184, %192 in 0 : vector<32x192xbf16>, vector<32x192xbf16> -> vector<64x192xbf16>
    %195 = tpu.concatenate %185, %193 in 0 : vector<32x192xbf16>, vector<32x192xbf16> -> vector<64x192xbf16>
    %c1 = arith.constant 1 : index
    %c0_64 = arith.constant 0 : index
    %c0_65 = arith.constant 0 : index
    %196 = vector.load %arg15[%c1, %c0_64, %c0_65] : memref<3x192x128xbf16, #tpu.memory_space<vmem>>, vector<1x192x128xbf16>
    %197 = vector.shape_cast %196 : vector<1x192x128xbf16> to vector<192x128xbf16>
    %c1_66 = arith.constant 1 : index
    %c0_67 = arith.constant 0 : index
    %c0_68 = arith.constant 0 : index
    %198 = vector.load %arg16[%c1_66, %c0_67, %c0_68] : memref<3x192x128xbf16, #tpu.memory_space<vmem>>, vector<1x192x128xbf16>
    %199 = vector.shape_cast %198 : vector<1x192x128xbf16> to vector<192x128xbf16>
    %cst_69 = arith.constant dense<0.000000e+00> : vector<64x128xf32>
    %200 = tpu.matmul %194, %197, %cst_69 {dimension_numbers = #tpu.dot_dimension_numbers<[1], [0], [0], [1], [0, 0, 1, 1], [], []>} : vector<64x192xbf16>, vector<192x128xbf16>, vector<64x128xf32> -> vector<64x128xf32>
    %cst_70 = arith.constant dense<0.000000e+00> : vector<64x128xf32>
    %201 = tpu.matmul %195, %197, %cst_70 {dimension_numbers = #tpu.dot_dimension_numbers<[1], [0], [0], [1], [0, 0, 1, 1], [], []>} : vector<64x192xbf16>, vector<192x128xbf16>, vector<64x128xf32> -> vector<64x128xf32>
    %202 = arith.addf %200, %201 : vector<64x128xf32>
    %cst_71 = arith.constant dense<0.000000e+00> : vector<64x128xf32>
    %203 = tpu.matmul %194, %199, %cst_71 {dimension_numbers = #tpu.dot_dimension_numbers<[1], [0], [0], [1], [0, 0, 1, 1], [], []>} : vector<64x192xbf16>, vector<192x128xbf16>, vector<64x128xf32> -> vector<64x128xf32>
    %204 = arith.addf %202, %203 : vector<64x128xf32>
    %205 = arith.addf %177, %204 : vector<64x128xf32>
    %206 = vector.extract_strided_slice %128 {offsets = [16, 0], sizes = [32, 64], strides = [1, 1]} : vector<48x64xbf16> to vector<32x64xbf16>
    %207 = vector.extract_strided_slice %131 {offsets = [16, 0], sizes = [32, 64], strides = [1, 1]} : vector<48x64xbf16> to vector<32x64xbf16>
    %208 = vector.extract_strided_slice %120 {offsets = [16, 0], sizes = [32, 64], strides = [1, 1]} : vector<48x64xbf16> to vector<32x64xbf16>
    %209 = vector.extract_strided_slice %123 {offsets = [16, 0], sizes = [32, 64], strides = [1, 1]} : vector<48x64xbf16> to vector<32x64xbf16>
    %210 = vector.extract_strided_slice %124 {offsets = [16, 0], sizes = [32, 64], strides = [1, 1]} : vector<48x64xbf16> to vector<32x64xbf16>
    %211 = vector.extract_strided_slice %127 {offsets = [16, 0], sizes = [32, 64], strides = [1, 1]} : vector<48x64xbf16> to vector<32x64xbf16>
    %212 = tpu.concatenate %206, %208, %210 in 1 : vector<32x64xbf16>, vector<32x64xbf16>, vector<32x64xbf16> -> vector<32x192xbf16>
    %213 = tpu.concatenate %207, %209, %211 in 1 : vector<32x64xbf16>, vector<32x64xbf16>, vector<32x64xbf16> -> vector<32x192xbf16>
    %214 = vector.extract_strided_slice %120 {offsets = [16, 0], sizes = [32, 64], strides = [1, 1]} : vector<48x64xbf16> to vector<32x64xbf16>
    %215 = vector.extract_strided_slice %123 {offsets = [16, 0], sizes = [32, 64], strides = [1, 1]} : vector<48x64xbf16> to vector<32x64xbf16>
    %216 = vector.extract_strided_slice %124 {offsets = [16, 0], sizes = [32, 64], strides = [1, 1]} : vector<48x64xbf16> to vector<32x64xbf16>
    %217 = vector.extract_strided_slice %127 {offsets = [16, 0], sizes = [32, 64], strides = [1, 1]} : vector<48x64xbf16> to vector<32x64xbf16>
    %218 = vector.extract_strided_slice %132 {offsets = [16, 0], sizes = [32, 64], strides = [1, 1]} : vector<48x64xbf16> to vector<32x64xbf16>
    %219 = vector.extract_strided_slice %135 {offsets = [16, 0], sizes = [32, 64], strides = [1, 1]} : vector<48x64xbf16> to vector<32x64xbf16>
    %220 = tpu.concatenate %214, %216, %218 in 1 : vector<32x64xbf16>, vector<32x64xbf16>, vector<32x64xbf16> -> vector<32x192xbf16>
    %221 = tpu.concatenate %215, %217, %219 in 1 : vector<32x64xbf16>, vector<32x64xbf16>, vector<32x64xbf16> -> vector<32x192xbf16>
    %222 = tpu.concatenate %212, %220 in 0 : vector<32x192xbf16>, vector<32x192xbf16> -> vector<64x192xbf16>
    %223 = tpu.concatenate %213, %221 in 0 : vector<32x192xbf16>, vector<32x192xbf16> -> vector<64x192xbf16>
    %c2 = arith.constant 2 : index
    %c0_72 = arith.constant 0 : index
    %c0_73 = arith.constant 0 : index
    %224 = vector.load %arg15[%c2, %c0_72, %c0_73] : memref<3x192x128xbf16, #tpu.memory_space<vmem>>, vector<1x192x128xbf16>
    %225 = vector.shape_cast %224 : vector<1x192x128xbf16> to vector<192x128xbf16>
    %c2_74 = arith.constant 2 : index
    %c0_75 = arith.constant 0 : index
    %c0_76 = arith.constant 0 : index
    %226 = vector.load %arg16[%c2_74, %c0_75, %c0_76] : memref<3x192x128xbf16, #tpu.memory_space<vmem>>, vector<1x192x128xbf16>
    %227 = vector.shape_cast %226 : vector<1x192x128xbf16> to vector<192x128xbf16>
    %cst_77 = arith.constant dense<0.000000e+00> : vector<64x128xf32>
    %228 = tpu.matmul %222, %225, %cst_77 {dimension_numbers = #tpu.dot_dimension_numbers<[1], [0], [0], [1], [0, 0, 1, 1], [], []>} : vector<64x192xbf16>, vector<192x128xbf16>, vector<64x128xf32> -> vector<64x128xf32>
    %cst_78 = arith.constant dense<0.000000e+00> : vector<64x128xf32>
    %229 = tpu.matmul %223, %225, %cst_78 {dimension_numbers = #tpu.dot_dimension_numbers<[1], [0], [0], [1], [0, 0, 1, 1], [], []>} : vector<64x192xbf16>, vector<192x128xbf16>, vector<64x128xf32> -> vector<64x128xf32>
    %230 = arith.addf %228, %229 : vector<64x128xf32>
    %cst_79 = arith.constant dense<0.000000e+00> : vector<64x128xf32>
    %231 = tpu.matmul %222, %227, %cst_79 {dimension_numbers = #tpu.dot_dimension_numbers<[1], [0], [0], [1], [0, 0, 1, 1], [], []>} : vector<64x192xbf16>, vector<192x128xbf16>, vector<64x128xf32> -> vector<64x128xf32>
    %232 = arith.addf %230, %231 : vector<64x128xf32>
    %233 = arith.addf %205, %232 : vector<64x128xf32>
    %234 = vector.extract_strided_slice %148 {offsets = [0, 0], sizes = [32, 128], strides = [1, 1]} : vector<64x128xf32> to vector<32x128xf32>
    %235 = vector.extract_strided_slice %233 {offsets = [0, 0], sizes = [32, 128], strides = [1, 1]} : vector<64x128xf32> to vector<32x128xf32>
    %236 = tpu.concatenate %234, %235 in 1 : vector<32x128xf32>, vector<32x128xf32> -> vector<32x256xf32>
    %237 = vector.extract_strided_slice %148 {offsets = [32, 0], sizes = [32, 128], strides = [1, 1]} : vector<64x128xf32> to vector<32x128xf32>
    %238 = vector.extract_strided_slice %233 {offsets = [32, 0], sizes = [32, 128], strides = [1, 1]} : vector<64x128xf32> to vector<32x128xf32>
    %239 = tpu.concatenate %237, %238 in 1 : vector<32x128xf32>, vector<32x128xf32> -> vector<32x256xf32>
    %240 = tpu.concatenate %236, %239 in 1 : vector<32x256xf32>, vector<32x256xf32> -> vector<32x512xf32>
    %c0_80 = arith.constant 0 : index
    %c0_81 = arith.constant 0 : index
    %241 = vector.load %arg17[%c0_80, %c0_81] : memref<1x512xf32, #tpu.memory_space<vmem>>, vector<1x512xf32>
    %242 = vector.broadcast %241 : vector<1x512xf32> to vector<32x512xf32>
    %243 = arith.addf %240, %242 : vector<32x512xf32>
    %cst_82 = arith.constant 0.000000e+00 : f32
    %244 = vector.broadcast %cst_82 : f32 to vector<32x512xf32>
    %245 = arith.maximumf %243, %244 : vector<32x512xf32>
    %c0_83 = arith.constant 0 : index
    %c0_84 = arith.constant 0 : index
    %c0_85 = arith.constant 0 : index
    %246 = vector.load %arg18[%c0_83, %c0_84, %c0_85] : memref<1x32x512xf32, #tpu.memory_space<vmem>>, vector<1x32x512xf32>
    %247 = vector.shape_cast %246 : vector<1x32x512xf32> to vector<32x512xf32>
    %248 = arith.addf %245, %247 : vector<32x512xf32>
    %c0_86 = arith.constant 0 : index
    %c0_87 = arith.constant 0 : index
    %c0_88 = arith.constant 0 : index
    %249 = vector.load %arg19[%c0_86, %c0_87, %c0_88] : memref<1x32x512xf32, #tpu.memory_space<vmem>>, vector<1x32x512xf32>
    %250 = vector.shape_cast %249 : vector<1x32x512xf32> to vector<32x512xf32>
    %251 = vector.shape_cast %248 : vector<32x512xf32> to vector<1x32x512xf32>
    tpu.vector_store %arg19[%c0_86, %c0_87, %c0_88], %251 {strides = array<i32>} : memref<1x32x512xf32, #tpu.memory_space<vmem>>, vector<1x32x512xf32>,
    return
  }
  func.func @transform_0(%arg0: i32, %arg1: i32) -> (i32, i32, i32) {
    %c0_i32 = arith.constant 0 : i32
    %c0_i32_0 = arith.constant 0 : i32
    return %arg0, %arg1, %c0_i32 : i32, i32, i32
  }
  func.func @transform_1(%arg0: i32, %arg1: i32) -> (i32, i32, i32) {
    %c4_i32 = arith.constant 4 : i32
    %0 = arith.muli %arg1, %c4_i32 : i32
    %c1_i32 = arith.constant 1 : i32
    %1 = arith.subi %0, %c1_i32 : i32
    %c0_i32 = arith.constant 0 : i32
    %2 = arith.maxsi %1, %c0_i32 : i32
    %c0_i32_0 = arith.constant 0 : i32
    %c0_i32_1 = arith.constant 0 : i32
    return %arg0, %2, %c0_i32_0 : i32, i32, i32
  }
  func.func @transform_2(%arg0: i32, %arg1: i32) -> (i32, i32, i32) {
    %c4_i32 = arith.constant 4 : i32
    %0 = arith.muli %arg1, %c4_i32 : i32
    %c4_i32_0 = arith.constant 4 : i32
    %1 = arith.addi %0, %c4_i32_0 : i32
    %c3_i32 = arith.constant 3 : i32
    %2 = arith.minsi %1, %c3_i32 : i32
    %c0_i32 = arith.constant 0 : i32
    %c0_i32_1 = arith.constant 0 : i32
    return %arg0, %2, %c0_i32 : i32, i32, i32
  }
  func.func @transform_3(%arg0: i32, %arg1: i32) -> (i32, i32) {
    %c0_i32 = arith.constant 0 : i32
    %c0_i32_0 = arith.constant 0 : i32
    %c0_i32_1 = arith.constant 0 : i32
    return %c0_i32, %c0_i32_0 : i32, i32
  }
  func.func @transform_4(%arg0: i32, %arg1: i32) -> (i32, i32) {
    %c0_i32 = arith.constant 0 : i32
    %c0_i32_0 = arith.constant 0 : i32
    %c0_i32_1 = arith.constant 0 : i32
    return %c0_i32, %c0_i32_0 : i32, i32
  }
  func.func @transform_5(%arg0: i32, %arg1: i32) -> (i32, i32) {
    %c0_i32 = arith.constant 0 : i32
    %c0_i32_0 = arith.constant 0 : i32
    %c0_i32_1 = arith.constant 0 : i32
    return %c0_i32, %c0_i32_0 : i32, i32
  }
  func.func @transform_6(%arg0: i32, %arg1: i32) -> (i32, i32) {
    %c0_i32 = arith.constant 0 : i32
    %c0_i32_0 = arith.constant 0 : i32
    %c0_i32_1 = arith.constant 0 : i32
    return %c0_i32, %c0_i32_0 : i32, i32
  }
  func.func @transform_7(%arg0: i32, %arg1: i32) -> (i32, i32) {
    %c0_i32 = arith.constant 0 : i32
    %c0_i32_0 = arith.constant 0 : i32
    %c0_i32_1 = arith.constant 0 : i32
    return %c0_i32, %c0_i32_0 : i32, i32
  }
  func.func @transform_8(%arg0: i32, %arg1: i32) -> (i32, i32) {
    %c0_i32 = arith.constant 0 : i32
    %c0_i32_0 = arith.constant 0 : i32
    %c0_i32_1 = arith.constant 0 : i32
    return %c0_i32, %c0_i32_0 : i32, i32
  }
  func.func @transform_9(%arg0: i32, %arg1: i32) -> (i32, i32) {
    %c0_i32 = arith.constant 0 : i32
    %c0_i32_0 = arith.constant 0 : i32
    %c0_i32_1 = arith.constant 0 : i32
    return %c0_i32, %c0_i32_0 : i32, i32
  }
  func.func @transform_10(%arg0: i32, %arg1: i32) -> (i32, i32) {
    %c0_i32 = arith.constant 0 : i32
    %c0_i32_0 = arith.constant 0 : i32
    %c0_i32_1 = arith.constant 0 : i32
    return %c0_i32, %c0_i32_0 : i32, i32
  }
  func.func @transform_11(%arg0: i32, %arg1: i32) -> (i32, i32) {
    %c0_i32 = arith.constant 0 : i32
    %c0_i32_0 = arith.constant 0 : i32
    %c0_i32_1 = arith.constant 0 : i32
    return %c0_i32, %c0_i32_0 : i32, i32
  }
  func.func @transform_12(%arg0: i32, %arg1: i32) -> (i32, i32) {
    %c0_i32 = arith.constant 0 : i32
    %c0_i32_0 = arith.constant 0 : i32
    %c0_i32_1 = arith.constant 0 : i32
    return %c0_i32, %c0_i32_0 : i32, i32
  }
  func.func @transform_13(%arg0: i32, %arg1: i32) -> (i32, i32, i32) {
    %c0_i32 = arith.constant 0 : i32
    %c0_i32_0 = arith.constant 0 : i32
    %c0_i32_1 = arith.constant 0 : i32
    %c0_i32_2 = arith.constant 0 : i32
    return %c0_i32, %c0_i32_0, %c0_i32_1 : i32, i32, i32
  }
  func.func @transform_14(%arg0: i32, %arg1: i32) -> (i32, i32, i32) {
    %c0_i32 = arith.constant 0 : i32
    %c0_i32_0 = arith.constant 0 : i32
    %c0_i32_1 = arith.constant 0 : i32
    %c0_i32_2 = arith.constant 0 : i32
    return %c0_i32, %c0_i32_0, %c0_i32_1 : i32, i32, i32
  }
  func.func @transform_15(%arg0: i32, %arg1: i32) -> (i32, i32) {
    %c0_i32 = arith.constant 0 : i32
    %c0_i32_0 = arith.constant 0 : i32
    %c0_i32_1 = arith.constant 0 : i32
    return %c0_i32, %c0_i32_0 : i32, i32
  }
  func.func @transform_16(%arg0: i32, %arg1: i32) -> (i32, i32, i32) {
    %c0_i32 = arith.constant 0 : i32
    %c0_i32_0 = arith.constant 0 : i32
    return %arg0, %arg1, %c0_i32 : i32, i32, i32
  }
  func.func @transform_17(%arg0: i32, %arg1: i32) -> (i32, i32, i32) {
    %c0_i32 = arith.constant 0 : i32
    %c0_i32_0 = arith.constant 0 : i32
    return %arg0, %arg1, %c0_i32 : i32, i32, i32
  }
}

</mosaic_0001>

<bundles_post_ra>
// kernel: tpu_custom_call.1
= control target key start
LH: loop header
LB: loop body
LE: loop exit
PB: predicated region body
PF: predicated region fallthrough
CT: control target
= control target key end

     0   :  { %s7159_s0 = inlined_call_operand.vmem [shape: f32[2,32,64], index: 0, kind: input, shape index: {}]   ;;  %s7160_s1 = inlined_call_operand.hbm [shape: f32[2,32,64], index: 1, kind: input, shape index: {}]   ;;  %s7161_s2 = inlined_call_operand.hbm [shape: f32[2,32,64], index: 2, kind: input, shape index: {}]   ;;  %s7162_s3 = inlined_call_operand.vmem [shape: bf16[64,64], index: 3, kind: input, shape index: {}]   ;;  %s7163_s4 = inlined_call_operand.hbm [shape: bf16[64,64], index: 4, kind: input, shape index: {}]   ;;  %s7164_s5 = inlined_call_operand.vmem [shape: f32[1,64], index: 5, kind: input, shape index: {}]   ;;  %s7165_s6 = inlined_call_operand.vmem [shape: bf16[128,64], index: 6, kind: input, shape index: {}]   ;;  %s7166_s7 = inlined_call_operand.vmem [shape: bf16[128,64], index: 7, kind: input, shape index: {}]   ;;  %s7167_s8 = inlined_call_operand.vmem [shape: bf16[128,64], index: 8, kind: input, shape index: {}]   ;;  %s7168_s9 = inlined_call_operand.vmem [shape: bf16[128,64], index: 9, kind: input, shape index: {}]   ;;  %s7169_s10 = inlined_call_operand.vmem [shape: f32[1,64], index: 10, kind: input, shape index: {}]   ;;  %s7170_s11 = inlined_call_operand.hbm [shape: bf16[64,128], index: 11, kind: input, shape index: {}]   ;;  %s7171_s12 = inlined_call_operand.hbm [shape: bf16[64,128], index: 12, kind: input, shape index: {}]   ;;  %s7172_s13 = inlined_call_operand.vmem [shape: bf16[3,192,128], index: 13, kind: input, shape index: {}]   ;;  %s7173_s14 = inlined_call_operand.hbm [shape: bf16[3,192,128], index: 14, kind: input, shape index: {}]   ;;  %s7174_s15 = inlined_call_operand.vmem [shape: f32[1,512], index: 15, kind: input, shape index: {}]   ;;  %s7175_s16 = inlined_call_operand.hbm [shape: f32[2,32,512], index: 16, kind: input, shape index: {}]   ;;  %s7176_s17 = inlined_call_operand.hbm [shape: f32[2,32,512], index: 17, kind: output, shape index: {}]  }
   0x1   :  { %7197 = sst [smem:[#allocation28_spill]] %s7159_s0 }
   0x2   :  { %7198 = sst [smem:[#allocation29_spill]] %s7160_s1 }
   0x3   :  { %7199 = sst [smem:[#allocation30_spill]] %s7163_s4 }
   0x4   :  { %7200 = sst [smem:[#allocation31_spill]] %s7164_s5 }
   0x5   :  { %7201 = sst [smem:[#allocation32_spill]] %s7165_s6 }
   0x6   :  { %7202 = sst [smem:[#allocation33_spill]] %s7166_s7 }
   0x7   :  { %7203 = sst [smem:[#allocation34_spill]] %s7167_s8 }
   0x8   :  { %7204 = sst [smem:[#allocation35_spill]] %s7168_s9 }
   0x9   :  { %7205 = sst [smem:[#allocation36_spill]] %s7169_s10 }
   0xa   :  { %7206 = sst [smem:[#allocation37_spill]] %s7170_s11 }
   0xb   :  { %7207 = sst [smem:[#allocation38_spill]] %s7172_s13 }
   0xc   :  { %7208 = sst [smem:[#allocation39_spill]] %s7174_s15 }
   0xd   :  { %7209 = sst [smem:[#allocation40_spill]] %s7176_s17 }
   0xe   :  { %22 = vsyncpa [#allocation3], 0 }
   0xf   :  { %24 = vsyncpa [#allocation3 + $0x1], 0 }
  0x10   :  { %25 = vsyncpa [#allocation6], 0 }
  0x11   :  { %27 = vsyncpa [#allocation6 + $0x1], 0 }
  0x12   :  { %28 = vsyncpa [#allocation9], 0 }
  0x13   :  { %29 = vsyncpa [#allocation12], 0 }
  0x14   :  { %30 = vsyncpa [#allocation4], 0 }
  0x15   :  { %32 = vsyncpa [#allocation4 + $0x1], 0  ;;  %s5516_s24 = smov 0   ;;  %s5518_s25 = smov 0  }
  0x16   :  { %s5520_s26 = smov 0   ;;  %s5522_s27 = smov 0  }
  0x17   :  { %s5524_s28 = smov 0   ;;  %s5526_s29 = smov 0  }
  0x18 LB: > { %7210 = sst [smem:[#allocation22_spill]] %s5386_s24  ;;  %s5547_s0 = sadd.s32 4294967295, %s5406_s29   ;;  %s5406_s29 = sphi %s5526_s29, %s38_s29   ;;  %s5402_s28 = sphi %s5524_s28, %s7273_s28   ;;  %s5398_s27 = sphi %s5522_s27, %s7272_s27   ;;  %s5394_s26 = sphi %s5520_s26, %s7268_s26   ;;  %s5390_s25 = sphi %s5518_s25, %s7271_s25   ;;  %s5386_s24 = sphi %s5516_s24, %s7270_s24  }
  0x19   : > { %7211 = sst [smem:[#allocation23_spill]] %s5394_s26  ;;  %p4211_p0 = scmp.ge.s32.totalorder %s5406_s29, 1 }
  0x1a   : > { %p7191_p1 = scmp.eq.s32.totalorder %s5547_s0, 0  ;;  %p484_p2 = scmp.lt.s32.totalorder %s5406_s29, 3 }
  0x1b   : > { %s5408_s18 = smov [#allocation7]   ;;  %s5409_s20 = smov [#allocation8]  }
  0x1c   : > { %p5552_p3 = pnand %p4211_p0, %p484_p2  ;;  %s499_s19 = sshll.u32 %s5408_s18, 4  ;;  %s500_s19 = int_to_ptr.vmem [resolvable:$true] %s499_s19 }
  0x1d   : > { %s530_s21 = sshll.u32 %s5409_s20, 4  ;;  %s5129_s22 = scalar_lea.vmem %s500_s19, 512  ;;  %s531_s21 = int_to_ptr.vmem [resolvable:$true] %s530_s21 }
  0x1e   : > { %p4899_p4 = pneg %p5552_p3  ;;  %p5130_p8 = scmp.ne.s32.totalorder %s500_s19, %s5129_s22 }
  0x1f   : > { %p5137_p11 = scmp.lt.s32.totalorder %s500_s19, %s500_s19  ;;  %p5138_p12 = scmp.lt.s32.totalorder %s5129_s22, %s5129_s22 }
  0x20   : > { %p5561_p6 = pnand %p4899_p4, %p7191_p1 }
  0x21   : > { %p5139_p13 = por %p5138_p12, %p5137_p11 }
  0x22   : > { %p7192_p7 = pneg %p5561_p6 }
  0x24   : > { %p5132_p9 = pnand %p5130_p8, %p7192_p7 }
  0x26   : > { %p5133_p10 = pneg %p5132_p9 }
  0x28   : > { %p5140_p0 = pnand %p5139_p13, %p5133_p10 }
  0x2a   : > { %5143 = shalt.err (!%p5140_p0)
}
  0x2b   : > { %s7179_s23 = smov 64   ;;  %s7181_s18 = smov 4  }
  0x2c   : > { %s7214_s4 = sld [smem:[#allocation30_spill]]  ;;  %s5155_s15 = scalar_lea.vmem %s531_s21, 512 }
  0x2d   : > { %p5156_p2 = scmp.ne.s32.totalorder %s531_s21, %s5155_s15  ;;  %p5163_p9 = scmp.lt.s32.totalorder %s531_s21, %s531_s21 }
  0x2e   : > { %p5164_p10 = scmp.lt.s32.totalorder %s5155_s15, %s5155_s15 }
  0x2f   : > { %p5158_p4 = pnand %p5156_p2, %p7192_p7 }
  0x30   : > { %p5165_p11 = por %p5164_p10, %p5163_p9 }
  0x31   : > { %p5159_p8 = pneg %p5158_p4 }
  0x32   : > { %4902 = dma.hbm_to_vmem [thread:$0]  (!%p5561_p6), %s7214_s4, 512, %s500_s19, [#allocation6], %s7179_s23, %s7179_s23, %s7181_s18  }
  0x33   : > { %p5166_p12 = pnand %p5165_p11, %p5159_p8 }
  0x35   : > { %5169 = shalt.err (!%p5166_p12)
}
  0x36   : > { %s7215_s11 = sld [smem:[#allocation37_spill]]  ;;  %s4210_s15 = sadd.s32 4294967294, %s5406_s29  }
  0x37   : > { %s50_s17 = sadd.s32 1, %s5402_s28  ;;  %s95_s19 = sadd.s32 1, %s5394_s26 }
  0x38   : > { %p52_p13 = scmp.ge.s32.totalorder %s50_s17, 2  ;;  %p102_p0 = scmp.ne.s32.totalorder %s5394_s26, %s5390_s25 }
  0x39   : > { %p103_p2 = scmp.eq.s32.totalorder %s5406_s29, 0  ;;  %p108_p8 = scmp.ne.s32.totalorder %s5390_s25, %s5386_s24 }
  0x3a   : > { %s7275_s17 = smov (%p52_p13, %s50_s17), 0  ;;  %p471_p9 = scmp.eq.s32.totalorder %s5547_s0, 1 }
  0x3b   : > { %7216 = sst [smem:[#allocation24_spill]] %s7275_s17  ;;  %p5597_p4 = por %p103_p2, %p102_p0 }
  0x3c   : > { %4905 = dma.hbm_to_vmem [thread:$0]  (!%p5561_p6), %s7215_s11, 512, %s531_s21, [#allocation9], %s7179_s23, %s7179_s23, %s7181_s18  }
  0x3d   : > { %s90_s21 = ssub.s32 %s5402_s28, %s7275_s17  ;;  %p5608_p11 = por %p7191_p1, %p108_p8 }
  0x3e   : > { %p93_p10 = scmp.eq.s32.totalorder %s90_s21, 0  ;;  %p5612_p12 = por %p471_p9, %p102_p0 }
  0x3f   : > { %p477_p13 = scmp.eq.s32.totalorder %s4210_s15, 1  ;;  %p4930_p5 = scmp.lt.s32.totalorder %s5406_s29, 2 }
  0x40   : > { %s7219_s22 = scalar_select %p5612_p12, 1, 0 }
  0x41   : > { %s5617_s23 = scalar_select %p93_p10, %s5394_s26, %s95_s19  }
  0x42   : > { %7220 = sst [smem:[#allocation25_spill]] %s7219_s22  ;;  %p5619_p2 = por %p477_p13, %p108_p8 }
  0x43   : > { %7221 = sst [smem:[#allocation26_spill]] %s5617_s23  ;;  %s7193_s4 = sand.u32 1, %s5406_s29  }
  0x44   : > { %s7222_s18 = scalar_select %p5619_p2, 1, 0 }
  0x45   : > { %s591_s21 = sand.u32 1, %s5394_s26   ;;  %s4481_s17 = sshll.u32 %s5402_s28, 9 }
  0x46   : > { %7223 = sst [smem:[#allocation27_spill]] %s7222_s18  ;;  %s5626_s11 = sshll.u32 %s591_s21, 3 }
  0x47   : > { %s7224_s9 = sld [smem:[#allocation29_spill]]  ;;  %s593_s7 = scalar_lea.vmem [#allocation2], %s5626_s11 }
  0x48   : > { %s606_s22 = sshll.u32 %s593_s7, 4  ;;  %p5635_p0 = pnand %p4930_p5, %p5597_p4  ;;  %s607_s22 = int_to_ptr.vmem [resolvable:$true] %s606_s22 }
  0x49   : > { %s5639_s19 = sadd.s32 384, %s4481_s17  ;;  %s5643_s23 = scalar_lea.sflag [#allocation3], %s7193_s4 }
  0x4a   : > { %p7195_p8 = pneg %p5635_p0  ;;  %s5183_s26 = scalar_lea.vmem %s607_s22, 128 }
  0x4b   : > { %p5184_p9 = scmp.ne.s32.totalorder %s607_s22, %s5183_s26  ;;  %s5412_s7 = smov [#allocation2]  }
  0x4d   : > { %s604_s8 = scalar_lea.hbm %s7224_s9, %s4481_s17  ;;  %p5186_p10 = pnand %p5184_p9, %p7195_p8 }
  0x4e   : > { %s5188_s9 = sshll.u32 %s5412_s7, 4  ;;  %s5189_s9 = int_to_ptr.vmem [resolvable:$false] %s5188_s9 }
  0x4f   : > { %p5187_p13 = pneg %p5186_p10  ;;  %s5190_s10 = scalar_lea.vmem %s5189_s9, 256 }
  0x50   : > { %p5191_p5 = scmp.lt.s32.totalorder %s607_s22, %s5189_s9  ;;  %p5192_p4 = scmp.lt.s32.totalorder %s5190_s10, %s5183_s26 }
  0x52   : > { %p5193_p1 = por %p5192_p4, %p5191_p5 }
  0x54   : > { %p5194_p7 = pnand %p5193_p1, %p5187_p13 }
  0x56   : > { %5197 = shalt.err (!%p5194_p7)
}
  0x57   : > { %4915 = dma.hbm_to_vmem [thread:$0]  (!%p5635_p0), %s604_s8, 128, %s607_s22, %s5643_s23  }
  0x58   : > { %s4223_s24 = sshll.u32 %s591_s21, 7  ;;  %s5413_s17 = smov [#allocation10]  }
  0x59   : > { %s543_s13 = sshll.u32 %s5413_s17, 4  ;;  %s641_s4 = scalar_lea.vmem [#allocation13], %s4223_s24  ;;  %s544_s13 = int_to_ptr.vmem [resolvable:$true] %s543_s13 }
  0x5a   : > { %s651_s18 = sshll.u32 %s641_s4, 4  ;;  %s5209_s7 = scalar_lea.vmem %s544_s13, 512  ;;  %s5653_s18 = int_to_ptr.vmem [resolvable:$true] %s651_s18 }
  0x5b   : > { %p5210_p9 = scmp.ne.s32.totalorder %s544_s13, %s5209_s7  ;;  %p7226_p10 = pneg %p5561_p6 }
  0x5c   : > { %p5217_p7 = scmp.lt.s32.totalorder %s544_s13, %s544_s13  ;;  %p5218_p13 = scmp.lt.s32.totalorder %s5209_s7, %s5209_s7 }
  0x5d   : > { %p5212_p5 = pnand %p5210_p9, %p7226_p10 }
  0x5e   : > { %p5219_p4 = por %p5218_p13, %p5217_p7 }
  0x5f   : > { %p5213_p1 = pneg %p5212_p5 }
  0x61   : > { %p5220_p8 = pnand %p5219_p4, %p5213_p1 }
  0x63   : > { %5223 = shalt.err (!%p5220_p8)
}
  0x64   : > { %s7227_s8 = smov 4   ;;  %s7228_s26 = smov 64  }
  0x65   : > { %4908 = dma.hbm_to_vmem [thread:$0]  (!%p5561_p6), %s7171_s12, 512, %s544_s13, [#allocation9], %s7228_s26, %s7228_s26, %s7227_s8  }
  0x66   : > { %s5414_s21 = smov [#allocation11]   ;;  %s628_s17 = scalar_lea.hbm %s7161_s2, %s5639_s19 }
  0x67   : > { %s559_s9 = sshll.u32 %s5414_s21, 4  ;;  %s617_s7 = scalar_lea.vmem [#allocation5], %s5626_s11  ;;  %s560_s9 = int_to_ptr.vmem [resolvable:$true] %s559_s9 }
  0x68   : > { %s630_s5 = sshll.u32 %s617_s7, 4  ;;  %s5235_s6 = scalar_lea.vmem %s560_s9, 4608  ;;  %s631_s5 = int_to_ptr.vmem [resolvable:$true] %s630_s5 }
  0x69   : > { %p5236_p8 = scmp.ne.s32.totalorder %s560_s9, %s5235_s6  ;;  %p7229_p9 = pmov %p7226_p10 }
  0x6a   : > { %p5243_p1 = scmp.lt.s32.totalorder %s560_s9, %s560_s9  ;;  %p5244_p7 = scmp.lt.s32.totalorder %s5235_s6, %s5235_s6 }
  0x6b   : > { %p5238_p10 = pnand %p5236_p8, %p7229_p9 }
  0x6c   : > { %p5245_p13 = por %p5244_p7, %p5243_p1 }
  0x6d   : > { %p5239_p5 = pneg %p5238_p10 }
  0x6f   : > { %p5246_p4 = pnand %p5245_p13, %p5239_p5 }
  0x71   : > { %5249 = shalt.err (!%p5246_p4)
}
  0x72   : > { %4911 = dma.hbm_to_vmem [thread:$0]  (!%p5561_p6), %s7173_s14, 4608, %s560_s9, [#allocation12], %s7228_s26, %s7228_s26, %s7227_s8  }
  0x73   : > { %s4484_s11 = sshll.u32 %s5402_s28, 11  ;;  %s7230_s22 = sand.u32 1, %s5406_s29  }
  0x74   : > { %s614_s21 = scalar_lea.sflag [#allocation6], %s7230_s22  ;;  %s5263_s6 = scalar_lea.vmem %s631_s5, 128 }
  0x75   : > { %p5264_p8 = scmp.ne.s32.totalorder %s631_s5, %s5263_s6  ;;  %p7231_p9 = pneg %p5635_p0 }
  0x76   : > { %s5415_s1 = smov [#allocation5]  }
  0x77   : > { %p5266_p10 = pnand %p5264_p8, %p7231_p9  ;;  %s5268_s10 = sshll.u32 %s5415_s1, 4  ;;  %s5269_s10 = int_to_ptr.vmem [resolvable:$false] %s5268_s10 }
  0x78   : > { %s5270_s24 = scalar_lea.vmem %s5269_s10, 256  ;;  %p5271_p1 = scmp.lt.s32.totalorder %s631_s5, %s5269_s10 }
  0x79   : > { %p5267_p5 = pneg %p5266_p10  ;;  %p5272_p7 = scmp.lt.s32.totalorder %s5270_s24, %s5263_s6 }
  0x7b   : > { %p5273_p13 = por %p5272_p7, %p5271_p1 }
  0x7d   : > { %p5274_p4 = pnand %p5273_p13, %p5267_p5 }
  0x7f   : > { %5277 = shalt.err (!%p5274_p4)
}
  0x80   : > { %4918 = dma.hbm_to_vmem [thread:$0]  (!%p5635_p0), %s628_s17, 128, %s631_s5, %s614_s21  }
  0x81   : > { %s650_s13 = scalar_lea.hbm %s7175_s16, %s4484_s11  ;;  %s5291_s4 = scalar_lea.vmem %s5653_s18, 2048 }
  0x82   : > { %p5292_p6 = scmp.ne.s32.totalorder %s5653_s18, %s5291_s4  ;;  %p7232_p8 = pmov %p7231_p9 }
  0x83   : > { %s5416_s22 = smov [#allocation13]  }
  0x84   : > { %p5294_p9 = pnand %p5292_p6, %p7232_p8  ;;  %s5296_s6 = sshll.u32 %s5416_s22, 4  ;;  %s5297_s6 = int_to_ptr.vmem [resolvable:$false] %s5296_s6 }
  0x85   : > { %s5298_s1 = scalar_lea.vmem %s5297_s6, 4096  ;;  %p5299_p5 = scmp.lt.s32.totalorder %s5653_s18, %s5297_s6 }
  0x86   : > { %p5295_p10 = pneg %p5294_p9  ;;  %p5300_p1 = scmp.lt.s32.totalorder %s5298_s1, %s5291_s4 }
  0x88   : > { %p5301_p7 = por %p5300_p1, %p5299_p5 }
  0x8a   : > { %p5302_p13 = pnand %p5301_p7, %p5295_p10 }
  0x8c   : > { %5305 = shalt.err (!%p5302_p13)
}
  0x8d   : > { %s5417_s5 = smov 512   ;;  %s5418_s19 = smov 32  }
  0x8e   : > { %4921 = dma.hbm_to_vmem [thread:$0]  (!%p5635_p0), %s650_s13, 2048, %s5653_s18, %s5643_s23, %s5417_s5, %s5417_s5, %s5418_s19  }
  0x8f   : > { %663 = sbr.rel (%p5552_p3) target bundleno = 1359 (0x54f), region = 88  ;;  %s665_s17 = sand.u32 (!%p5552_p3), 1, %s5547_s0  }
  0x90   : > { %s5712_s11 = sand.u32 (!%p5552_p3), 1, %s5390_s25   ;;  %s666_s10 = scalar_lea.sflag (!%p5552_p3), [#allocation3], %s665_s17 }
  0x91   : > { %s4227_s21 = sshll.u32 (!%p5552_p3), %s5712_s11, 3 }
  0x92   : > { %s5715_s24 = scalar_lea.vmem (!%p5552_p3), [#allocation2], %s4227_s21 }
  0x94   : > { %5357 = dma.done.wait (%p5608_p11), %s666_s10, 128  }
  0x95   : > { %5359 = vsyncadd (%p5608_p11), %s666_s10, 4294967168  ;;  %s675_s23 = scalar_lea.sflag [#allocation6], %s665_s17  ;;  %s5721_s30 = scalar_lea.vmem [#allocation5], %s4227_s21 }
  0x96   : > { %5361 = dma.done.wait (%p5608_p11), %s675_s23, 128  }
  0x97   : > { %5363 = vsyncadd (%p5608_p11), %s675_s23, 4294967168  ;;  %p7233_p3 = scmp.eq.s32.totalorder %s5547_s0, 0 }
  0x99   : > { %5365 = dma.done.wait (%p7233_p3), [#allocation6], 512   ;;  %p7234_p0 = pmov %p7233_p3 }
  0x9b   : > { %5367 = vsyncadd (%p7234_p0), [#allocation6], 4294966784  ;;  %p7235_p4 = pmov %p7234_p0 }
  0x9c   : > { %p7236_p6 = pmov %p7234_p0 }
  0x9d   : > { %5369 = dma.done.wait (%p7235_p4), [#allocation9], 1024  }
  0x9e   : > { %5371 = vsyncadd (%p7236_p6), [#allocation9], 4294966272  ;;  %p7237_p8 = pmov %p7234_p0 }
  0x9f   : > { %p7238_p9 = pmov %p7234_p0 }
  0xa0   : > { %5373 = dma.done.wait (%p7237_p8), [#allocation12], 4608  }
  0xa1   : > { %5375 = vsyncadd (%p7238_p9), [#allocation12], 4294962688  ;;  %s4233_s18 = sshll.u32 %s5712_s11, 7 }
  0xa2   : > { %s5742_s15 = scalar_lea.vmem [#allocation13], %s4233_s18 }
  0xa3   : > { %5377 = dma.done.wait (%p5608_p11), %s666_s10, 2048  }
  0xa4   : > { %5379 = vsyncadd (%p5608_p11), %s666_s10, 4294965248  ;;  %p774_p10 = scmp.lt.s32.totalorder %s5398_s27, 1  ;;  %v5419_v0 = vmov 0.0   ;;  %vm5420_vm0 = vmmov 0   ;;  %v4998_v1 = vld [vmem:[%s7162_s3 + $0x18] sm:$0xff]   ;;  %s7239_s13 = sld [smem:[#allocation28_spill]]  ;;  %v1097_v60 = vlaneseq }
  0xa5   : > { %4599 = vmatprep.subr.bf16.mxu0 %v5419_v0  ;;  %4607 = vmatprep.mubr.msk.bf16.mxu0 %vm5420_vm0, %v5419_v0  ;;  %v4999_v2 = vld [vmem:[%s7162_s3 + $0x10] sm:$0xff]   ;;  %v794_v3 = vld [vmem:[%s5715_s24] sm:$0xff]  ;;  %vm858_vm1 = vcmask 523264   ;;  %v5002_v29 = vld [vmem:[#allocation7 + $0x18] sm:$0xff]   ;;  %s7240_s24 = sld [smem:[#allocation32_spill]]  ;;  %s4003_s6 = scalar_lea.sflag [#allocation4], %s5712_s11 }
  0xa6   : > { %s775_s0 = scalar_select %p774_p10, %s5398_s27, 1  ;;  %4659 = vmatprep.subr.bf16.mxu1 %v5419_v0  ;;  %4675 = vmatprep.mubr.msk.bf16.mxu1 %vm5420_vm0, %v5419_v0  ;;  %v5000_v5 = vld [vmem:[%s7162_s3 + $0x8] sm:$0xff]   ;;  %v5001_v11 = vld [vmem:[%s7162_s3] sm:$0xff]   ;;  %v799_v16 = vld [vmem:[%s5721_s30] sm:$0xff]  ;;  %v5856_v63 = vshrl.u32 %v1097_v60, 7 }
  0xa7   : > { %4600 = vmatpush3.bf16.msra.mxu0 %v4998_v1  ;;  %v5003_v30 = vld [vmem:[#allocation7 + $0x10] sm:$0xff]   ;;  %v5004_v31 = vld [vmem:[#allocation7 + $0x8] sm:$0xff]   ;;  %v5005_v32 = vld [vmem:[#allocation7] sm:$0xff]   ;;  %s7242_s10 = sld [smem:[#allocation31_spill]]  ;;  %s6951_s30 = scalar_lea.vmem [#allocation14], %s4233_s18 }
  0xa8   : > { %s4485_s8 = sshll.u32 %s775_s0, 5  ;;  %4601 = vmatprep.subr.bf16.mxu0 %v5419_v0  ;;  %vm1275_vm3 = vcmp.lt.s32.totalorder %v5856_v63, 7  ;;  %vm1256_vm6 = vcmp.lt.s32.totalorder %v5856_v63, 1  ;;  %s7257_s9 = sld [smem:[#allocation35_spill]] }
  0xa9   : > { %s7258_s22 = sld [smem:[#allocation36_spill]]  ;;  %s4486_s0 = sshll.u32 %s5398_s27, 11 }
  0xaa   : > { %s781_s4 = scalar_lea.vmem %s7239_s13, %s4485_s8  ;;  %s7255_s8 = sld [smem:[#allocation33_spill]] }
  0xab   : > { %v795_v4 = vld [vmem:[%s781_s4] sm:$0xff]  ;;  %v796_v7 = vld [vmem:[%s781_s4 + $0x8] sm:$0xff]  ;;  %4602 = vmatpush3.bf16.msra.mxu0 %v4999_v2  ;;  %v797_v8 = vld [vmem:[%s781_s4 + $0x10] sm:$0xff]  ;;  %s7241_s23 = smov %s7240_s24  ;;  %s7256_s13 = sld [smem:[#allocation34_spill]] }
  0xac   : > { %v800_v6 = vpack.c.bf16 %v795_v4, %v794_v3  ;;  %4603 = vmatprep.subr.bf16.mxu0 %v5419_v0  ;;  %v801_v14 = vpack.c.bf16 %v797_v8, %v796_v7  ;;  %v798_v15 = vld [vmem:[%s781_s4 + $0x18] sm:$0xff]  ;;  %v5007_v34 = vld [vmem:[%s7241_s23 + $0x30] sm:$0xff]   ;;  %v5008_v35 = vld [vmem:[%s7241_s23 + $0x28] sm:$0xff]   ;;  %s7259_s5 = sld [smem:[#allocation38_spill]]  ;;  %s4019_s20 = sshll.u32 %s6951_s30, 4  ;;  %s7110_s20 = int_to_ptr.vmem [resolvable:$true] %s4019_s20 }
  0xad   : > { %v802_v22 = vpack.c.bf16 %v799_v16, %v798_v15  ;;  %v5006_v33 = vld [vmem:[%s7240_s24 + $0x38] sm:$0xff]   ;;  %v5009_v36 = vld [vmem:[%s7241_s23 + $0x20] sm:$0xff]   ;;  %v5011_v38 = vld [vmem:[%s7241_s23 + $0x10] sm:$0xff]   ;;  %s5421_s24 = smov 64   ;;  %s7260_s17 = sld [smem:[#allocation39_spill]] }
  0xae   : > { %v803_v9 = vunpack.c.l.bf16 %v800_v6  ;;  %v804_v10 = vunpack.c.h.bf16 %v800_v6  ;;  %v805_v18 = vunpack.c.l.bf16 %v801_v14  ;;  %v806_v19 = vunpack.c.h.bf16 %v801_v14  ;;  %4660 = vmatpush3.bf16.msra.mxu1 %v5006_v33  ;;  %v5010_v37 = vld [vmem:[%s7241_s23 + $0x18] sm:$0xff]   ;;  %v5012_v39 = vld [vmem:[%s7241_s23 + $0x8] sm:$0xff]   ;;  %v5013_v40 = vld [vmem:[%s7241_s23] sm:$0xff]   ;;  %s5306_s1 = scalar_lea.vmem %s7110_s20, 2048  ;;  %s5423_s27 = smov [#allocation14]  }
  0xaf   : > { %4604 = vmatpush3.bf16.msra.mxu0 %v5000_v5  ;;  %v807_v24 = vunpack.c.l.bf16 %v802_v22  ;;  %v808_v25 = vunpack.c.h.bf16 %v802_v22  ;;  %4661 = vmatprep.subr.bf16.mxu1 %v5419_v0  ;;  %p5307_p11 = scmp.ne.s32.totalorder %s7110_s20, %s5306_s1 }
  0xb0   : > { %v809_v12 = vsub.f32 %v794_v3, %v803_v9  ;;  %v810_v13 = vsub.f32 %v795_v4, %v804_v10  ;;  %4605 = vmatprep.subr.bf16.mxu0 %v5419_v0  ;;  %v811_v20 = vsub.f32 %v796_v7, %v805_v18  ;;  %v812_v21 = vsub.f32 %v797_v8, %v806_v19 }
  0xb1   : > { %v813_v26 = vsub.f32 %v798_v15, %v807_v24  ;;  %v814_v27 = vsub.f32 %v799_v16, %v808_v25  ;;  %v1099_v3 = vadd.s32 8, %v5856_v63  ;;  %v1101_v7 = vadd.s32 24, %v5856_v63  ;;  %p5308_p5 = pnand %p5307_p11, %p5612_p12 }
  0xb2   : > { %v815_v17 = vpack.c.bf16 %v810_v13, %v809_v12  ;;  %v816_v23 = vpack.c.bf16 %v812_v21, %v811_v20  ;;  %4662 = vmatpush3.bf16.msra.mxu1 %v5007_v34  ;;  %v1108_v8 = vand.u32 7, %v5856_v63 }
  0xb3   : > { %4606 = vmatpush3.bf16.msra.mxu0 %v5001_v11  ;;  %v817_v28 = vpack.c.bf16 %v814_v27, %v813_v26  ;;  %4663 = vmatprep.subr.bf16.mxu1 %v5419_v0  ;;  %v1115_v12 = vand.u32 7, %v1099_v3  ;;  %v1129_v16 = vand.u32 7, %v1101_v7  ;;  %v1102_v26 = vadd.s32 32, %v5856_v63  ;;  %p5309_p1 = pneg %p5308_p5 }
  0xb4   : > { %4619 = vmatprep.subr.bf16.mxu0 %v5419_v0  ;;  %vm1194_vm2 = vcmp.ne.s32.totalorder %v1108_v8, 7  ;;  %v5882_v27 = vadd.s32 40, %v5856_v63  ;;  %vm5940_vm13 = vcmp.ne.s32.totalorder %v1108_v8, 0 }
  0xb5   : > { %vm1177_vm4 = vcmp.ne.s32.totalorder %v1115_v12, 0  ;;  %vm1195_vm5 = vcmp.ne.s32.totalorder %v1115_v12, 7  ;;  %v5874_v21 = vsel %vm1194_vm2, 1.0, %v5419_v0  ;;  %vm1179_vm9 = vcmp.ne.s32.totalorder %v1129_v16, 0 }
  0xb6   : > { %4608 = vmatmul.mubr.msk.bf16.vlgmr.msra.gmra.mxu0 %vm858_vm1, %v815_v17  ;;  %4664 = vmatpush3.bf16.msra.mxu1 %v5008_v35  ;;  %vm5893_vm10 = vcmp.ne.s32.totalorder %v1129_v16, 7 }
  0xb7   : > { %4620 = vmatpush3.bf16.msra.mxu0 %v4998_v1  ;;  %4611 = vmatprep.mubr.msk.bf16.mxu0 %vm5420_vm0, %v5419_v0 }
  0xb8   : > { %4621 = vmatprep.subr.bf16.mxu0 %v5419_v0  ;;  %4665 = vmatprep.subr.bf16.mxu1 %v5419_v0 }
  0xba   : > { %4666 = vmatpush3.bf16.msra.mxu1 %v5009_v36 }
  0xbb   : > { %4622 = vmatpush3.bf16.msra.mxu0 %v4999_v2  ;;  %4667 = vmatprep.subr.bf16.mxu1 %v5419_v0 }
  0xbc   : > { %4623 = vmatprep.subr.bf16.mxu0 %v5419_v0 }
  0xbe   : > { %4612 = vmatmul.mubr.msk.bf16.gmra.mxu0 %vm858_vm1, %v816_v23  ;;  %4668 = vmatpush3.bf16.msra.mxu1 %v5010_v37 }
  0xbf   : > { %4624 = vmatpush3.bf16.msra.mxu0 %v5000_v5  ;;  %4615 = vmatprep.mubr.msk.bf16.mxu0 %vm5420_vm0, %v5419_v0  ;;  %v1100_v5 = vadd.s32 16, %v5856_v63 }
  0xc0   : > { %4625 = vmatprep.subr.bf16.mxu0 %v5419_v0  ;;  %4669 = vmatprep.subr.bf16.mxu1 %v5419_v0 }
  0xc2   : > { %4670 = vmatpush3.bf16.msra.mxu1 %v5011_v38 }
  0xc3   : > { %4626 = vmatpush3.bf16.msra.mxu0 %v5001_v11  ;;  %4671 = vmatprep.subr.bf16.mxu1 %v5419_v0  ;;  %v5867_v11 = vld [vmem:[%s7242_s10] ss:$0 sm:$0xff] }
  0xc4   : > { %4639 = vmatprep.subr.bf16.mxu0 %v5419_v0 }
  0xc6   : > { %4616 = vmatmul.mubr.msk.bf16.gmra.mxu0 %vm858_vm1, %v817_v28  ;;  %4672 = vmatpush3.bf16.msra.mxu1 %v5012_v39  ;;  %v5885_v28 = vsel %vm1177_vm4, 1.0, %v5419_v0 }
  0xc7   : > { %4627 = vmatprep.mubr.msk.bf16.mxu0 %vm5420_vm0, %v5419_v0  ;;  %4673 = vmatprep.subr.bf16.mxu1 %v5419_v0 }
  0xca   : > { %4674 = vmatpush3.bf16.msra.mxu1 %v5013_v40 }
  0xcb   : > { %4715 = vmatprep.subr.bf16.mxu1 %v5419_v0 }
  0xce   : > { %4628 = vmatmul.mubr.msk.bf16.vlgmr.msra.gmra.mxu0 %vm858_vm1, %v800_v6 }
  0xcf   : > { %4640 = vmatpush3.bf16.msra.mxu0 %v5002_v29  ;;  %4631 = vmatprep.mubr.msk.bf16.mxu0 %vm5420_vm0, %v5419_v0 }
  0xd0   : > { %4641 = vmatprep.subr.bf16.mxu0 %v5419_v0 }
  0xd3   : > { %4642 = vmatpush3.bf16.msra.mxu0 %v5003_v30 }
  0xd4   : > { %4643 = vmatprep.subr.bf16.mxu0 %v5419_v0 }
  0xd6   : > { %4632 = vmatmul.mubr.msk.bf16.gmra.mxu0 %vm858_vm1, %v801_v14 }
  0xd7   : > { %4644 = vmatpush3.bf16.msra.mxu0 %v5004_v31  ;;  %4635 = vmatprep.mubr.msk.bf16.mxu0 %vm5420_vm0, %v5419_v0  ;;  %v5888_v31 = vsel %vm1195_vm5, 1.0, %v5419_v0 }
  0xd8   : > { %4645 = vmatprep.subr.bf16.mxu0 %v5419_v0 }
  0xdb   : > { %4646 = vmatpush3.bf16.msra.mxu0 %v5005_v32 }
  0xdc   : > { %4687 = vmatprep.subr.bf16.mxu0 %v5419_v0 }
  0xde   : > { %4636 = vmatmul.mubr.msk.bf16.gmra.mxu0 %vm858_vm1, %v802_v22 }
  0xdf   : > { %4647 = vmatprep.mubr.msk.bf16.mxu0 %vm5420_vm0, %v5419_v0 }
  0xe6   : > { %4648 = vmatmul.mubr.msk.bf16.vlgmr.msra.gmra.mxu0 %vm858_vm1, %v800_v6 }
  0xe7   : > { %4651 = vmatprep.mubr.msk.bf16.mxu0 %vm5420_vm0, %v5419_v0  ;;  %4688 = vmatpush3.bf16.msra.mxu0 %v5006_v33 }
  0xe8   : > { %4689 = vmatprep.subr.bf16.mxu0 %v5419_v0 }
  0xeb   : > { %4690 = vmatpush3.bf16.msra.mxu0 %v5007_v34 }
  0xec   : > { %4691 = vmatprep.subr.bf16.mxu0 %v5419_v0 }
  0xee   : > { %4652 = vmatmul.mubr.msk.bf16.gmra.mxu0 %vm858_vm1, %v801_v14  ;;  %v1122_v14 = vand.u32 7, %v1100_v5 }
  0xef   : > { %4655 = vmatprep.mubr.msk.bf16.mxu0 %vm5420_vm0, %v5419_v0  ;;  %4692 = vmatpush3.bf16.msra.mxu0 %v5008_v35 }
  0xf0   : > { %4693 = vmatprep.subr.bf16.mxu0 %v5419_v0  ;;  %vm1178_vm7 = vcmp.ne.s32.totalorder %v1122_v14, 0  ;;  %vm1196_vm8 = vcmp.ne.s32.totalorder %v1122_v14, 7 }
  0xf1   : > { %v5891_v32 = vsel %vm1178_vm7, 1.0, %v5419_v0 }
  0xf3   : > { %4694 = vmatpush3.bf16.msra.mxu0 %v5009_v36  ;;  %v5898_v36 = vsel %vm1196_vm8, 1.0, %v5419_v0 }
  0xf4   : > { %4695 = vmatprep.subr.bf16.mxu0 %v5419_v0 }
  0xf6   : > { %4656 = vmatmul.mubr.msk.bf16.gmra.mxu0 %vm858_vm1, %v802_v22 }
  0xf7   : > { %4703 = vmatprep.mubr.msk.bf16.mxu0 %vm5420_vm0, %v5419_v0  ;;  %4696 = vmatpush3.bf16.msra.mxu0 %v5010_v37  ;;  %v5901_v37 = vsel %vm1179_vm9, 1.0, %v5419_v0 }
  0xf8   : > { %4697 = vmatprep.subr.bf16.mxu0 %v5419_v0 }
  0xfb   : > { %4698 = vmatpush3.bf16.msra.mxu0 %v5011_v38 }
  0xfc   : > { %4699 = vmatprep.subr.bf16.mxu0 %v5419_v0 }
  0xff   : > { %4700 = vmatpush3.bf16.msra.mxu0 %v5012_v39 }
 0x100   : > { %4701 = vmatprep.subr.bf16.mxu0 %v5419_v0 }
 0x103   : > { %4702 = vmatpush3.bf16.msra.mxu0 %v5013_v40 }
 0x104   : > { %4743 = vmatprep.subr.bf16.mxu0 %v5419_v0 }
 0x176   : > { %v902_v41 = vpop.f32.mrf.mxu0 }
 0x178   : > { %v4609_v42 = vpop.f32.mrf.mxu0 }
 0x17a   : > { %v905_v43 = vpop.f32.mrf.mxu0 }
 0x17c   : > { %v4610_v44 = vpop.f32.mrf.mxu0 }
 0x17e   : > { %v910_v45 = vpop.f32.mrf.mxu0 }
 0x180   : > { %v4613_v46 = vpop.f32.mrf.mxu0 }
 0x181   : > { %v1143_v46 = vand.u32 7, %v5882_v27 }
 0x182   : > { %v913_v47 = vpop.f32.mrf.mxu0 }
 0x183   : > { %vm5934_vm12 = vcmp.ne.s32.totalorder %v1143_v46, 7  ;;  %vm5986_vm15 = vcmp.ne.s32.totalorder %v1143_v46, 0 }
 0x184   : > { %v4614_v48 = vpop.f32.mrf.mxu0 }
 0x186   : > { %v5852_v49 = vpop.f32.mrf.mxu0 }
 0x188   : > { %v4617_v50 = vpop.f32.mrf.mxu0 }
 0x18a   : > { %v5854_v51 = vpop.f32.mrf.mxu0 }
 0x18c   : > { %v4618_v52 = vpop.f32.mrf.mxu0 }
 0x18e   : > { %v968_v53 = vpop.f32.mrf.mxu0 }
 0x18f   : > { %v969_v6 = vadd.f32 %v968_v53, %v902_v41 }
 0x190   : > { %v4629_v54 = vpop.f32.mrf.mxu0 }
 0x192   : > { %v971_v55 = vpop.f32.mrf.mxu0 }
 0x193   : > { %v972_v15 = vadd.f32 %v971_v55, %v905_v43  ;;  %v5916_v55 = vsel %vm5893_vm10, 1.0, %v5419_v0 }
 0x194   : > { %v4630_v56 = vpop.f32.mrf.mxu0 }
 0x196   : > { %v976_v57 = vpop.f32.mrf.mxu0 }
 0x197   : > { %v977_v22 = vadd.f32 %v976_v57, %v910_v45  ;;  %v1136_v45 = vand.u32 7, %v1102_v26 }
 0x198   : > { %v4633_v58 = vpop.f32.mrf.mxu0 }
 0x199   : > { %vm5930_vm11 = vcmp.ne.s32.totalorder %v1136_v45, 7  ;;  %vm5971_vm14 = vcmp.ne.s32.totalorder %v1136_v45, 0 }
 0x19a   : > { %v979_v59 = vpop.f32.mrf.mxu0  ;;  %v5998_v46 = vsel %vm5971_vm14, 1.0, %v5419_v0 }
 0x19b   : > { %v980_v33 = vadd.f32 %v979_v59, %v913_v47 }
 0x19c   : > { %v4634_v61 = vpop.f32.mrf.mxu0 }
 0x19e   : > { %v984_v62 = vpop.f32.mrf.mxu0 }
 0x19f   : > { %v985_v53 = vadd.f32 %v984_v62, %v5852_v49 }
 0x1a0   : > { %v4637_v1 = vpop.f32.mrf.mxu0 }
 0x1a2   : > { %v5858_v2 = vpop.f32.mrf.mxu0 }
 0x1a4   : > { %v4638_v4 = vpop.f32.mrf.mxu0 }
 0x1a6   : > { %v1049_v9 = vpop.f32.mrf.mxu0 }
 0x1a7   : > { %v1072_v10 = vadd.f32 %v1049_v9, %v969_v6 }
 0x1a8   : > { %v4649_v13 = vpop.f32.mrf.mxu0 }
 0x1a9   : > { %v1085_v17 = vadd.f32 %v5867_v11, %v1072_v10  ;;  %v988_v10 = vadd.f32 %v5858_v2, %v5854_v51  ;;  %v5964_v51 = vsel %vm5930_vm11, 1.0, %v5419_v0  ;;  %v5969_v2 = vsel %vm5934_vm12, 1.0, %v5419_v0 }
 0x1aa   : > { %v1052_v18 = vpop.f32.mrf.mxu0 }
 0x1ab   : > { %v1073_v19 = vadd.f32 %v1052_v18, %v972_v15  ;;  %v5878_v24 = vmax.f32 %v1085_v17, 0.0 }
 0x1ac   : > { %v4650_v20 = vpop.f32.mrf.mxu0 }
 0x1ad   : > { %v1086_v23 = vadd.f32 %v5867_v11, %v1073_v19  ;;  %v1250_v42 = vrot.slane %v5878_v24, 7  ;;  %v1269_v43 = vrot.slane %v5878_v24, 1 }
 0x1ae   : > { %v1057_v25 = vpop.f32.mrf.mxu0 }
 0x1af   : > { %v1092_v29 = vmax.f32 %v1086_v23, 0.0  ;;  %v1074_v30 = vadd.f32 %v1057_v25, %v977_v22 }
 0x1b0   : > { %v4653_v34 = vpop.f32.mrf.mxu0 }
 0x1b1   : > { %v1251_v38 = vrot.slane %v1092_v29, 7  ;;  %v1270_v39 = vrot.slane %v1092_v29, 1  ;;  %v5904_v40 = vpack.c.bf16 %v1092_v29, %v5878_v24  ;;  %v1087_v41 = vadd.f32 %v5867_v11, %v1074_v30 }
 0x1b2   : > { %v1060_v44 = vpop.f32.mrf.mxu0 }
 0x1b3   : > { %v1093_v47 = vmax.f32 %v1087_v41, 0.0  ;;  %v1075_v48 = vadd.f32 %v1060_v44, %v980_v33  ;;  %v1291_v50 = vunpack.c.l.bf16 %v5904_v40  ;;  %v1292_v52 = vunpack.c.h.bf16 %v5904_v40 }
 0x1b4   : > { %v4654_v54 = vpop.f32.mrf.mxu0  ;;  %v1280_v56 = vsel %vm1275_vm3, %v1269_v43, %v1270_v39  ;;  %v5926_v57 = vsel %vm1256_vm6, %v1250_v42, %v1251_v38  ;;  %v5982_v33 = vsel %vm5940_vm13, 1.0, %v5419_v0 }
 0x1b5   : > { %v1252_v58 = vrot.slane %v1093_v47, 7  ;;  %v1271_v59 = vrot.slane %v1093_v47, 1  ;;  %v1088_v49 = vadd.f32 %v5867_v11, %v1075_v48  ;;  %v1297_v60 = vsub.f32 %v5878_v24, %v1291_v50 }
 0x1b6   : > { %v1065_v61 = vpop.f32.mrf.mxu0  ;;  %v1298_v62 = vsub.f32 %v1092_v29, %v1292_v52  ;;  %v1282_v14 = vmul.f32 %v5874_v21, %v1280_v56 }
 0x1b7   : > { %v1094_v5 = vmax.f32 %v1088_v49, 0.0  ;;  %v1076_v6 = vadd.f32 %v1065_v61, %v985_v53  ;;  %v1279_v7 = vsel %vm1275_vm3, %v1270_v39, %v1271_v59  ;;  %v1260_v9 = vsel %vm1256_vm6, %v1251_v38, %v1252_v58 }
 0x1b8   : > { %v4657_v12 = vpop.f32.mrf.mxu0  ;;  %v5950_v13 = vpack.c.bf16 %v1298_v62, %v1297_v60  ;;  %v1283_v8 = vmul.f32 %v5888_v31, %v1279_v7  ;;  %v1265_v50 = vmul.f32 %v5891_v32, %v1260_v9 }
 0x1b9   : > { %v1253_v15 = vrot.slane %v1094_v5, 7  ;;  %v1272_v16 = vrot.slane %v1094_v5, 1  ;;  %v5954_v17 = vpack.c.bf16 %v1094_v5, %v1093_v47  ;;  %v1089_v18 = vadd.f32 %v5867_v11, %v1076_v6 }
 0x1ba   : > { %1367 = vrot.lane.b32.xlu0 %v5950_v13, %s5421_s24  ;;  %v1068_v19 = vpop.f32.mrf.mxu0  ;;  %v5959_v20 = vpack.c.bf16 %v1283_v8, %v1282_v14 }
 0x1bb   : > { %v1095_v23 = vmax.f32 %v1089_v18, 0.0  ;;  %v1077_v25 = vadd.f32 %v1068_v19, %v988_v10  ;;  %v1293_v26 = vunpack.c.l.bf16 %v5954_v17  ;;  %v1294_v27 = vunpack.c.h.bf16 %v5954_v17 }
 0x1bc   : > { %v4658_v29 = vpop.f32.mrf.mxu0  ;;  %v1278_v30 = vsel %vm1275_vm3, %v1271_v59, %v1272_v16  ;;  %v1259_v34 = vsel %vm1256_vm6, %v1252_v58, %v1253_v15  ;;  %v1327_v48 = vunpack.c.l.bf16 %v5959_v20  ;;  %v6012_v59 = vsel %vm5986_vm15, 1.0, %v5419_v0 }
 0x1bd   : > { %v1254_v38 = vrot.slane %v1095_v23, 7  ;;  %v1273_v39 = vrot.slane %v1095_v23, 1  ;;  %v1090_v41 = vadd.f32 %v5867_v11, %v1077_v25  ;;  %v1299_v44 = vsub.f32 %v1093_v47, %v1293_v26 }
 0x1be   : > { %1346 = vrot.lane.b32.xlu0 %v5904_v40, %s5421_s24  ;;  %v1300_v45 = vsub.f32 %v1094_v5, %v1294_v27  ;;  %v1266_v11 = vmul.f32 %v5901_v37, %v1259_v34  ;;  %v1284_v56 = vmul.f32 %v5898_v36, %v1278_v30  ;;  %v1328_v3 = vunpack.c.h.bf16 %v5959_v20 }
 0x1bf   : > { %v1096_v52 = vmax.f32 %v1090_v41, 0.0  ;;  %v1277_v53 = vsel %vm1275_vm3, %v1272_v16, %v1273_v39  ;;  %v1258_v47 = vsel %vm1256_vm6, %v1253_v15, %v1254_v38  ;;  %v1333_v4 = vsub.f32 %v1282_v14, %v1327_v48 }
 0x1c0   : > { %v6005_v54 = vpack.c.bf16 %v1300_v45, %v1299_v44  ;;  %v1285_v58 = vmul.f32 %v5916_v55, %v1277_v53  ;;  %v6016_v62 = vpack.c.bf16 %v1266_v11, %v1265_v50  ;;  %v1264_v5 = vmul.f32 %v5885_v28, %v5926_v57 }
 0x1c1   : > { %v1255_v49 = vrot.slane %v1096_v52, 7  ;;  %v1274_v60 = vrot.slane %v1096_v52, 1  ;;  %v6014_v61 = vpack.c.bf16 %v1096_v52, %v1095_v23 }
 0x1c2   : > { %1369 = vrot.lane.b32.xlu1 %v6005_v54, %s5421_s24  ;;  %v1325_v1 = vpack.c.bf16 %v1285_v58, %v1284_v56  ;;  %v1311_v22 = vunpack.c.l.bf16 %v6016_v62 }
 0x1c3   : > { %v1295_v6 = vunpack.c.l.bf16 %v6014_v61  ;;  %v1296_v7 = vunpack.c.h.bf16 %v6014_v61  ;;  %v1276_v9 = vsel %vm1275_vm3, %v1273_v39, %v1274_v60  ;;  %v1281_v10 = vsel %vm1275_vm3, %v1274_v60, %v1269_v43 }
 0x1c4   : > { %v1329_v12 = vunpack.c.l.bf16 %v1325_v1  ;;  %v1330_v15 = vunpack.c.h.bf16 %v1325_v1  ;;  %v1286_v16 = vmul.f32 %v5964_v51, %v1276_v9  ;;  %v1287_v14 = vmul.f32 %v5969_v2, %v1281_v10 }
 0x1c5   : > { %v1301_v18 = vsub.f32 %v1095_v23, %v1295_v6  ;;  %v1302_v57 = vsub.f32 %v1096_v52, %v1296_v7  ;;  %v1262_v19 = vsel %vm1256_vm6, %v1255_v49, %v1250_v42  ;;  %v1334_v43 = vsub.f32 %v1283_v8, %v1328_v3 }
 0x1c6   : > { %1348 = vrot.lane.b32.xlu1 %v5954_v17, %s5421_s24  ;;  %v1335_v25 = vsub.f32 %v1284_v56, %v1329_v12  ;;  %v1326_v26 = vpack.c.bf16 %v1287_v14, %v1286_v16  ;;  %v1263_v27 = vmul.f32 %v5982_v33, %v1262_v19  ;;  %v1312_v23 = vunpack.c.h.bf16 %v6016_v62 }
 0x1c7   : > { %v6041_v29 = vpack.c.bf16 %v1302_v57, %v1301_v18  ;;  %v1317_v30 = vsub.f32 %v1265_v50, %v1311_v22  ;;  %v1257_v24 = vsel %vm1256_vm6, %v1254_v38, %v1255_v49  ;;  %v1336_v34 = vsub.f32 %v1285_v58, %v1330_v15  ;;  %v5015_v15 = vld [vmem:[%s7255_s8 + $0x30] sm:$0xff]   ;;  %v5019_v22 = vld [vmem:[%s7255_s8 + $0x20] sm:$0xff]  }
 0x1c8   : > { %v1331_v42 = vunpack.c.l.bf16 %v1326_v26  ;;  %v1332_v35 = vunpack.c.h.bf16 %v1326_v26  ;;  %v1306_v39 = vpack.c.bf16 %v1264_v5, %v1263_v27  ;;  %v1318_v41 = vsub.f32 %v1266_v11, %v1312_v23  ;;  %v6086_v18 = vld [vmem:[%s7256_s13 + $0x30] sm:$0xff]   ;;  %v5021_v23 = vld [vmem:[%s7255_s8 + $0x18] sm:$0xff]  }
 0x1c9   : > { %1371 = vrot.lane.b32.xlu0 %v6041_v29, %s5421_s24  ;;  %v1267_v8 = vmul.f32 %v5998_v46, %v1258_v47  ;;  %v1268_v44 = vmul.f32 %v6012_v59, %v1257_v24  ;;  %v1339_v45 = vpack.c.bf16 %v1334_v43, %v1333_v4  ;;  %v1340_v58 = vpack.c.bf16 %v1336_v34, %v1335_v25  ;;  %v5020_v25 = vld [vmem:[%s7256_s13 + $0x28] sm:$0xff]   ;;  %v5023_v34 = vld [vmem:[%s7255_s8 + $0x10] sm:$0xff]  }
 0x1ca   : > { %1350 = vrot.lane.b32.xlu1 %v6014_v61, %s5421_s24  ;;  %v1309_v48 = vunpack.c.l.bf16 %v1306_v39  ;;  %v1310_v50 = vunpack.c.h.bf16 %v1306_v39  ;;  %v1337_v52 = vsub.f32 %v1286_v16, %v1331_v42  ;;  %v1338_v38 = vsub.f32 %v1287_v14, %v1332_v35  ;;  %v5017_v14 = vld [vmem:[%s7255_s8 + $0x28] sm:$0xff]   ;;  %v5024_v42 = vld [vmem:[%s7256_s13 + $0x18] sm:$0xff]  }
 0x1cb   : > { %v1322_v53 = vpack.c.bf16 %v1318_v41, %v1317_v30  ;;  %v6052_v56 = vpack.c.bf16 %v1268_v44, %v1267_v8  ;;  %v5022_v30 = vld [vmem:[%s7256_s13 + $0x20] sm:$0xff]   ;;  %v5026_v41 = vld [vmem:[%s7256_s13 + $0x10] sm:$0xff]  }
 0x1cc   : > { %v1315_v49 = vsub.f32 %v1263_v27, %v1309_v48  ;;  %v1316_v60 = vsub.f32 %v1264_v5, %v1310_v50  ;;  %v1341_v4 = vpack.c.bf16 %v1338_v38, %v1337_v52  ;;  %v5014_v5 = vld [vmem:[%s7255_s8 + $0x38] sm:$0xff]   ;;  %v5031_v38 = vld [vmem:[%s7257_s9 + $0x30] sm:$0xff]  }
 0x1cd   : > { %1732 = vrot.lane.b32.xlu0 %v1339_v45, %s5421_s24  ;;  %v1313_v11 = vunpack.c.l.bf16 %v6052_v56  ;;  %v1314_v47 = vunpack.c.h.bf16 %v6052_v56  ;;  %v5029_v45 = vld [vmem:[%s7256_s13] sm:$0xff]   ;;  %v5030_v50 = vld [vmem:[%s7257_s9 + $0x38] sm:$0xff]  }
 0x1ce   : > { %1734 = vrot.lane.b32.xlu1 %v1340_v58, %s5421_s24  ;;  %v1321_v3 = vpack.c.bf16 %v1316_v60, %v1315_v49  ;;  %v5033_v58 = vld [vmem:[%s7257_s9 + $0x20] sm:$0xff]  }
 0x1cf   : > { %v1319_v6 = vsub.f32 %v1267_v8, %v1313_v11  ;;  %v1320_v7 = vsub.f32 %v1268_v44, %v1314_v47  ;;  %v5027_v8 = vld [vmem:[%s7255_s8] sm:$0xff]   ;;  %v5028_v44 = vld [vmem:[%s7256_s13 + $0x8] sm:$0xff]   ;;  %v5035_v11 = vld [vmem:[%s7257_s9 + $0x10] sm:$0xff]  }
 0x1d1   : > { %1736 = vrot.lane.b32.xlu0 %v1341_v4, %s5421_s24  ;;  %v1323_v9 = vpack.c.bf16 %v1320_v7, %v1319_v6 }
 0x1d2   : > { %1711 = vrot.lane.b32.xlu1 %v5959_v20, %s5421_s24  ;;  %v6073_v20 = vld [vmem:[%s7256_s13 + $0x38] sm:$0xff]  }
 0x1d5   : > { %1713 = vrot.lane.b32.xlu0 %v1325_v1, %s5421_s24 }
 0x1d6   : > { %1715 = vrot.lane.b32.xlu1 %v1326_v26, %s5421_s24 }
 0x22c   : > { %v1368_v10 = vpop.permute.xlu0 %1367 }
 0x22d   : > { %v1375_v12 = vsel %vm858_vm1, %v1321_v3, %v1368_v10  ;;  %v5037_v3 = vld [vmem:[%s7257_s9] sm:$0xff]   ;;  %v5039_v10 = vld [vmem:[#allocation10 + $0x10] sm:$0xff]  }
 0x22e   : > { %4676 = vmatmul.mubr.bf16.vlgmr.msra.gmra.mxu1 %v1375_v12  ;;  %v5041_v12 = vld [vmem:[#allocation10 + $0x8] sm:$0xff]  }
 0x22f   : > { %4716 = vmatpush3.bf16.msra.mxu1 %v5014_v5  ;;  %4679 = vmatprep.mubr.msk.bf16.mxu1 %vm5420_vm0, %v5419_v0  ;;  %v5038_v5 = vld [vmem:[#allocation10 + $0x18] sm:$0xff]  }
 0x230   : > { %v1347_v1 = vpop.permute.xlu0 %1346  ;;  %4717 = vmatprep.subr.bf16.mxu1 %v5419_v0 }
 0x231   : > { %v1354_v16 = vsel %vm858_vm1, %v1306_v39, %v1347_v1  ;;  %v5025_v39 = vld [vmem:[%s7255_s8 + $0x8] sm:$0xff]   ;;  %v5422_v1 = vmov 0  }
 0x232   : > { %4704 = vmatmul.mubr.bf16.vlgmr.msra.gmra.mxu0 %v1354_v16 }
 0x233   : > { %4718 = vmatpush3.bf16.msra.mxu1 %v5015_v15  ;;  %4744 = vmatpush3.bf16.msra.mxu0 %v6073_v20  ;;  %v6233_v15 = vld [vmem:[#allocation8 + $0x8] sm:$0xff]  }
 0x234   : > { %v1370_v57 = vpop.permute.xlu1 %1369  ;;  %4719 = vmatprep.subr.bf16.mxu1 %v5419_v0  ;;  %4745 = vmatprep.subr.bf16.mxu0 %v5419_v0 }
 0x235   : > { %v1379_v19 = vsel %vm858_vm1, %v1322_v53, %v1370_v57  ;;  %4707 = vmatprep.mubr.msk.bf16.mxu0 %vm5420_vm0, %v5419_v0 }
 0x236   : > { %4680 = vmatmul.mubr.bf16.gmra.mxu1 %v1379_v19 }
 0x237   : > { %4720 = vmatpush3.bf16.msra.mxu1 %v5017_v14  ;;  %4746 = vmatpush3.bf16.msra.mxu0 %v6086_v18 }
 0x238   : > { %v1349_v43 = vpop.permute.xlu1 %1348  ;;  %4721 = vmatprep.subr.bf16.mxu1 %v5419_v0  ;;  %4747 = vmatprep.subr.bf16.mxu0 %v5419_v0 }
 0x239   : > { %v1358_v26 = vsel %vm858_vm1, %v6016_v62, %v1349_v43  ;;  %4683 = vmatprep.mubr.msk.bf16.mxu1 %vm5420_vm0, %v5419_v0 }
 0x23a   : > { %4708 = vmatmul.mubr.bf16.gmra.mxu0 %v1358_v26 }
 0x23b   : > { %4722 = vmatpush3.bf16.msra.mxu1 %v5019_v22  ;;  %4748 = vmatpush3.bf16.msra.mxu0 %v5020_v25  ;;  %v1372_v27 = vpop.permute.xlu0 %1371 }
 0x23c   : > { %4723 = vmatprep.subr.bf16.mxu1 %v5419_v0  ;;  %4749 = vmatprep.subr.bf16.mxu0 %v5419_v0  ;;  %v1383_v62 = vsel %vm858_vm1, %v1323_v9, %v1372_v27  ;;  %v1351_v24 = vpop.permute.xlu1 %1350 }
 0x23d   : > { %4711 = vmatprep.mubr.msk.bf16.mxu0 %vm5420_vm0, %v5419_v0  ;;  %v1362_v35 = vsel %vm858_vm1, %v6052_v56, %v1351_v24 }
 0x23e   : > { %4684 = vmatmul.mubr.bf16.gmra.mxu1 %v1383_v62 }
 0x23f   : > { %4724 = vmatpush3.bf16.msra.mxu1 %v5021_v23  ;;  %4750 = vmatpush3.bf16.msra.mxu0 %v5022_v30  ;;  %v1733_v48 = vpop.permute.xlu0 %1732 }
 0x240   : > { %4725 = vmatprep.subr.bf16.mxu1 %v5419_v0  ;;  %4751 = vmatprep.subr.bf16.mxu0 %v5419_v0  ;;  %v1740_v52 = vsel %vm858_vm1, %v5950_v13, %v1733_v48  ;;  %v1735_v53 = vpop.permute.xlu1 %1734  ;;  %v5032_v13 = vld [vmem:[%s7257_s9 + $0x28] sm:$0xff]  }
 0x241   : > { %4731 = vmatprep.mubr.msk.bf16.mxu1 %vm5420_vm0, %v5419_v0  ;;  %v1744_v56 = vsel %vm858_vm1, %v6005_v54, %v1735_v53  ;;  %v5034_v54 = vld [vmem:[%s7257_s9 + $0x18] sm:$0xff]  }
 0x242   : > { %4712 = vmatmul.mubr.bf16.gmra.mxu0 %v1362_v35 }
 0x243   : > { %4726 = vmatpush3.bf16.msra.mxu1 %v5023_v34  ;;  %4752 = vmatpush3.bf16.msra.mxu0 %v5024_v42  ;;  %v1737_v49 = vpop.permute.xlu0 %1736 }
 0x244   : > { %4727 = vmatprep.subr.bf16.mxu1 %v5419_v0  ;;  %4753 = vmatprep.subr.bf16.mxu0 %v5419_v0  ;;  %v1748_v60 = vsel %vm858_vm1, %v6041_v29, %v1737_v49  ;;  %v5036_v29 = vld [vmem:[%s7257_s9 + $0x8] sm:$0xff]   ;;  %v1712_v47 = vpop.permute.xlu1 %1711 }
 0x245   : > { %4759 = vmatprep.mubr.msk.bf16.mxu0 %vm5420_vm0, %v5419_v0  ;;  %v1719_v4 = vsel %vm858_vm1, %v5904_v40, %v1712_v47 }
 0x247   : > { %4728 = vmatpush3.bf16.msra.mxu1 %v5025_v39  ;;  %4754 = vmatpush3.bf16.msra.mxu0 %v5026_v41  ;;  %v1714_v6 = vpop.permute.xlu0 %1713 }
 0x248   : > { %4729 = vmatprep.subr.bf16.mxu1 %v5419_v0  ;;  %4755 = vmatprep.subr.bf16.mxu0 %v5419_v0  ;;  %v1723_v7 = vsel %vm858_vm1, %v5954_v17, %v1714_v6  ;;  %v1716_v9 = vpop.permute.xlu1 %1715  ;;  %v6225_v17 = vld [vmem:[#allocation8 + $0x18] sm:$0xff]  }
 0x249   : > { %v1727_v40 = vsel %vm858_vm1, %v6014_v61, %v1716_v9  ;;  %v5043_v61 = vld [vmem:[#allocation10] sm:$0xff]  }
 0x24b   : > { %4730 = vmatpush3.bf16.msra.mxu1 %v5027_v8  ;;  %4756 = vmatpush3.bf16.msra.mxu0 %v5028_v44 }
 0x24c   : > { %4757 = vmatprep.subr.bf16.mxu0 %v5419_v0  ;;  %4771 = vmatprep.subr.bf16.mxu1 %v5419_v0 }
 0x24e   : > { %4732 = vmatmul.mubr.bf16.vlgmr.msra.gmra.mxu1 %v1354_v16 }
 0x24f   : > { %4758 = vmatpush3.bf16.msra.mxu0 %v5029_v45  ;;  %4772 = vmatpush3.bf16.msra.mxu1 %v6073_v20  ;;  %v6237_v20 = vld [vmem:[#allocation8] sm:$0xff]  }
 0x250   : > { %4773 = vmatprep.subr.bf16.mxu1 %v5419_v0  ;;  %4799 = vmatprep.subr.bf16.mxu0 %v5419_v0 }
 0x251   : > { %4735 = vmatprep.mubr.msk.bf16.mxu1 %vm5420_vm0, %v5419_v0 }
 0x252   : > { %4760 = vmatmul.mubr.bf16.vlgmr.msra.gmra.mxu0 %v1740_v52 }
 0x253   : > { %4774 = vmatpush3.bf16.msra.mxu1 %v6086_v18  ;;  %4800 = vmatpush3.bf16.msra.mxu0 %v5030_v50 }
 0x254   : > { %4775 = vmatprep.subr.bf16.mxu1 %v5419_v0  ;;  %4801 = vmatprep.subr.bf16.mxu0 %v5419_v0 }
 0x255   : > { %4763 = vmatprep.mubr.msk.bf16.mxu0 %vm5420_vm0, %v5419_v0 }
 0x256   : > { %4736 = vmatmul.mubr.bf16.gmra.mxu1 %v1358_v26 }
 0x257   : > { %4776 = vmatpush3.bf16.msra.mxu1 %v5020_v25  ;;  %4802 = vmatpush3.bf16.msra.mxu0 %v5031_v38  ;;  %v6246_v38 = vld [vmem:[%s7258_s22] ss:$0 sm:$0xff] }
 0x258   : > { %4777 = vmatprep.subr.bf16.mxu1 %v5419_v0  ;;  %4803 = vmatprep.subr.bf16.mxu0 %v5419_v0 }
 0x259   : > { %4739 = vmatprep.mubr.msk.bf16.mxu1 %vm5420_vm0, %v5419_v0 }
 0x25a   : > { %4764 = vmatmul.mubr.bf16.gmra.mxu0 %v1744_v56 }
 0x25b   : > { %4778 = vmatpush3.bf16.msra.mxu1 %v5022_v30  ;;  %4804 = vmatpush3.bf16.msra.mxu0 %v5032_v13 }
 0x25c   : > { %4779 = vmatprep.subr.bf16.mxu1 %v5419_v0  ;;  %4805 = vmatprep.subr.bf16.mxu0 %v5419_v0 }
 0x25d   : > { %4767 = vmatprep.mubr.msk.bf16.mxu0 %vm5420_vm0, %v5419_v0 }
 0x25e   : > { %4740 = vmatmul.mubr.bf16.gmra.mxu1 %v1362_v35 }
 0x25f   : > { %4780 = vmatpush3.bf16.msra.mxu1 %v5024_v42  ;;  %4806 = vmatpush3.bf16.msra.mxu0 %v5033_v58 }
 0x260   : > { %4781 = vmatprep.subr.bf16.mxu1 %v5419_v0  ;;  %4807 = vmatprep.subr.bf16.mxu0 %v5419_v0 }
 0x261   : > { %4787 = vmatprep.mubr.msk.bf16.mxu1 %vm5420_vm0, %v5419_v0 }
 0x262   : > { %4768 = vmatmul.mubr.bf16.gmra.mxu0 %v1748_v60 }
 0x263   : > { %4782 = vmatpush3.bf16.msra.mxu1 %v5026_v41  ;;  %4808 = vmatpush3.bf16.msra.mxu0 %v5034_v54 }
 0x264   : > { %4783 = vmatprep.subr.bf16.mxu1 %v5419_v0  ;;  %4809 = vmatprep.subr.bf16.mxu0 %v5419_v0 }
 0x265   : > { %4815 = vmatprep.mubr.msk.bf16.mxu0 %vm5420_vm0, %v5419_v0 }
 0x267   : > { %4784 = vmatpush3.bf16.msra.mxu1 %v5028_v44  ;;  %4810 = vmatpush3.bf16.msra.mxu0 %v5035_v11 }
 0x268   : > { %4785 = vmatprep.subr.bf16.mxu1 %v5419_v0  ;;  %4811 = vmatprep.subr.bf16.mxu0 %v5419_v0 }
 0x26b   : > { %4786 = vmatpush3.bf16.msra.mxu1 %v5029_v45  ;;  %4812 = vmatpush3.bf16.msra.mxu0 %v5036_v29 }
 0x26c   : > { %4813 = vmatprep.subr.bf16.mxu0 %v5419_v0  ;;  %4827 = vmatprep.subr.bf16.mxu1 %v6225_v17 }
 0x26e   : > { %4788 = vmatmul.mubr.bf16.vlgmr.msra.gmra.mxu1 %v1719_v4 }
 0x26f   : > { %4814 = vmatpush3.bf16.msra.mxu0 %v5037_v3  ;;  %4791 = vmatprep.mubr.msk.bf16.mxu1 %vm5420_vm0, %v5419_v0 }
 0x270   : > { %4859 = vmatprep.subr.bf16.mxu0 %v5038_v5  ;;  %4828 = vmatpush3.bf16.msra.mxu1 %v6225_v17 }
 0x272   : > { %4816 = vmatmul.mubr.bf16.vlgmr.msra.gmra.mxu0 %v1719_v4 }
 0x273   : > { %4819 = vmatprep.mubr.msk.bf16.mxu0 %vm5420_vm0, %v5419_v0  ;;  %4860 = vmatpush3.bf16.msra.mxu0 %v5038_v5 }
 0x274   : > { %4861 = vmatprep.subr.bf16.mxu0 %v5039_v10 }
 0x276   : > { %4792 = vmatmul.mubr.bf16.gmra.mxu1 %v1723_v7 }
 0x277   : > { %4795 = vmatprep.mubr.msk.bf16.mxu1 %vm5420_vm0, %v5419_v0  ;;  %4862 = vmatpush3.bf16.msra.mxu0 %v5039_v10 }
 0x278   : > { %4863 = vmatprep.subr.bf16.mxu0 %v5041_v12 }
 0x27a   : > { %4820 = vmatmul.mubr.bf16.gmra.mxu0 %v1723_v7 }
 0x27b   : > { %4823 = vmatprep.mubr.msk.bf16.mxu0 %vm5420_vm0, %v5419_v0  ;;  %v6229_v0 = vld [vmem:[#allocation8 + $0x10] sm:$0xff]   ;;  %4864 = vmatpush3.bf16.msra.mxu0 %v5041_v12  ;;  %vm2190_vm0 = vcmask 1043456  }
 0x27c   : > { %4829 = vmatprep.subr.bf16.mxu1 %v6229_v0  ;;  %4865 = vmatprep.subr.bf16.mxu0 %v5043_v61 }
 0x27d   : > { %4830 = vmatpush3.bf16.msra.mxu1 %v6229_v0 }
 0x27e   : > { %4796 = vmatmul.mubr.bf16.gmra.mxu1 %v1727_v40  ;;  %4831 = vmatprep.subr.bf16.mxu1 %v6233_v15 }
 0x27f   : > { %4866 = vmatpush3.bf16.msra.mxu0 %v5043_v61 }
 0x280   : > { %2768 = vmatprep.subr.bf16.mxu0 %v5422_v1 }
 0x281   : > { %4832 = vmatpush3.bf16.msra.mxu1 %v6233_v15 }
 0x282   : > { %4824 = vmatmul.mubr.bf16.gmra.mxu0 %v1727_v40  ;;  %4833 = vmatprep.subr.bf16.mxu1 %v6237_v20 }
 0x285   : > { %4834 = vmatpush3.bf16.msra.mxu1 %v6237_v20 }
 0x286   : > { %4843 = vmatprep.subr.bf16.mxu1 %v6225_v17 }
 0x2ee   : > { %v1499_v16 = vpop.f32.mrf.mxu1 }
 0x2f0   : > { %v4677_v14 = vpop.f32.mrf.mxu1 }
 0x2f2   : > { %v1502_v18 = vpop.f32.mrf.mxu1  ;;  %v1556_v57 = vpop.f32.mrf.mxu0 }
 0x2f3   : > { %v1557_v52 = vadd.f32 %v1556_v57, %v1499_v16 }
 0x2f4   : > { %v4678_v19 = vpop.f32.mrf.mxu1  ;;  %v4705_v22 = vpop.f32.mrf.mxu0 }
 0x2f6   : > { %v1507_v25 = vpop.f32.mrf.mxu1  ;;  %v1559_v43 = vpop.f32.mrf.mxu0 }
 0x2f7   : > { %v1560_v58 = vadd.f32 %v1559_v43, %v1502_v18 }
 0x2f8   : > { %v4681_v26 = vpop.f32.mrf.mxu1  ;;  %v4706_v27 = vpop.f32.mrf.mxu0 }
 0x2fa   : > { %v1510_v23 = vpop.f32.mrf.mxu1  ;;  %v1564_v30 = vpop.f32.mrf.mxu0 }
 0x2fb   : > { %v1565_v4 = vadd.f32 %v1564_v30, %v1507_v25 }
 0x2fc   : > { %v4682_v62 = vpop.f32.mrf.mxu1  ;;  %v4709_v24 = vpop.f32.mrf.mxu0 }
 0x2fe   : > { %v1515_v34 = vpop.f32.mrf.mxu1  ;;  %v1567_v42 = vpop.f32.mrf.mxu0 }
 0x2ff   : > { %v1568_v12 = vadd.f32 %v1567_v42, %v1510_v23 }
 0x300   : > { %v4685_v35 = vpop.f32.mrf.mxu1  ;;  %v4710_v39 = vpop.f32.mrf.mxu0 }
 0x302   : > { %v1518_v41 = vpop.f32.mrf.mxu1  ;;  %v1572_v8 = vpop.f32.mrf.mxu0 }
 0x303   : > { %v1573_v42 = vadd.f32 %v1572_v8, %v1515_v34 }
 0x304   : > { %v4686_v44 = vpop.f32.mrf.mxu1  ;;  %v4713_v45 = vpop.f32.mrf.mxu0 }
 0x306   : > { %v1575_v48 = vpop.f32.mrf.mxu0 }
 0x308   : > { %v4714_v50 = vpop.f32.mrf.mxu0 }
 0x30e   : > { %v1661_v53 = vpop.f32.mrf.mxu1 }
 0x30f   : > { %v1684_v13 = vadd.f32 %v1661_v53, %v1557_v52 }
 0x310   : > { %v4733_v56 = vpop.f32.mrf.mxu1 }
 0x311   : > { %v1696_v49 = vadd.f32 %v6246_v38, %v1684_v13 }
 0x312   : > { %v1664_v54 = vpop.f32.mrf.mxu1  ;;  %v6249_v60 = vpop.f32.mrf.mxu0 }
 0x313   : > { %v1702_v11 = vmax.f32 %v1696_v49, 0.0  ;;  %v1685_v29 = vadd.f32 %v1664_v54, %v1560_v58 }
 0x314   : > { %v4734_v47 = vpop.f32.mrf.mxu1  ;;  %v4761_v3 = vpop.f32.mrf.mxu0 }
 0x315   : > { %v6251_v6 = vmul.f32 0.0, %v1702_v11  ;;  %v1697_v7 = vadd.f32 %v6246_v38, %v1685_v29  ;;  %v1576_v11 = vadd.f32 %v1575_v48, %v1518_v41 }
 0x316   : > { %v1669_v9 = vpop.f32.mrf.mxu1  ;;  %v6254_v40 = vpop.f32.mrf.mxu0 }
 0x317   : > { %v1703_v5 = vmax.f32 %v1697_v7, 0.0  ;;  %v1686_v10 = vadd.f32 %v1669_v9, %v1565_v4  ;;  %v2097_v14 = vrot.slane %v6251_v6, 1 }
 0x318   : > { %v4737_v61 = vpop.f32.mrf.mxu1  ;;  %v4762_v16 = vpop.f32.mrf.mxu0 }
 0x319   : > { %v2098_v18 = vrot.slane %v1703_v5, 1  ;;  %v6258_v57 = vpack.c.bf16 %v1703_v5, %v6251_v6  ;;  %v1698_v19 = vadd.f32 %v6246_v38, %v1686_v10 }
 0x31a   : > { %v1672_v22 = vpop.f32.mrf.mxu1  ;;  %v6261_v25 = vpop.f32.mrf.mxu0 }
 0x31b   : > { %v2107_v43 = vsel %vm1275_vm3, %v2097_v14, %v2098_v18  ;;  %v1704_v26 = vmax.f32 %v1698_v19, 0.0  ;;  %v1687_v27 = vadd.f32 %v1672_v22, %v1568_v12  ;;  %v2118_v23 = vunpack.c.l.bf16 %v6258_v57 }
 0x31c   : > { %v4738_v30 = vpop.f32.mrf.mxu1  ;;  %v4765_v62 = vpop.f32.mrf.mxu0  ;;  %v2119_v24 = vunpack.c.h.bf16 %v6258_v57  ;;  %v2109_v34 = vmul.f32 %v5874_v21, %v2107_v43  ;;  %v2191_v9 = vrot.slane %v6258_v57, 4 }
 0x31d   : > { %v2099_v35 = vrot.slane %v1704_v26, 1  ;;  %v1699_v39 = vadd.f32 %v6246_v38, %v1687_v27  ;;  %v2124_v44 = vsub.f32 %v6251_v6, %v2118_v23 }
 0x31e   : > { %v1677_v45 = vpop.f32.mrf.mxu1  ;;  %v6271_v50 = vpop.f32.mrf.mxu0  ;;  %v2125_v52 = vsub.f32 %v1703_v5, %v2119_v24 }
 0x31f   : > { %v2106_v53 = vsel %vm1275_vm3, %v2098_v18, %v2099_v35  ;;  %v1705_v13 = vmax.f32 %v1699_v39, 0.0  ;;  %v1688_v56 = vadd.f32 %v1677_v45, %v1573_v42 }
 0x320   : > { %v4741_v58 = vpop.f32.mrf.mxu1  ;;  %v4766_v49 = vpop.f32.mrf.mxu0  ;;  %v6275_v54 = vpack.c.bf16 %v2125_v52, %v2124_v44  ;;  %v2110_v8 = vmul.f32 %v5888_v31, %v2106_v53 }
 0x321   : > { %v2100_v29 = vrot.slane %v1705_v13, 1  ;;  %v6279_v47 = vpack.c.bf16 %v1705_v13, %v1704_v26  ;;  %v1700_v3 = vadd.f32 %v6246_v38, %v1688_v56 }
 0x322   : > { %2523 = vrot.lane.b32.xlu0 %v6275_v54, %s5421_s24  ;;  %v1680_v4 = vpop.f32.mrf.mxu1  ;;  %v6284_v7 = vpop.f32.mrf.mxu0  ;;  %v6287_v5 = vpack.c.bf16 %v2110_v8, %v2109_v34 }
 0x323   : > { %v2105_v21 = vsel %vm1275_vm3, %v2099_v35, %v2100_v29  ;;  %v1706_v31 = vmax.f32 %v1700_v3, 0.0  ;;  %v1689_v41 = vadd.f32 %v1680_v4, %v1576_v11  ;;  %v2192_v48 = vrot.slane %v6279_v47, 4 }
 0x324   : > { %v4742_v10 = vpop.f32.mrf.mxu1  ;;  %v4769_v12 = vpop.f32.mrf.mxu0  ;;  %v2120_v61 = vunpack.c.l.bf16 %v6279_v47  ;;  %v2121_v16 = vunpack.c.h.bf16 %v6279_v47  ;;  %v2172_v18 = vunpack.c.l.bf16 %v6287_v5  ;;  %v2173_v19 = vunpack.c.h.bf16 %v6287_v5 }
 0x325   : > { %v2101_v22 = vrot.slane %v1706_v31, 1  ;;  %v1701_v43 = vadd.f32 %v6246_v38, %v1689_v41  ;;  %v6298_v27 = vsel %vm2190_vm0, %v2191_v9, %v2192_v48  ;;  %v2111_v53 = vmul.f32 %v5898_v36, %v2105_v21 }
 0x326   : > { %v6300_v23 = vpop.f32.mrf.mxu0  ;;  %4867 = vmatprep.mubr.msk.bf16.mxu0 %vm858_vm1, %v6298_v27  ;;  %v2126_v30 = vsub.f32 %v1704_v26, %v2120_v61  ;;  %v2127_v62 = vsub.f32 %v1705_v13, %v2121_v16  ;;  %v2178_v24 = vsub.f32 %v2109_v34, %v2172_v18  ;;  %v2179_v42 = vsub.f32 %v2110_v8, %v2173_v19 }
 0x327   : > { %v2104_v35 = vsel %vm1275_vm3, %v2100_v29, %v2101_v22  ;;  %v1707_v39 = vmax.f32 %v1701_v43, 0.0  ;;  %v2207_v26 = vrot.slane %v6275_v54, 4  ;;  %v6343_v43 = vld [vmem:[%s7259_s5 + $0x38] sm:$0xff]  }
 0x328   : > { %v4770_v44 = vpop.f32.mrf.mxu0  ;;  %v6306_v45 = vpack.c.bf16 %v2127_v62, %v2126_v30  ;;  %v6308_v52 = vpack.c.bf16 %v2179_v42, %v2178_v24  ;;  %v2112_v56 = vmul.f32 %v5916_v55, %v2104_v35 }
 0x329   : > { %v2072_v58 = vmul.f32 0.0, %v1707_v39  ;;  %v6360_v44 = vld [vmem:[%s7259_s5 + $0x30] sm:$0xff]  }
 0x32a   : > { %2525 = vrot.lane.b32.xlu1 %v6306_v45, %s5421_s24  ;;  %v2208_v13 = vrot.slane %v6306_v45, 4  ;;  %v6316_v49 = vpack.c.bf16 %v2112_v56, %v2111_v53 }
 0x32b   : > { %v2102_v34 = vrot.slane %v2072_v58, 1  ;;  %v6318_v8 = vpack.c.bf16 %v2072_v58, %v1706_v31 }
 0x32c   : > { %v2209_v11 = vsel %vm2190_vm0, %v2207_v26, %v2208_v13  ;;  %v2174_v29 = vunpack.c.l.bf16 %v6316_v49  ;;  %v2175_v36 = vunpack.c.h.bf16 %v6316_v49 }
 0x32d   : > { %v2103_v55 = vsel %vm1275_vm3, %v2101_v22, %v2102_v34  ;;  %v2108_v3 = vsel %vm1275_vm3, %v2102_v34, %v2097_v14  ;;  %v2122_v4 = vunpack.c.l.bf16 %v6318_v8  ;;  %v2123_v9 = vunpack.c.h.bf16 %v6318_v8  ;;  %4835 = vmatprep.mubr.msk.bf16.mxu1 %vm858_vm1, %v2209_v11 }
 0x32e   : > { %v2113_v21 = vmul.f32 %v5964_v51, %v2103_v55  ;;  %v2114_v41 = vmul.f32 %v5969_v2, %v2108_v3  ;;  %v1921_v10 = vpop.f32.mrf.mxu1  ;;  %v2194_v12 = vrot.slane %v6318_v8, 4  ;;  %v2180_v61 = vsub.f32 %v2111_v53, %v2174_v29 }
 0x32f   : > { %v2128_v16 = vsub.f32 %v1706_v31, %v2122_v4  ;;  %v2129_v18 = vsub.f32 %v2072_v58, %v2123_v9  ;;  %v2181_v6 = vsub.f32 %v2112_v56, %v2175_v36  ;;  %v1922_v2 = vadd.f32 %v1921_v10, %v6249_v60 }
 0x330   : > { %v6335_v19 = vpack.c.bf16 %v2114_v41, %v2113_v21  ;;  %v4789_v14 = vpop.f32.mrf.mxu1  ;;  %v6338_v22 = vsel %vm2190_vm0, %v2192_v48, %v2194_v12 }
 0x331   : > { %v6345_v51 = vpack.c.bf16 %v2129_v18, %v2128_v16  ;;  %4868 = vmatmul.mubr.msk.bf16.vlgmr.msra.gmra.mxu0 %vm858_vm1, %v6338_v22  ;;  %v6350_v31 = vpack.c.bf16 %v2181_v6, %v2180_v61 }
 0x332   : > { %v1924_v30 = vpop.f32.mrf.mxu1  ;;  %v2026_v62 = vpop.f32.mrf.mxu0  ;;  %2769 = vmatpush1.bf16.msra.mxu0 %v6343_v43  ;;  %v2176_v48 = vunpack.c.l.bf16 %v6335_v19  ;;  %v2177_v24 = vunpack.c.h.bf16 %v6335_v19 }
 0x333   : > { %v2049_v42 = vadd.f32 %v2026_v62, %v1922_v2  ;;  %v2210_v35 = vrot.slane %v6345_v51, 4  ;;  %2770 = vmatprep.subr.bf16.mxu0 %v5422_v1  ;;  %v1925_v58 = vadd.f32 %v1924_v30, %v6254_v40 }
 0x334   : > { %v4790_v39 = vpop.f32.mrf.mxu1  ;;  %v4817_v60 = vpop.f32.mrf.mxu0  ;;  %v2182_v53 = vsub.f32 %v2113_v21, %v2176_v48  ;;  %v2183_v56 = vsub.f32 %v2114_v41, %v2177_v24 }
 0x335   : > { %v2055_v26 = vadd.f32 %v6246_v38, %v2049_v42  ;;  %v2211_v34 = vsel %vm2190_vm0, %v2208_v13, %v2210_v35  ;;  %v6375_v13 = vld [vmem:[%s7259_s5 + $0x28] sm:$0xff]  }
 0x336   : > { %v1929_v11 = vpop.f32.mrf.mxu1  ;;  %v2029_v29 = vpop.f32.mrf.mxu0  ;;  %4836 = vmatmul.mubr.msk.bf16.vlgmr.msra.gmra.mxu1 %vm858_vm1, %v2211_v34  ;;  %2771 = vmatpush1.bf16.msra.mxu0 %v6360_v44  ;;  %v6367_v36 = vpack.c.bf16 %v2183_v56, %v2182_v53  ;;  %v6405_v53 = vld [vmem:[%s7259_s5 + $0x18] sm:$0xff]  }
 0x337   : > { %v2061_v55 = vmax.f32 %v2055_v26, 0.0  ;;  %v2050_v3 = vadd.f32 %v2029_v29, %v1925_v58  ;;  %4844 = vmatpush3.bf16.msra.mxu1 %v6225_v17  ;;  %2772 = vmatprep.subr.bf16.mxu0 %v5422_v1  ;;  %v1930_v9 = vadd.f32 %v1929_v11, %v6261_v25  ;;  %v6388_v25 = vld [vmem:[%s7259_s5 + $0x20] sm:$0xff]  }
 0x338   : > { %v4793_v4 = vpop.f32.mrf.mxu1  ;;  %v4818_v40 = vpop.f32.mrf.mxu0  ;;  %4845 = vmatprep.subr.bf16.mxu1 %v6229_v0 }
 0x339   : > { %v2056_v21 = vadd.f32 %v6246_v38, %v2050_v3  ;;  %v6379_v41 = vmul.f32 0.0, %v2061_v55 }
 0x33a   : > { %v1932_v10 = vpop.f32.mrf.mxu1  ;;  %v2034_v12 = vpop.f32.mrf.mxu0  ;;  %2773 = vmatpush1.bf16.msra.mxu0 %v6375_v13 }
 0x33b   : > { %v2062_v17 = vmax.f32 %v2056_v21, 0.0  ;;  %v2051_v61 = vadd.f32 %v2034_v12, %v1930_v9  ;;  %4846 = vmatpush3.bf16.msra.mxu1 %v6229_v0  ;;  %2774 = vmatprep.subr.bf16.mxu0 %v5422_v1  ;;  %v1933_v2 = vadd.f32 %v1932_v10, %v6271_v50  ;;  %v2079_v0 = vrot.slane %v6379_v41, 7  ;;  %v6425_v10 = vld [vmem:[%s7259_s5 + $0x10] sm:$0xff]  }
 0x33c   : > { %v4794_v16 = vpop.f32.mrf.mxu1  ;;  %v4821_v18 = vpop.f32.mrf.mxu0  ;;  %4847 = vmatprep.subr.bf16.mxu1 %v6233_v15 }
 0x33d   : > { %v2080_v6 = vrot.slane %v2062_v17, 7  ;;  %v6391_v14 = vpack.c.bf16 %v2062_v17, %v6379_v41  ;;  %v2057_v30 = vadd.f32 %v6246_v38, %v2051_v61 }
 0x33e   : > { %v1937_v62 = vpop.f32.mrf.mxu1  ;;  %v2037_v48 = vpop.f32.mrf.mxu0  ;;  %2775 = vmatpush1.bf16.msra.mxu0 %v6388_v25 }
 0x33f   : > { %v2063_v24 = vmax.f32 %v2057_v30, 0.0  ;;  %v2052_v42 = vadd.f32 %v2037_v48, %v1933_v2  ;;  %v2136_v35 = vunpack.c.l.bf16 %v6391_v14  ;;  %4848 = vmatpush3.bf16.msra.mxu1 %v6233_v15  ;;  %2776 = vmatprep.subr.bf16.mxu0 %v5422_v1  ;;  %v2137_v50 = vunpack.c.h.bf16 %v6391_v14 }
 0x340   : > { %v4797_v39 = vpop.f32.mrf.mxu1  ;;  %v4822_v60 = vpop.f32.mrf.mxu0  ;;  %4849 = vmatprep.subr.bf16.mxu1 %v6237_v20  ;;  %v2089_v56 = vsel %vm1256_vm6, %v2079_v0, %v2080_v6  ;;  %v1938_v15 = vadd.f32 %v1937_v62, %v6284_v7  ;;  %v2199_v18 = vrot.slane %v6391_v14, 4 }
 0x341   : > { %v2081_v58 = vrot.slane %v2063_v24, 7  ;;  %v2058_v26 = vadd.f32 %v6246_v38, %v2052_v42  ;;  %v2142_v34 = vsub.f32 %v6379_v41, %v2136_v35  ;;  %v2143_v55 = vsub.f32 %v2062_v17, %v2137_v50 }
 0x342   : > { %v1940_v11 = vpop.f32.mrf.mxu1  ;;  %v2042_v29 = vpop.f32.mrf.mxu0  ;;  %2777 = vmatpush1.bf16.msra.mxu0 %v6405_v53 }
 0x343   : > { %v2064_v3 = vmax.f32 %v2058_v26, 0.0  ;;  %v2053_v4 = vadd.f32 %v2042_v29, %v1938_v15  ;;  %4850 = vmatpush3.bf16.msra.mxu1 %v6237_v20  ;;  %v2088_v40 = vsel %vm1256_vm6, %v2080_v6, %v2081_v58  ;;  %2778 = vmatprep.subr.bf16.mxu0 %v5422_v1  ;;  %v6419_v21 = vpack.c.bf16 %v2143_v55, %v2142_v34  ;;  %v6448_v15 = vld [vmem:[%s7259_s5 + $0x8] sm:$0xff]  }
 0x344   : > { %v4798_v9 = vpop.f32.mrf.mxu1  ;;  %v4825_v7 = vpop.f32.mrf.mxu0  ;;  %2691 = vmatprep.subr.bf16.mxu1 %v5422_v1  ;;  %v1941_v20 = vadd.f32 %v1940_v11, %v6300_v23 }
 0x345   : > { %v2082_v12 = vrot.slane %v2064_v3, 7  ;;  %v6427_v17 = vpack.c.bf16 %v2064_v3, %v2063_v24  ;;  %v2059_v61 = vadd.f32 %v6246_v38, %v2053_v4  ;;  %2547 = vrot.lane.b32.xlu0 %v6419_v21, %s5421_s24 }
 0x346   : > { %v2045_v16 = vpop.f32.mrf.mxu0  ;;  %2779 = vmatpush1.bf16.msra.mxu0 %v6425_v10 }
 0x347   : > { %v2139_v6 = vunpack.c.h.bf16 %v6427_v17  ;;  %v2065_v2 = vmax.f32 %v2059_v61, 0.0  ;;  %v2054_v30 = vadd.f32 %v2045_v16, %v1941_v20  ;;  %v2200_v62 = vrot.slane %v6427_v17, 4  ;;  %2780 = vmatprep.subr.bf16.mxu0 %v5422_v1 }
 0x348   : > { %v4826_v48 = vpop.f32.mrf.mxu0  ;;  %v2138_v23 = vunpack.c.l.bf16 %v6427_v17  ;;  %v2087_v42 = vsel %vm1256_vm6, %v2081_v58, %v2082_v12  ;;  %v2093_v58 = vmul.f32 %v5891_v32, %v2088_v40  ;;  %v2215_v32 = vrot.slane %v6419_v21, 4 }
 0x349   : > { %v2145_v35 = vsub.f32 %v2064_v3, %v2139_v6  ;;  %v2083_v39 = vrot.slane %v2065_v2, 7  ;;  %v2060_v60 = vadd.f32 %v6246_v38, %v2054_v30  ;;  %v6443_v50 = vsel %vm2190_vm0, %v2199_v18, %v2200_v62  ;;  %2511 = vrot.lane.b32.xlu0 %v6258_v57, %s5421_s24  ;;  %v6498_v30 = vld [vmem:[%s7259_s5 + $0x58] sm:$0xff]  }
 0x34a   : > { %4871 = vmatprep.mubr.msk.bf16.mxu0 %vm858_vm1, %v6443_v50  ;;  %v2144_v26 = vsub.f32 %v2063_v24, %v2138_v23  ;;  %v2094_v34 = vmul.f32 %v5901_v37, %v2087_v42  ;;  %2781 = vmatpush1.bf16.msra.mxu0 %v6448_v15  ;;  %v6467_v24 = vld [vmem:[%s7259_s5] sm:$0xff]  }
 0x34b   : > { %v2066_v38 = vmax.f32 %v2060_v60, 0.0  ;;  %v2086_v11 = vsel %vm1256_vm6, %v2082_v12, %v2083_v39  ;;  %2782 = vmatprep.subr.bf16.mxu0 %v5422_v1  ;;  %v2092_v12 = vmul.f32 %v5885_v28, %v2089_v56 }
 0x34c   : > { %v6459_v29 = vpack.c.bf16 %v2145_v35, %v2144_v26  ;;  %v6461_v55 = vpack.c.bf16 %v2094_v34, %v2093_v58  ;;  %v2095_v18 = vmul.f32 %v5998_v46, %v2086_v11 }
 0x34d   : > { %v2078_v3 = vmul.f32 0.0, %v2066_v38  ;;  %2535 = vrot.lane.b32.xlu0 %v6391_v14, %s5421_s24 }
 0x34e   : > { %2549 = vrot.lane.b32.xlu1 %v6459_v29, %s5421_s24  ;;  %v2216_v37 = vrot.slane %v6459_v29, 4  ;;  %v2156_v4 = vunpack.c.l.bf16 %v6461_v55  ;;  %v2157_v40 = vunpack.c.h.bf16 %v6461_v55  ;;  %2783 = vmatpush1.bf16.msra.mxu0 %v6467_v24 }
 0x34f   : > { %v2084_v9 = vrot.slane %v2078_v3, 7  ;;  %v6477_v7 = vpack.c.bf16 %v2078_v3, %v2065_v2  ;;  %2792 = vmatprep.subr.bf16.mxu0 %v5422_v1 }
 0x350   : > { %v6482_v20 = vsel %vm2190_vm0, %v2215_v32, %v2216_v37  ;;  %v6484_v61 = vsub.f32 %v2093_v58, %v2156_v4  ;;  %v6486_v16 = vsub.f32 %v2094_v34, %v2157_v40  ;;  %v5056_v4 = vld [vmem:[%s7259_s5 + $0x48] sm:$0xff]  }
 0x351   : > { %4839 = vmatprep.mubr.msk.bf16.mxu1 %vm858_vm1, %v6482_v20  ;;  %v2202_v6 = vrot.slane %v6477_v7, 4  ;;  %v2140_v28 = vunpack.c.l.bf16 %v6477_v7  ;;  %v2141_v56 = vunpack.c.h.bf16 %v6477_v7  ;;  %v2090_v48 = vsel %vm1256_vm6, %v2084_v9, %v2079_v0  ;;  %2991 = vrot.lane.b32.xlu0 %v6345_v51, %s5421_s24 }
 0x352   : > { %2513 = vrot.lane.b32.xlu1 %v6279_v47, %s5421_s24  ;;  %v2091_v46 = vmul.f32 %v5982_v33, %v2090_v48  ;;  %v2167_v23 = vpack.c.bf16 %v6486_v16, %v6484_v61  ;;  %v2085_v42 = vsel %vm1256_vm6, %v2083_v39, %v2084_v9  ;;  %2793 = vmatpush2.bf16.msra.mxu0 %v6498_v30  ;;  %v5065_v61 = vld [vmem:[#allocation11] sm:$0xff]   ;;  %v5066_v16 = vld [vmem:[#allocation11 + $0x58] sm:$0xff]  }
 0x353   : > { %v6514_v35 = vsel %vm2190_vm0, %v2200_v62, %v2202_v6  ;;  %v2146_v41 = vsub.f32 %v2065_v2, %v2140_v28  ;;  %v2147_v60 = vsub.f32 %v2078_v3, %v2141_v56  ;;  %v2096_v0 = vmul.f32 %v6012_v59, %v2085_v42  ;;  %2794 = vmatprep.subr.bf16.mxu0 %v5422_v1  ;;  %v5055_v2 = vld [vmem:[%s7259_s5 + $0x50] sm:$0xff]  }
 0x354   : > { %4872 = vmatmul.mubr.msk.bf16.gmra.mxu0 %vm858_vm1, %v6514_v35  ;;  %v6520_v26 = vpack.c.bf16 %v2092_v12, %v2091_v46  ;;  %v5067_v6 = vld [vmem:[#allocation11 + $0x50] sm:$0xff]  }
 0x355   : > { %4336 = vmatprep.mubr.msk.bf16.mxu0 %vm858_vm1, %v6391_v14  ;;  %v6525_v33 = vpack.c.bf16 %v2147_v60, %v2146_v41  ;;  %v6530_v62 = vpack.c.bf16 %v2096_v0, %v2095_v18  ;;  %v5071_v41 = vld [vmem:[#allocation11 + $0x40] sm:$0xff]  }
 0x356   : > { %2537 = vrot.lane.b32.xlu1 %v6427_v17, %s5421_s24  ;;  %v2154_v59 = vunpack.c.l.bf16 %v6520_v26  ;;  %v2155_v39 = vunpack.c.h.bf16 %v6520_v26  ;;  %2795 = vmatpush2.bf16.msra.mxu0 %v5055_v2 }
 0x357   : > { %3001 = vrot.lane.b32.xlu0 %v6525_v33, %s5421_s24  ;;  %v2218_v58 = vrot.slane %v6525_v33, 4  ;;  %v2158_v34 = vunpack.c.l.bf16 %v6530_v62  ;;  %v2159_v38 = vunpack.c.h.bf16 %v6530_v62  ;;  %2796 = vmatprep.subr.bf16.mxu0 %v5422_v1 }
 0x358   : > { %v2160_v11 = vsub.f32 %v2091_v46, %v2154_v59  ;;  %v2161_v3 = vsub.f32 %v2092_v12, %v2155_v39  ;;  %v5069_v46 = vld [vmem:[#allocation11 + $0x48] sm:$0xff]   ;;  %v5075_v39 = vld [vmem:[%s7259_s5 + $0x70] sm:$0xff]  }
 0x359   : > { %v6543_v32 = vsel %vm2190_vm0, %v2216_v37, %v2218_v58  ;;  %v6548_v40 = vsub.f32 %v2095_v18, %v2158_v34  ;;  %v6550_v9 = vsub.f32 %v2096_v0, %v2159_v38  ;;  %v5057_v18 = vld [vmem:[%s7259_s5 + $0x40] sm:$0xff]   ;;  %v5072_v0 = vld [vmem:[%s7259_s5 + $0x88] sm:$0xff]  }
 0x35a   : > { %2986 = vrot.lane.b32.xlu1 %v6318_v8, %s5421_s24  ;;  %4840 = vmatmul.mubr.msk.bf16.gmra.mxu1 %vm858_vm1, %v6543_v32  ;;  %v2166_v12 = vpack.c.bf16 %v2161_v3, %v2160_v11  ;;  %v5077_v38 = vld [vmem:[%s7259_s5 + $0x60] sm:$0xff]   ;;  %v5080_v11 = vld [vmem:[%s7259_s5 + $0xa8] sm:$0xff]  }
 0x35b   : > { %4851 = vmatprep.mubr.msk.bf16.mxu1 %vm858_vm1, %v6298_v27  ;;  %2797 = vmatpush2.bf16.msra.mxu0 %v5056_v4  ;;  %v2168_v37 = vpack.c.bf16 %v6550_v9, %v6548_v40  ;;  %v5058_v27 = vld [vmem:[#allocation11 + $0x38] sm:$0xff]   ;;  %v5081_v3 = vld [vmem:[%s7259_s5 + $0xa0] sm:$0xff]   ;;  %v3053_v40 = vrot.slane %v6308_v52, 4  ;;  %v5084_v9 = vld [vmem:[#allocation11 + $0x88] sm:$0xff]  }
 0x35c   : > { %2798 = vmatprep.subr.bf16.mxu0 %v5422_v1 }
 0x35e   : > { %2996 = vrot.lane.b32.xlu1 %v6477_v7, %s5421_s24  ;;  %s7262_s24 = sld [smem:[#allocation40_spill]] }
 0x35f   : > { %2799 = vmatpush2.bf16.msra.mxu0 %v5057_v18 }
 0x360   : > { %3190 = vmatprep.subr.bf16.mxu0 %v5422_v1 }
 0x362   : > { %4852 = vmatmul.mubr.msk.bf16.vlgmr.msra.gmra.mxu1 %vm858_vm1, %v6338_v22 }
 0x363   : > { %4855 = vmatprep.mubr.msk.bf16.mxu1 %vm858_vm1, %v6443_v50  ;;  %2692 = vmatpush1.bf16.msra.mxu1 %v6343_v43 }
 0x364   : > { %2693 = vmatprep.subr.bf16.mxu1 %v5422_v1  ;;  %s7263_s4 = smov %s7262_s24  ;;  %s7108_s22 = scalar_lea.hbm %s7262_s24, %s4486_s0 }
 0x367   : > { %2694 = vmatpush1.bf16.msra.mxu1 %v6360_v44  ;;  %v5059_v44 = vld [vmem:[#allocation11 + $0x30] sm:$0xff]  }
 0x368   : > { %2695 = vmatprep.subr.bf16.mxu1 %v5422_v1 }
 0x36a   : > { %4856 = vmatmul.mubr.msk.bf16.gmra.mxu1 %vm858_vm1, %v6514_v35 }
 0x36b   : > { %4332 = vmatprep.mubr.msk.bf16.mxu1 %vm858_vm1, %v6419_v21  ;;  %2696 = vmatpush1.bf16.msra.mxu1 %v6375_v13  ;;  %v5060_v13 = vld [vmem:[#allocation11 + $0x28] sm:$0xff]   ;;  %v5061_v21 = vld [vmem:[#allocation11 + $0x20] sm:$0xff]  }
 0x36c   : > { %2697 = vmatprep.subr.bf16.mxu1 %v5422_v1 }
 0x36f   : > { %2698 = vmatpush1.bf16.msra.mxu1 %v6388_v25 }
 0x370   : > { %2699 = vmatprep.subr.bf16.mxu1 %v5422_v1 }
 0x373   : > { %2700 = vmatpush1.bf16.msra.mxu1 %v6405_v53 }
 0x374   : > { %2701 = vmatprep.subr.bf16.mxu1 %v5422_v1 }
 0x377   : > { %2702 = vmatpush1.bf16.msra.mxu1 %v6425_v10  ;;  %v5062_v10 = vld [vmem:[#allocation11 + $0x18] sm:$0xff]  }
 0x378   : > { %2703 = vmatprep.subr.bf16.mxu1 %v5422_v1 }
 0x37b   : > { %2704 = vmatpush1.bf16.msra.mxu1 %v6448_v15  ;;  %v5063_v15 = vld [vmem:[#allocation11 + $0x10] sm:$0xff]  }
 0x37c   : > { %2705 = vmatprep.subr.bf16.mxu1 %v5422_v1 }
 0x37f   : > { %2706 = vmatpush1.bf16.msra.mxu1 %v6467_v24  ;;  %v5064_v24 = vld [vmem:[#allocation11 + $0x8] sm:$0xff]  }
 0x380   : > { %2715 = vmatprep.subr.bf16.mxu1 %v5422_v1 }
 0x383   : > { %2716 = vmatpush2.bf16.msra.mxu1 %v6498_v30  ;;  %v5068_v30 = vld [vmem:[%s7259_s5 + $0x98] sm:$0xff]  }
 0x384   : > { %2717 = vmatprep.subr.bf16.mxu1 %v5422_v1 }
 0x387   : > { %2718 = vmatpush2.bf16.msra.mxu1 %v5055_v2 }
 0x388   : > { %2719 = vmatprep.subr.bf16.mxu1 %v5422_v1 }
 0x38b   : > { %2720 = vmatpush2.bf16.msra.mxu1 %v5056_v4 }
 0x38c   : > { %2721 = vmatprep.subr.bf16.mxu1 %v5422_v1 }
 0x38f   : > { %2722 = vmatpush2.bf16.msra.mxu1 %v5057_v18 }
 0x390   : > { %2905 = vmatprep.subr.bf16.mxu1 %v5422_v1 }
 0x394   : > { %v2524_v22 = vpop.permute.xlu0 %2523 }
 0x395   : > { %v6597_v43 = vsel %vm858_vm1, %v2166_v12, %v2524_v22 }
 0x396   : > { %2724 = vmatmul.mubr.bf16.vlgmr.msra.gmra.mxu1 %v6597_v43  ;;  %v3037_v12 = vrot.slane %v6597_v43, 4  ;;  %v5083_v43 = vld [vmem:[#allocation11 + $0x90] sm:$0xff]  }
 0x397   : > { %4333 = vmatprep.mubr.msk.bf16.mxu1 %vm858_vm1, %v6459_v29  ;;  %2906 = vmatpush1.bf16.msra.mxu1 %v5058_v27  ;;  %v5082_v27 = vld [vmem:[#allocation11 + $0x98] sm:$0xff]  }
 0x398   : > { %2907 = vmatprep.subr.bf16.mxu1 %v5422_v1 }
 0x39b   : > { %2908 = vmatpush1.bf16.msra.mxu1 %v5059_v44 }
 0x39c   : > { %v2526_v25 = vpop.permute.xlu1 %2525  ;;  %2909 = vmatprep.subr.bf16.mxu1 %v5422_v1 }
 0x39d   : > { %v6608_v53 = vsel %vm858_vm1, %v2167_v23, %v2526_v25  ;;  %v3054_v25 = vrot.slane %v6350_v31, 4 }
 0x39e   : > { %2732 = vmatmul.mubr.bf16.gmra.mxu1 %v6608_v53  ;;  %v3038_v4 = vrot.slane %v6608_v53, 4 }
 0x39f   : > { %4334 = vmatprep.mubr.msk.bf16.mxu1 %vm858_vm1, %v6308_v52  ;;  %2910 = vmatpush1.bf16.msra.mxu1 %v5060_v13  ;;  %v6760_v52 = vld [vmem:[%s7259_s5 + $0xf8] sm:$0xff]  }
 0x3a0   : > { %2911 = vmatprep.subr.bf16.mxu1 %v5422_v1  ;;  %v3039_v22 = vsel %vm2190_vm0, %v3037_v12, %v3038_v4  ;;  %v6852_v12 = vld [vmem:[%s7259_s5 + $0xd0] sm:$0xff]  }
 0x3a3   : > { %2912 = vmatpush1.bf16.msra.mxu1 %v5061_v21  ;;  %v3055_v21 = vsel %vm2190_vm0, %v3053_v40, %v3054_v25  ;;  %v6875_v40 = vld [vmem:[%s7259_s5 + $0xc0] sm:$0xff]  }
 0x3a4   : > { %2913 = vmatprep.subr.bf16.mxu1 %v5422_v1 }
 0x3a7   : > { %2914 = vmatpush1.bf16.msra.mxu1 %v5062_v10 }
 0x3a8   : > { %2915 = vmatprep.subr.bf16.mxu1 %v5422_v1 }
 0x3ab   : > { %2916 = vmatpush1.bf16.msra.mxu1 %v5063_v15 }
 0x3ac   : > { %2917 = vmatprep.subr.bf16.mxu1 %v5422_v1 }
 0x3af   : > { %2918 = vmatpush1.bf16.msra.mxu1 %v5064_v24  ;;  %v5085_v24 = vld [vmem:[#allocation11 + $0x80] sm:$0xff]  }
 0x3b0   : > { %2919 = vmatprep.subr.bf16.mxu1 %v5422_v1 }
 0x3b3   : > { %2920 = vmatpush1.bf16.msra.mxu1 %v5065_v61 }
 0x3b4   : > { %2929 = vmatprep.subr.bf16.mxu1 %v5422_v1 }
 0x3b7   : > { %2930 = vmatpush2.bf16.msra.mxu1 %v5066_v16  ;;  %v2548_v28 = vpop.permute.xlu0 %2547 }
 0x3b8   : > { %2931 = vmatprep.subr.bf16.mxu1 %v5422_v1  ;;  %v6622_v56 = vsel %vm858_vm1, %v6275_v54, %v2548_v28  ;;  %v5070_v54 = vld [vmem:[%s7259_s5 + $0x90] sm:$0xff]   ;;  %v3058_v28 = vrot.slane %v6367_v36, 4 }
 0x3b9   : > { %2740 = vmatmul.mubr.bf16.gmra.mxu1 %v6622_v56 }
 0x3ba   : > { %4335 = vmatprep.mubr.msk.bf16.mxu1 %vm858_vm1, %v6350_v31 }
 0x3bb   : > { %2932 = vmatpush2.bf16.msra.mxu1 %v5067_v6  ;;  %v2512_v48 = vpop.permute.xlu0 %2511 }
 0x3bc   : > { %2933 = vmatprep.subr.bf16.mxu1 %v5422_v1  ;;  %v6633_v23 = vsel %vm858_vm1, %v6520_v26, %v2512_v48 }
 0x3bd   : > { %2801 = vmatmul.mubr.bf16.vlgmr.msra.gmra.mxu0 %v6633_v23  ;;  %v3009_v10 = vrot.slane %v6633_v23, 4 }
 0x3be   : > { %3191 = vmatpush1.bf16.msra.mxu0 %v5068_v30  ;;  %4337 = vmatprep.mubr.msk.bf16.mxu0 %vm858_vm1, %v6427_v17 }
 0x3bf   : > { %3192 = vmatprep.subr.bf16.mxu0 %v5422_v1  ;;  %2934 = vmatpush2.bf16.msra.mxu1 %v5069_v46  ;;  %v2536_v2 = vpop.permute.xlu0 %2535  ;;  %v6781_v46 = vld [vmem:[%s7259_s5 + $0xf0] sm:$0xff]  }
 0x3c0   : > { %v2550_v42 = vpop.permute.xlu1 %2549  ;;  %2935 = vmatprep.subr.bf16.mxu1 %v5422_v1  ;;  %v6676_v59 = vsel %vm858_vm1, %v6258_v57, %v2536_v2  ;;  %v5076_v57 = vld [vmem:[%s7259_s5 + $0x68] sm:$0xff]  }
 0x3c1   : > { %v6644_v60 = vsel %vm858_vm1, %v6306_v45, %v2550_v42  ;;  %v3059_v42 = vsel %vm2190_vm0, %v3054_v25, %v3058_v28 }
 0x3c2   : > { %2748 = vmatmul.mubr.bf16.gmra.mxu1 %v6644_v60  ;;  %3193 = vmatpush1.bf16.msra.mxu0 %v5070_v54  ;;  %v3051_v61 = vrot.slane %v6644_v60, 4 }
 0x3c3   : > { %4352 = vmatprep.mubr.msk.bf16.mxu1 %vm858_vm1, %v6391_v14  ;;  %3194 = vmatprep.subr.bf16.mxu0 %v5422_v1  ;;  %v5073_v14 = vld [vmem:[%s7259_s5 + $0x80] sm:$0xff]   ;;  %v2992_v18 = vpop.permute.xlu0 %2991 }
 0x3c4   : > { %v2514_v26 = vpop.permute.xlu1 %2513  ;;  %2936 = vmatpush2.bf16.msra.mxu1 %v5071_v41  ;;  %v6741_v44 = vsel %vm858_vm1, %v2168_v37, %v2992_v18  ;;  %v3026_v41 = vrot.slane %v6316_v49, 4 }
 0x3c5   : > { %v6656_v45 = vsel %vm858_vm1, %v6461_v55, %v2514_v26  ;;  %3261 = vmatprep.subr.bf16.mxu1 %v5422_v1  ;;  %v5074_v55 = vld [vmem:[%s7259_s5 + $0x78] sm:$0xff]   ;;  %v3040_v13 = vrot.slane %v6741_v44, 4  ;;  %v5089_v26 = vld [vmem:[#allocation11 + $0x70] sm:$0xff]  }
 0x3c6   : > { %2809 = vmatmul.mubr.bf16.gmra.mxu0 %v6656_v45 }
 0x3c7   : > { %3195 = vmatpush1.bf16.msra.mxu0 %v5072_v0  ;;  %4338 = vmatprep.mubr.msk.bf16.mxu0 %vm858_vm1, %v6287_v5  ;;  %v3041_v37 = vsel %vm2190_vm0, %v3038_v4, %v3040_v13  ;;  %v5097_v13 = vld [vmem:[#allocation11 + $0xb0] sm:$0xff]  }
 0x3c8   : > { %3196 = vmatprep.subr.bf16.mxu0 %v5422_v1  ;;  %v2538_v58 = vpop.permute.xlu1 %2537 }
 0x3c9   : > { %v6695_v34 = vsel %vm858_vm1, %v6279_v47, %v2538_v58  ;;  %v5078_v47 = vld [vmem:[%s7259_s5 + $0xb8] sm:$0xff]   ;;  %v3002_v48 = vpop.permute.xlu0 %3001 }
 0x3ca   : > { %2938 = vmatmul.mubr.bf16.vlgmr.msra.gmra.mxu1 %v6633_v23 }
 0x3cb   : > { %3197 = vmatpush1.bf16.msra.mxu0 %v5073_v14  ;;  %3262 = vmatpush1.bf16.msra.mxu1 %v5068_v30  ;;  %v3050_v30 = vrot.slane %v6622_v56, 4  ;;  %v6789_v56 = vsel %vm858_vm1, %v6345_v51, %v3002_v48  ;;  %v3025_v51 = vrot.slane %v6287_v5, 4  ;;  %v6906_v48 = vld [vmem:[%s7259_s5 + $0x108] sm:$0xff]  }
 0x3cc   : > { %4353 = vmatprep.mubr.msk.bf16.mxu1 %vm858_vm1, %v6427_v17  ;;  %3198 = vmatprep.subr.bf16.mxu0 %v5422_v1  ;;  %v2987_v15 = vpop.permute.xlu1 %2986 }
 0x3cd   : > { %3263 = vmatprep.subr.bf16.mxu1 %v5422_v1  ;;  %v6770_v6 = vsel %vm858_vm1, %v6530_v62, %v2987_v15  ;;  %v5087_v62 = vld [vmem:[#allocation11 + $0x78] sm:$0xff]  }
 0x3ce   : > { %2817 = vmatmul.mubr.bf16.gmra.mxu0 %v6676_v59  ;;  %v3012_v23 = vrot.slane %v6770_v6, 4 }
 0x3cf   : > { %3199 = vmatpush1.bf16.msra.mxu0 %v5074_v55  ;;  %3264 = vmatpush1.bf16.msra.mxu1 %v5070_v54  ;;  %v3052_v54 = vsel %vm2190_vm0, %v3050_v30, %v3051_v61 }
 0x3d0   : > { %4339 = vmatprep.mubr.msk.bf16.mxu0 %vm858_vm1, %v6316_v49  ;;  %3200 = vmatprep.subr.bf16.mxu0 %v5422_v1 }
 0x3d1   : > { %3265 = vmatprep.subr.bf16.mxu1 %v5422_v1 }
 0x3d2   : > { %2946 = vmatmul.mubr.bf16.gmra.mxu1 %v6656_v45 }
 0x3d3   : > { %3201 = vmatpush1.bf16.msra.mxu0 %v5075_v39  ;;  %3266 = vmatpush1.bf16.msra.mxu1 %v5072_v0  ;;  %v6798_v0 = vld [vmem:[%s7259_s5 + $0xe8] sm:$0xff]  }
 0x3d4   : > { %4354 = vmatprep.mubr.msk.bf16.mxu1 %vm858_vm1, %v6287_v5  ;;  %3202 = vmatprep.subr.bf16.mxu0 %v5422_v1  ;;  %v6817_v5 = vld [vmem:[%s7259_s5 + $0xe0] sm:$0xff]  }
 0x3d5   : > { %3267 = vmatprep.subr.bf16.mxu1 %v5422_v1 }
 0x3d6   : > { %2825 = vmatmul.mubr.bf16.gmra.mxu0 %v6695_v34 }
 0x3d7   : > { %3203 = vmatpush1.bf16.msra.mxu0 %v5076_v57  ;;  %3268 = vmatpush1.bf16.msra.mxu1 %v5073_v14  ;;  %v3056_v14 = vrot.slane %v6789_v56, 4 }
 0x3d8   : > { %4392 = vmatprep.mubr.msk.bf16.mxu0 %vm858_vm1, %v6482_v20  ;;  %3204 = vmatprep.subr.bf16.mxu0 %v5422_v1  ;;  %v5079_v20 = vld [vmem:[%s7259_s5 + $0xb0] sm:$0xff]  }
 0x3d9   : > { %3269 = vmatprep.subr.bf16.mxu1 %v5422_v1  ;;  %v3057_v58 = vsel %vm2190_vm0, %v3051_v61, %v3056_v14 }
 0x3da   : > { %2954 = vmatmul.mubr.bf16.gmra.mxu1 %v6676_v59 }
 0x3db   : > { %3205 = vmatpush1.bf16.msra.mxu0 %v5077_v38  ;;  %3270 = vmatpush1.bf16.msra.mxu1 %v5074_v55  ;;  %v6809_v55 = vsel %vm2190_vm0, %v3025_v51, %v3026_v41 }
 0x3dc   : > { %4355 = vmatprep.mubr.msk.bf16.mxu1 %vm858_vm1, %v6316_v49  ;;  %3214 = vmatprep.subr.bf16.mxu0 %v5422_v1 }
 0x3dd   : > { %3271 = vmatprep.subr.bf16.mxu1 %v5422_v1 }
 0x3df   : > { %3215 = vmatpush2.bf16.msra.mxu0 %v5078_v47  ;;  %3272 = vmatpush1.bf16.msra.mxu1 %v5075_v39  ;;  %v5091_v39 = vld [vmem:[#allocation11 + $0x68] sm:$0xff]  }
 0x3e0   : > { %3216 = vmatprep.subr.bf16.mxu0 %v5422_v1  ;;  %3273 = vmatprep.subr.bf16.mxu1 %v5422_v1 }
 0x3e2   : > { %2962 = vmatmul.mubr.bf16.gmra.mxu1 %v6695_v34 }
 0x3e3   : > { %3217 = vmatpush2.bf16.msra.mxu0 %v5079_v20  ;;  %3274 = vmatpush1.bf16.msra.mxu1 %v5076_v57  ;;  %v3023_v57 = vrot.slane %v6695_v34, 4 }
 0x3e4   : > { %4396 = vmatprep.mubr.msk.bf16.mxu1 %vm858_vm1, %v6443_v50  ;;  %3218 = vmatprep.subr.bf16.mxu0 %v5422_v1 }
 0x3e5   : > { %3275 = vmatprep.subr.bf16.mxu1 %v5422_v1 }
 0x3e7   : > { %3219 = vmatpush2.bf16.msra.mxu0 %v5080_v11  ;;  %3276 = vmatpush1.bf16.msra.mxu1 %v5077_v38  ;;  %v3030_v38 = vrot.slane %v6335_v19, 4 }
 0x3e8   : > { %3220 = vmatprep.subr.bf16.mxu0 %v5422_v1  ;;  %3285 = vmatprep.subr.bf16.mxu1 %v5422_v1 }
 0x3eb   : > { %3221 = vmatpush2.bf16.msra.mxu0 %v5081_v3  ;;  %3286 = vmatpush2.bf16.msra.mxu1 %v5078_v47  ;;  %v3022_v47 = vrot.slane %v6676_v59, 4 }
 0x3ec   : > { %3287 = vmatprep.subr.bf16.mxu1 %v5422_v1  ;;  %3398 = vmatprep.subr.bf16.mxu0 %v5422_v1 }
 0x3ed   : > { %v6835_v4 = vsel %vm2190_vm0, %v3022_v47, %v3023_v57 }
 0x3ee   : > { %3223 = vmatmul.mubr.bf16.vlgmr.msra.gmra.mxu0 %v3039_v22  ;;  %v6861_v22 = vld [vmem:[%s7259_s5 + $0xc8] sm:$0xff]  }
 0x3ef   : > { %4393 = vmatprep.mubr.msk.bf16.mxu0 %vm858_vm1, %v6543_v32  ;;  %3288 = vmatpush2.bf16.msra.mxu1 %v5079_v20  ;;  %v3010_v32 = vrot.slane %v6656_v45, 4  ;;  %v2997_v20 = vpop.permute.xlu1 %2996 }
 0x3f0   : > { %3399 = vmatpush1.bf16.msra.mxu0 %v5082_v27  ;;  %3289 = vmatprep.subr.bf16.mxu1 %v5422_v1  ;;  %v6840_v59 = vsel %vm858_vm1, %v6318_v8, %v2997_v20  ;;  %v5095_v8 = vld [vmem:[#allocation11 + $0xb8] sm:$0xff]  }
 0x3f1   : > { %3400 = vmatprep.subr.bf16.mxu0 %v5422_v1  ;;  %v6765_v16 = vsel %vm2190_vm0, %v3009_v10, %v3010_v32  ;;  %v6804_v2 = vsel %vm2190_vm0, %v3010_v32, %v3012_v23  ;;  %v3028_v27 = vrot.slane %v6840_v59, 4  ;;  %v5099_v32 = vld [vmem:[#allocation11 + $0xa8] sm:$0xff]   ;;  %v5101_v10 = vld [vmem:[#allocation11 + $0xa0] sm:$0xff]  }
 0x3f3   : > { %3290 = vmatpush2.bf16.msra.mxu1 %v5080_v11  ;;  %v6831_v11 = vld [vmem:[%s7259_s5 + $0xd8] sm:$0xff]   ;;  %v6865_v25 = vsel %vm2190_vm0, %v3023_v57, %v3028_v27 }
 0x3f4   : > { %3401 = vmatpush1.bf16.msra.mxu0 %v5083_v43  ;;  %3291 = vmatprep.subr.bf16.mxu1 %v5422_v1 }
 0x3f5   : > { %3402 = vmatprep.subr.bf16.mxu0 %v5422_v1 }
 0x3f6   : > { %3231 = vmatmul.mubr.bf16.gmra.mxu0 %v3041_v37  ;;  %v4837_v18 = vpop.f32.mrf.mxu1  ;;  %v6883_v37 = vld [vmem:[%s7259_s5 + $0x118] sm:$0xff]  }
 0x3f7   : > { %4394 = vmatprep.mubr.msk.bf16.mxu0 %vm858_vm1, %v3055_v21  ;;  %3292 = vmatpush2.bf16.msra.mxu1 %v5081_v3  ;;  %v5093_v3 = vld [vmem:[#allocation11 + $0x60] sm:$0xff]  }
 0x3f8   : > { %3403 = vmatpush1.bf16.msra.mxu0 %v5084_v9  ;;  %3611 = vmatprep.subr.bf16.mxu1 %v5422_v1  ;;  %v2306_v43 = vpop.f32.mrf.mxu1 }
 0x3f9   : > { %3404 = vmatprep.subr.bf16.mxu0 %v5422_v1 }
 0x3fa   : > { %3294 = vmatmul.mubr.bf16.vlgmr.msra.gmra.mxu1 %v6765_v16  ;;  %v4838_v9 = vpop.f32.mrf.mxu1 }
 0x3fb   : > { %4397 = vmatprep.mubr.msk.bf16.mxu1 %vm858_vm1, %v6514_v35  ;;  %3612 = vmatpush1.bf16.msra.mxu1 %v6760_v52 }
 0x3fc   : > { %3405 = vmatpush1.bf16.msra.mxu0 %v5085_v24  ;;  %3613 = vmatprep.subr.bf16.mxu1 %v5422_v1  ;;  %v2309_v21 = vpop.f32.mrf.mxu1  ;;  %v6893_v24 = vld [vmem:[%s7259_s5 + $0x110] sm:$0xff]  }
 0x3fd   : > { %3406 = vmatprep.subr.bf16.mxu0 %v5422_v1 }
 0x3fe   : > { %3239 = vmatmul.mubr.bf16.gmra.mxu0 %v3052_v54 }
 0x3ff   : > { %4395 = vmatprep.mubr.msk.bf16.mxu0 %vm858_vm1, %v3059_v42  ;;  %3614 = vmatpush1.bf16.msra.mxu1 %v6781_v46 }
 0x400   : > { %3407 = vmatpush1.bf16.msra.mxu0 %v5087_v62  ;;  %3615 = vmatprep.subr.bf16.mxu1 %v5422_v1  ;;  %v3904_v62 = vsub.s32 0, %v5856_v63 }
 0x401   : > { %3408 = vmatprep.subr.bf16.mxu0 %v5422_v1 }
 0x402   : > { %3302 = vmatmul.mubr.bf16.gmra.mxu1 %v6804_v2 }
 0x403   : > { %4398 = vmatprep.mubr.msk.bf16.mxu1 %vm858_vm1, %v6809_v55  ;;  %3616 = vmatpush1.bf16.msra.mxu1 %v6798_v0 }
 0x404   : > { %3409 = vmatpush1.bf16.msra.mxu0 %v5089_v26  ;;  %3617 = vmatprep.subr.bf16.mxu1 %v5422_v1 }
 0x405   : > { %3410 = vmatprep.subr.bf16.mxu0 %v5422_v1 }
 0x406   : > { %3247 = vmatmul.mubr.bf16.gmra.mxu0 %v3057_v58 }
 0x407   : > { %4412 = vmatprep.mubr.msk.bf16.mxu0 %vm858_vm1, %v6443_v50  ;;  %3618 = vmatpush1.bf16.msra.mxu1 %v6817_v5  ;;  %v6844_v50 = vsel %vm2190_vm0, %v3026_v41, %v3030_v38 }
 0x408   : > { %3411 = vmatpush1.bf16.msra.mxu0 %v5091_v39  ;;  %3619 = vmatprep.subr.bf16.mxu1 %v5422_v1 }
 0x409   : > { %3412 = vmatprep.subr.bf16.mxu0 %v5422_v1 }
 0x40a   : > { %3310 = vmatmul.mubr.bf16.gmra.mxu1 %v6835_v4 }
 0x40b   : > { %4399 = vmatprep.mubr.msk.bf16.mxu1 %vm858_vm1, %v6844_v50  ;;  %3620 = vmatpush1.bf16.msra.mxu1 %v6831_v11 }
 0x40c   : > { %3413 = vmatpush1.bf16.msra.mxu0 %v5093_v3  ;;  %3621 = vmatprep.subr.bf16.mxu1 %v5422_v1  ;;  %v5106_v3 = vld [vmem:[#allocation11 + $0xf8] sm:$0xff]  }
 0x40d   : > { %3422 = vmatprep.subr.bf16.mxu0 %v5422_v1 }
 0x40f   : > { %3622 = vmatpush1.bf16.msra.mxu1 %v6852_v12 }
 0x410   : > { %3423 = vmatpush2.bf16.msra.mxu0 %v5095_v8  ;;  %3623 = vmatprep.subr.bf16.mxu1 %v5422_v1  ;;  %v3912_v8 = vsub.s32 2, %v5856_v63 }
 0x411   : > { %3424 = vmatprep.subr.bf16.mxu0 %v5422_v1 }
 0x412   : > { %3318 = vmatmul.mubr.bf16.gmra.mxu1 %v6865_v25 }
 0x413   : > { %3624 = vmatpush1.bf16.msra.mxu1 %v6861_v22  ;;  %4452 = vmatprep.mubr.msk.bf16.mxu1 %vm858_vm1, %v6459_v29  ;;  %v4869_v29 = vpop.f32.mrf.mxu0 }
 0x414   : > { %3425 = vmatpush2.bf16.msra.mxu0 %v5097_v13  ;;  %3625 = vmatprep.subr.bf16.mxu1 %v5422_v1 }
 0x415   : > { %3426 = vmatprep.subr.bf16.mxu0 %v5422_v1  ;;  %v2472_v61 = vpop.f32.mrf.mxu0 }
 0x417   : > { %3626 = vmatpush1.bf16.msra.mxu1 %v6875_v40  ;;  %v4870_v23 = vpop.f32.mrf.mxu0 }
 0x418   : > { %3427 = vmatpush2.bf16.msra.mxu0 %v5099_v32  ;;  %3635 = vmatprep.subr.bf16.mxu1 %v5422_v1 }
 0x419   : > { %3428 = vmatprep.subr.bf16.mxu0 %v5422_v1 }
 0x41a   : > { %v6887_v15 = vpop.f32.mrf.mxu1 }
 0x41b   : > { %3636 = vmatpush2.bf16.msra.mxu1 %v6883_v37 }
 0x41c   : > { %3429 = vmatpush2.bf16.msra.mxu0 %v5101_v10  ;;  %v6895_v28 = vpop.f32.mrf.mxu1  ;;  %3637 = vmatprep.subr.bf16.mxu1 %v5422_v1 }
 0x41d   : > { %3682 = vmatprep.subr.bf16.mxu0 %v5422_v1 }
 0x41e   : > { %v6899_v30 = vpop.f32.mrf.mxu1 }
 0x41f   : > { %3431 = vmatmul.mubr.bf16.vlgmr.msra.gmra.mxu0 %v6765_v16  ;;  %3638 = vmatpush2.bf16.msra.mxu1 %v6893_v24  ;;  %v6917_v16 = vld [vmem:[%s7260_s17] sm:$0xf] }
 0x420   : > { %4413 = vmatprep.mubr.msk.bf16.mxu0 %vm858_vm1, %v6514_v35  ;;  %3683 = vmatpush1.bf16.msra.mxu0 %v6760_v52  ;;  %v6912_v54 = vpop.f32.mrf.mxu1  ;;  %v3905_v51 = vrot.slane %v6917_v16, %v3904_v62  ;;  %v6926_v35 = vld [vmem:[%s7259_s5 + $0x100] sm:$0xff]   ;;  %v2475_v52 = vpop.f32.mrf.mxu0 }
 0x421   : > { %3639 = vmatprep.subr.bf16.mxu1 %v5422_v1  ;;  %3684 = vmatprep.subr.bf16.mxu0 %v5422_v1  ;;  %v3966_v62 = vld [vmem:[%s5742_s15 + $0x60] sm:$0xff] }
 0x422   : > { %v4853_v42 = vpop.f32.mrf.mxu1  ;;  %v4873_v58 = vpop.f32.mrf.mxu0 }
 0x423   : > { %3640 = vmatpush2.bf16.msra.mxu1 %v6906_v48  ;;  %v2392_v41 = vadd.f32 %v4853_v42, %v4837_v18  ;;  %v3962_v18 = vld [vmem:[%s5742_s15 + $0x40] sm:$0xff]  ;;  %v3913_v42 = vrot.slane %v6917_v16, %v3912_v8 }
 0x424   : > { %3685 = vmatpush1.bf16.msra.mxu0 %v6781_v46  ;;  %v2383_v26 = vpop.f32.mrf.mxu1  ;;  %3641 = vmatprep.subr.bf16.mxu1 %v5422_v1 }
 0x425   : > { %v2505_v14 = vadd.f32 %v4869_v29, %v2392_v41  ;;  %v2384_v39 = vadd.f32 %v2383_v26, %v2306_v43  ;;  %3686 = vmatprep.subr.bf16.mxu0 %v5422_v1 }
 0x426   : > { %v4854_v57 = vpop.f32.mrf.mxu1 }
 0x427   : > { %v3930_v38 = vadd.f32 %v3905_v51, %v2505_v14  ;;  %v2503_v47 = vadd.f32 %v2472_v61, %v2384_v39  ;;  %3439 = vmatmul.mubr.bf16.gmra.mxu0 %v6804_v2  ;;  %3642 = vmatpush2.bf16.msra.mxu1 %v6926_v35  ;;  %v2395_v20 = vadd.f32 %v4854_v57, %v4838_v9  ;;  %v2488_v2 = vpop.f32.mrf.mxu0  ;;  %v3954_v9 = vld [vmem:[%s5742_s15] sm:$0xff] }
 0x428   : > { %4414 = vmatprep.mubr.msk.bf16.mxu0 %vm858_vm1, %v6809_v55  ;;  %3687 = vmatpush1.bf16.msra.mxu0 %v6798_v0  ;;  %v2386_v46 = vpop.f32.mrf.mxu1 }
 0x429   : > { %v3946_v27 = vmax.f32 %v3930_v38, 0.0  ;;  %v3922_v43 = vadd.f32 %v3905_v51, %v2503_v47  ;;  %v2506_v13 = vadd.f32 %v4870_v23, %v2395_v20  ;;  %v2387_v32 = vadd.f32 %v2386_v46, %v2309_v21  ;;  %3688 = vmatprep.subr.bf16.mxu0 %v5422_v1  ;;  %3819 = vmatprep.subr.bf16.mxu1 %v5422_v1  ;;  %v5107_v21 = vld [vmem:[#allocation11 + $0xf0] sm:$0xff]   ;;  %v5108_v20 = vld [vmem:[#allocation11 + $0xe8] sm:$0xff]  }
 0x42a   : > { %3644 = vmatmul.mubr.bf16.vlgmr.msra.gmra.mxu1 %v6608_v53  ;;  %v4857_v55 = vpop.f32.mrf.mxu1 }
 0x42b   : > { %v3978_v29 = vadd.f32 %v3962_v18, %v3946_v27  ;;  %v3938_v0 = vmax.f32 %v3922_v43, 0.0  ;;  %v3934_v10 = vadd.f32 %v3905_v51, %v2506_v13  ;;  %v2504_v61 = vadd.f32 %v2475_v52, %v2387_v32  ;;  %4453 = vmatprep.mubr.msk.bf16.mxu1 %vm858_vm1, %v6525_v33  ;;  %3820 = vmatpush1.bf16.msra.mxu1 %v5106_v3  ;;  %v3964_v18 = vld [vmem:[%s5742_s15 + $0x50] sm:$0xff] }
 0x42c   : > { %3689 = vmatpush1.bf16.msra.mxu0 %v6817_v5  ;;  %v2408_v23 = vadd.f32 %v4857_v55, %v6887_v15  ;;  %v2399_v41 = vpop.f32.mrf.mxu1  ;;  %3821 = vmatprep.subr.bf16.mxu1 %v5422_v1  ;;  %v4874_v5 = vpop.f32.mrf.mxu0  ;;  %v3958_v15 = vld [vmem:[%s5742_s15 + $0x20] sm:$0xff]  ;;  %v3956_v43 = vld [vmem:[%s5742_s15 + $0x10] sm:$0xff] }
 0x42d   : > { %3994 = vst [vmem:[%s6951_s30 + $0x40] sm:$0xff] %v3978_v29  ;;  %v3970_v33 = vadd.f32 %v3954_v9, %v3938_v0  ;;  %v3950_v53 = vmax.f32 %v3934_v10, 0.0  ;;  %v3926_v52 = vadd.f32 %v3905_v51, %v2504_v61  ;;  %v2400_v26 = vadd.f32 %v2399_v41, %v6895_v28  ;;  %3690 = vmatprep.subr.bf16.mxu0 %v5422_v1  ;;  %v3960_v29 = vld [vmem:[%s5742_s15 + $0x30] sm:$0xff]  ;;  %v5110_v10 = vld [vmem:[#allocation11 + $0xd8] sm:$0xff]  }
 0x42e   : > { %v2509_v14 = vadd.f32 %v4873_v58, %v2408_v23  ;;  %v4858_v39 = vpop.f32.mrf.mxu1 }
 0x42f   : > { %3986 = vst [vmem:[%s6951_s30] sm:$0xff] %v3970_v33  ;;  %v3982_v57 = vadd.f32 %v3966_v62, %v3950_v53  ;;  %v3942_v38 = vmax.f32 %v3926_v52, 0.0  ;;  %v2507_v47 = vadd.f32 %v2488_v2, %v2400_v26  ;;  %3447 = vmatmul.mubr.bf16.gmra.mxu0 %v6835_v4  ;;  %3822 = vmatpush1.bf16.msra.mxu1 %v5107_v21  ;;  %v3968_v2 = vld [vmem:[%s5742_s15 + $0x70] sm:$0xff] }
 0x430   : > { %v2411_v51 = vadd.f32 %v4858_v39, %v6899_v30  ;;  %v3932_v28 = vadd.f32 %v3913_v42, %v2509_v14  ;;  %4415 = vmatprep.mubr.msk.bf16.mxu0 %vm858_vm1, %v6844_v50  ;;  %3691 = vmatpush1.bf16.msra.mxu0 %v6831_v11  ;;  %v2402_v58 = vpop.f32.mrf.mxu1  ;;  %v2491_v30 = vpop.f32.mrf.mxu0 }
 0x431   : > { %3998 = vst [vmem:[%s6951_s30 + $0x60] sm:$0xff] %v3982_v57  ;;  %v3974_v3 = vadd.f32 %v3958_v15, %v3942_v38  ;;  %v3924_v46 = vadd.f32 %v3913_v42, %v2507_v47  ;;  %v2403_v4 = vadd.f32 %v2402_v58, %v6912_v54  ;;  %3692 = vmatprep.subr.bf16.mxu0 %v5422_v1  ;;  %v5109_v54 = vld [vmem:[#allocation11 + $0xe0] sm:$0xff]  }
 0x432   : > { %v2510_v8 = vadd.f32 %v4874_v5, %v2411_v51  ;;  %v3948_v27 = vmax.f32 %v3932_v28, 0.0  ;;  %3652 = vmatmul.mubr.bf16.gmra.mxu1 %v6741_v44  ;;  %3823 = vmatprep.subr.bf16.mxu1 %v5422_v1 }
 0x433   : > { %3990 = vst [vmem:[%s6951_s30 + $0x20] sm:$0xff] %v3974_v3  ;;  %v3940_v11 = vmax.f32 %v3924_v46, 0.0  ;;  %v2508_v13 = vadd.f32 %v2491_v30, %v2403_v4  ;;  %4454 = vmatprep.mubr.msk.bf16.mxu1 %vm858_vm1, %v6350_v31  ;;  %3824 = vmatpush1.bf16.msra.mxu1 %v5108_v20 }
 0x434   : > { %v3936_v50 = vadd.f32 %v3913_v42, %v2510_v8  ;;  %v3980_v32 = vadd.f32 %v3964_v18, %v3948_v27  ;;  %3693 = vmatpush1.bf16.msra.mxu0 %v6852_v12  ;;  %3825 = vmatprep.subr.bf16.mxu1 %v5422_v1 }
 0x435   : > { %v3972_v44 = vadd.f32 %v3956_v43, %v3940_v11  ;;  %v3928_v55 = vadd.f32 %v3913_v42, %v2508_v13  ;;  %3694 = vmatprep.subr.bf16.mxu0 %v5422_v1 }
 0x436   : > { %v3952_v9 = vmax.f32 %v3936_v50, 0.0  ;;  %3996 = vst [vmem:[%s6951_s30 + $0x50] sm:$0xff] %v3980_v32 }
 0x437   : > { %3988 = vst [vmem:[%s6951_s30 + $0x10] sm:$0xff] %v3972_v44  ;;  %v3944_v31 = vmax.f32 %v3928_v55, 0.0  ;;  %3455 = vmatmul.mubr.bf16.gmra.mxu0 %v6865_v25  ;;  %3826 = vmatpush1.bf16.msra.mxu1 %v5109_v54  ;;  %v5111_v25 = vld [vmem:[#allocation11 + $0xd0] sm:$0xff]  }
 0x438   : > { %v3984_v0 = vadd.f32 %v3968_v2, %v3952_v9  ;;  %3695 = vmatpush1.bf16.msra.mxu0 %v6861_v22  ;;  %4456 = vmatprep.mubr.msk.bf16.mxu0 %vm858_vm1, %v6427_v17  ;;  %v5112_v22 = vld [vmem:[#allocation11 + $0xc8] sm:$0xff]  }
 0x439   : > { %v3976_v12 = vadd.f32 %v3960_v29, %v3944_v31  ;;  %3696 = vmatprep.subr.bf16.mxu0 %v5422_v1  ;;  %3827 = vmatprep.subr.bf16.mxu1 %v5422_v1 }
 0x43a   : > { %4000 = vst [vmem:[%s6951_s30 + $0x70] sm:$0xff] %v3984_v0  ;;  %3660 = vmatmul.mubr.bf16.gmra.mxu1 %v6644_v60  ;;  %v5114_v60 = vld [vmem:[#allocation11 + $0x118] sm:$0xff]  }
 0x43b   : > { %3992 = vst [vmem:[%s6951_s30 + $0x30] sm:$0xff] %v3976_v12  ;;  %4455 = vmatprep.mubr.msk.bf16.mxu1 %vm858_vm1, %v6367_v36  ;;  %3828 = vmatpush1.bf16.msra.mxu1 %v5110_v10  ;;  %v5113_v36 = vld [vmem:[#allocation11 + $0xc0] sm:$0xff]  }
 0x43c   : > { %3697 = vmatpush1.bf16.msra.mxu0 %v6875_v40  ;;  %3829 = vmatprep.subr.bf16.mxu1 %v5422_v1  ;;  %v5117_v40 = vld [vmem:[#allocation11 + $0x100] sm:$0xff]  }
 0x43d   : > { %3706 = vmatprep.subr.bf16.mxu0 %v5422_v1 }
 0x43f   : > { %3830 = vmatpush1.bf16.msra.mxu1 %v5111_v25 }
 0x440   : > { %3707 = vmatpush2.bf16.msra.mxu0 %v6883_v37  ;;  %3831 = vmatprep.subr.bf16.mxu1 %v5422_v1 }
 0x441   : > { %3708 = vmatprep.subr.bf16.mxu0 %v5422_v1 }
 0x442   : > { %3668 = vmatmul.mubr.bf16.gmra.mxu1 %v6789_v56  ;;  %v5115_v56 = vld [vmem:[#allocation11 + $0x110] sm:$0xff]  }
 0x443   : > { %3832 = vmatpush1.bf16.msra.mxu1 %v5112_v22  ;;  %4472 = vmatprep.mubr.msk.bf16.mxu1 %vm858_vm1, %v6427_v17  ;;  %v5116_v17 = vld [vmem:[#allocation11 + $0x108] sm:$0xff]  }
 0x444   : > { %3709 = vmatpush2.bf16.msra.mxu0 %v6893_v24  ;;  %3833 = vmatprep.subr.bf16.mxu1 %v5422_v1 }
 0x445   : > { %3710 = vmatprep.subr.bf16.mxu0 %v5422_v1 }
 0x447   : > { %3834 = vmatpush1.bf16.msra.mxu1 %v5113_v36 }
 0x448   : > { %3711 = vmatpush2.bf16.msra.mxu0 %v6906_v48  ;;  %3843 = vmatprep.subr.bf16.mxu1 %v5422_v1 }
 0x449   : > { %3712 = vmatprep.subr.bf16.mxu0 %v5422_v1 }
 0x44b   : > { %3844 = vmatpush2.bf16.msra.mxu1 %v5114_v60 }
 0x44c   : > { %3713 = vmatpush2.bf16.msra.mxu0 %v6926_v35  ;;  %3845 = vmatprep.subr.bf16.mxu1 %v5422_v1 }
 0x44f   : > { %3715 = vmatmul.mubr.bf16.vlgmr.msra.gmra.mxu0 %v6656_v45  ;;  %3846 = vmatpush2.bf16.msra.mxu1 %v5115_v56 }
 0x450   : > { %4457 = vmatprep.mubr.msk.bf16.mxu0 %vm858_vm1, %v6477_v7  ;;  %3847 = vmatprep.subr.bf16.mxu1 %v5422_v1 }
 0x453   : > { %3848 = vmatpush2.bf16.msra.mxu1 %v5116_v17 }
 0x454   : > { %3849 = vmatprep.subr.bf16.mxu1 %v5422_v1 }
 0x456   : > { %v2725_v37 = vpop.f32.mrf.mxu1 }
 0x457   : > { %3723 = vmatmul.mubr.bf16.gmra.mxu0 %v6770_v6  ;;  %3850 = vmatpush2.bf16.msra.mxu1 %v5117_v40 }
 0x458   : > { %4458 = vmatprep.mubr.msk.bf16.mxu0 %vm858_vm1, %v6316_v49  ;;  %v2727_v24 = vpop.f32.mrf.mxu1 }
 0x45a   : > { %3852 = vmatmul.mubr.bf16.vlgmr.msra.gmra.mxu1 %v6656_v45  ;;  %v2728_v48 = vpop.f32.mrf.mxu1 }
 0x45b   : > { %4473 = vmatprep.mubr.msk.bf16.mxu1 %vm858_vm1, %v6477_v7 }
 0x45c   : > { %v2730_v35 = vpop.f32.mrf.mxu1 }
 0x45e   : > { %v2733_v61 = vpop.f32.mrf.mxu1 }
 0x45f   : > { %3731 = vmatmul.mubr.bf16.gmra.mxu0 %v6695_v34 }
 0x460   : > { %4459 = vmatprep.mubr.msk.bf16.mxu0 %vm858_vm1, %v6335_v19  ;;  %v2735_v1 = vpop.f32.mrf.mxu1 }
 0x462   : > { %3860 = vmatmul.mubr.bf16.gmra.mxu1 %v6770_v6  ;;  %v2736_v21 = vpop.f32.mrf.mxu1 }
 0x463   : > { %4474 = vmatprep.mubr.msk.bf16.mxu1 %vm858_vm1, %v6316_v49 }
 0x464   : > { %v2738_v62 = vpop.f32.mrf.mxu1 }
 0x467   : > { %3739 = vmatmul.mubr.bf16.gmra.mxu0 %v6840_v59 }
 0x46a   : > { %3868 = vmatmul.mubr.bf16.gmra.mxu1 %v6695_v34 }
 0x46b   : > { %4475 = vmatprep.mubr.msk.bf16.mxu1 %vm858_vm1, %v6335_v19 }
 0x472   : > { %3876 = vmatmul.mubr.bf16.gmra.mxu1 %v6840_v59 }
 0x479   : > { %v2741_v7 = vpop.f32.mrf.mxu1 }
 0x47b   : > { %v2743_v45 = vpop.f32.mrf.mxu1 }
 0x47d   : > { %v2744_v23 = vpop.f32.mrf.mxu1  ;;  %v2802_v42 = vpop.f32.mrf.mxu0 }
 0x47e   : > { %v2803_v41 = vadd.f32 %v2802_v42, %v2725_v37 }
 0x47f   : > { %v2746_v6 = vpop.f32.mrf.mxu1  ;;  %v2804_v33 = vpop.f32.mrf.mxu0 }
 0x481   : > { %v2805_v52 = vpop.f32.mrf.mxu0 }
 0x482   : > { %v2749_v53 = vpop.f32.mrf.mxu1  ;;  %v2806_v49 = vadd.f32 %v2805_v52, %v2728_v48 }
 0x483   : > { %v2807_v5 = vpop.f32.mrf.mxu0 }
 0x484   : > { %v2751_v26 = vpop.f32.mrf.mxu1 }
 0x486   : > { %v2752_v15 = vpop.f32.mrf.mxu1  ;;  %v2810_v14 = vpop.f32.mrf.mxu0 }
 0x487   : > { %v2811_v34 = vadd.f32 %v2810_v14, %v2733_v61 }
 0x488   : > { %v2754_v39 = vpop.f32.mrf.mxu1  ;;  %v2812_v57 = vpop.f32.mrf.mxu0 }
 0x48a   : > { %v2813_v19 = vpop.f32.mrf.mxu0  ;;  %v2939_v38 = vpop.f32.mrf.mxu1 }
 0x48b   : > { %v2814_v59 = vadd.f32 %v2813_v19, %v2736_v21  ;;  %v7030_v47 = vadd.f32 %v2939_v38, %v2803_v41 }
 0x48c   : > { %v2815_v51 = vpop.f32.mrf.mxu0  ;;  %v2941_v20 = vpop.f32.mrf.mxu1 }
 0x48e   : > { %v2818_v28 = vpop.f32.mrf.mxu0  ;;  %v2942_v58 = vpop.f32.mrf.mxu1 }
 0x48f   : > { %v2819_v3 = vadd.f32 %v2818_v28, %v2741_v7  ;;  %v7032_v18 = vadd.f32 %v2942_v58, %v2806_v49 }
 0x490   : > { %v2820_v46 = vpop.f32.mrf.mxu0  ;;  %v2944_v8 = vpop.f32.mrf.mxu1 }
 0x492   : > { %v2821_v4 = vpop.f32.mrf.mxu0  ;;  %v2947_v30 = vpop.f32.mrf.mxu1 }
 0x493   : > { %v2822_v27 = vadd.f32 %v2821_v4, %v2744_v23  ;;  %v7034_v43 = vadd.f32 %v2947_v30, %v2811_v34 }
 0x494   : > { %v2823_v11 = vpop.f32.mrf.mxu0  ;;  %v2949_v50 = vpop.f32.mrf.mxu1 }
 0x496   : > { %v2826_v13 = vpop.f32.mrf.mxu0  ;;  %v2950_v54 = vpop.f32.mrf.mxu1 }
 0x497   : > { %v2827_v32 = vadd.f32 %v2826_v13, %v2749_v53  ;;  %v7036_v2 = vadd.f32 %v2950_v54, %v2814_v59 }
 0x498   : > { %v2828_v44 = vpop.f32.mrf.mxu0  ;;  %v2952_v9 = vpop.f32.mrf.mxu1 }
 0x49a   : > { %v2829_v55 = vpop.f32.mrf.mxu0  ;;  %v2955_v29 = vpop.f32.mrf.mxu1 }
 0x49b   : > { %v2830_v0 = vadd.f32 %v2829_v55, %v2752_v15  ;;  %v7038_v31 = vadd.f32 %v2955_v29, %v2819_v3 }
 0x49c   : > { %v2831_v10 = vpop.f32.mrf.mxu0  ;;  %v2957_v12 = vpop.f32.mrf.mxu1 }
 0x49e   : > { %v2958_v25 = vpop.f32.mrf.mxu1 }
 0x49f   : > { %v7040_v22 = vadd.f32 %v2958_v25, %v2822_v27 }
 0x4a0   : > { %v2960_v36 = vpop.f32.mrf.mxu1 }
 0x4a2   : > { %v2963_v60 = vpop.f32.mrf.mxu1 }
 0x4a3   : > { %v7042_v56 = vadd.f32 %v2963_v60, %v2827_v32 }
 0x4a4   : > { %v2965_v17 = vpop.f32.mrf.mxu1 }
 0x4a6   : > { %v2966_v40 = vpop.f32.mrf.mxu1 }
 0x4a7   : > { %v7044_v37 = vadd.f32 %v2966_v40, %v2830_v0 }
 0x4a8   : > { %v2968_v24 = vpop.f32.mrf.mxu1 }
 0x4ae   : > { %v3224_v48 = vpop.f32.mrf.mxu0 }
 0x4b0   : > { %v3226_v35 = vpop.f32.mrf.mxu0 }
 0x4b2   : > { %v3227_v61 = vpop.f32.mrf.mxu0 }
 0x4b4   : > { %v3229_v1 = vpop.f32.mrf.mxu0 }
 0x4b6   : > { %v3232_v21 = vpop.f32.mrf.mxu0 }
 0x4b8   : > { %v3234_v62 = vpop.f32.mrf.mxu0 }
 0x4ba   : > { %v3235_v7 = vpop.f32.mrf.mxu0  ;;  %v3295_v45 = vpop.f32.mrf.mxu1 }
 0x4bb   : > { %v3296_v23 = vadd.f32 %v3295_v45, %v3224_v48 }
 0x4bc   : > { %v3237_v42 = vpop.f32.mrf.mxu0  ;;  %v3297_v41 = vpop.f32.mrf.mxu1 }
 0x4be   : > { %v3240_v6 = vpop.f32.mrf.mxu0  ;;  %v3298_v33 = vpop.f32.mrf.mxu1 }
 0x4bf   : > { %v3299_v53 = vadd.f32 %v3298_v33, %v3227_v61 }
 0x4c0   : > { %v3242_v52 = vpop.f32.mrf.mxu0  ;;  %v3300_v49 = vpop.f32.mrf.mxu1 }
 0x4c2   : > { %v3243_v26 = vpop.f32.mrf.mxu0  ;;  %v3303_v5 = vpop.f32.mrf.mxu1 }
 0x4c3   : > { %v3304_v15 = vadd.f32 %v3303_v5, %v3232_v21 }
 0x4c4   : > { %v3245_v14 = vpop.f32.mrf.mxu0  ;;  %v3305_v34 = vpop.f32.mrf.mxu1 }
 0x4c6   : > { %v3248_v39 = vpop.f32.mrf.mxu0  ;;  %v3306_v57 = vpop.f32.mrf.mxu1 }
 0x4c7   : > { %v3307_v19 = vadd.f32 %v3306_v57, %v3235_v7 }
 0x4c8   : > { %v3250_v38 = vpop.f32.mrf.mxu0  ;;  %v3308_v59 = vpop.f32.mrf.mxu1 }
 0x4ca   : > { %v3251_v51 = vpop.f32.mrf.mxu0  ;;  %v3311_v20 = vpop.f32.mrf.mxu1 }
 0x4cb   : > { %v3312_v28 = vadd.f32 %v3311_v20, %v3240_v6 }
 0x4cc   : > { %v3253_v58 = vpop.f32.mrf.mxu0  ;;  %v3313_v3 = vpop.f32.mrf.mxu1 }
 0x4ce   : > { %v3314_v46 = vpop.f32.mrf.mxu1 }
 0x4cf   : > { %v3315_v8 = vadd.f32 %v3314_v46, %v3243_v26 }
 0x4d0   : > { %v3316_v4 = vpop.f32.mrf.mxu1 }
 0x4d2   : > { %v3319_v30 = vpop.f32.mrf.mxu1 }
 0x4d3   : > { %v3320_v27 = vadd.f32 %v3319_v30, %v3248_v39 }
 0x4d4   : > { %v3321_v11 = vpop.f32.mrf.mxu1 }
 0x4d6   : > { %v3322_v50 = vpop.f32.mrf.mxu1 }
 0x4d7   : > { %v3323_v13 = vadd.f32 %v3322_v50, %v3251_v51 }
 0x4d8   : > { %v3324_v54 = vpop.f32.mrf.mxu1 }
 0x4df   : > { %v3432_v32 = vpop.f32.mrf.mxu0 }
 0x4e0   : > { %v3463_v44 = vadd.f32 %v3432_v32, %v3296_v23 }
 0x4e1   : > { %v3434_v9 = vpop.f32.mrf.mxu0 }
 0x4e2   : > { %v3471_v55 = vadd.f32 %v3463_v44, %v7030_v47 }
 0x4e3   : > { %v3435_v29 = vpop.f32.mrf.mxu0 }
 0x4e4   : > { %v3464_v0 = vadd.f32 %v3435_v29, %v3299_v53 }
 0x4e5   : > { %v3437_v10 = vpop.f32.mrf.mxu0 }
 0x4e6   : > { %v7048_v12 = vadd.f32 %v3464_v0, %v7032_v18 }
 0x4e7   : > { %v3440_v25 = vpop.f32.mrf.mxu0 }
 0x4e8   : > { %v3465_v36 = vadd.f32 %v3440_v25, %v3304_v15  ;;  %v3955_v25 = vld [vmem:[%s5742_s15 + $0x8] sm:$0xff] }
 0x4e9   : > { %v3442_v60 = vpop.f32.mrf.mxu0 }
 0x4ea   : > { %v7051_v17 = vadd.f32 %v3465_v36, %v7034_v43  ;;  %v3645_v40 = vpop.f32.mrf.mxu1 }
 0x4eb   : > { %v3443_v24 = vpop.f32.mrf.mxu0 }
 0x4ec   : > { %v3466_v48 = vadd.f32 %v3443_v24, %v3307_v19  ;;  %v3647_v35 = vpop.f32.mrf.mxu1 }
 0x4ed   : > { %v3445_v61 = vpop.f32.mrf.mxu0 }
 0x4ee   : > { %v7054_v1 = vadd.f32 %v3466_v48, %v7036_v2  ;;  %v3648_v47 = vpop.f32.mrf.mxu1 }
 0x4ef   : > { %v3448_v21 = vpop.f32.mrf.mxu0 }
 0x4f0   : > { %v3467_v62 = vadd.f32 %v3448_v21, %v3312_v28  ;;  %v3650_v7 = vpop.f32.mrf.mxu1 }
 0x4f1   : > { %v3450_v18 = vpop.f32.mrf.mxu0 }
 0x4f2   : > { %v7057_v45 = vadd.f32 %v3467_v62, %v7038_v31  ;;  %v3653_v23 = vpop.f32.mrf.mxu1  ;;  %v3959_v62 = vld [vmem:[%s5742_s15 + $0x28] sm:$0xff] }
 0x4f3   : > { %v3451_v42 = vpop.f32.mrf.mxu0 }
 0x4f4   : > { %v3468_v43 = vadd.f32 %v3451_v42, %v3315_v8  ;;  %v3655_v41 = vpop.f32.mrf.mxu1  ;;  %v3908_v8 = vsub.s32 1, %v5856_v63 }
 0x4f5   : > { %v3453_v6 = vpop.f32.mrf.mxu0 }
 0x4f6   : > { %v7060_v33 = vadd.f32 %v3468_v43, %v7040_v22  ;;  %v3656_v53 = vpop.f32.mrf.mxu1  ;;  %v3909_v50 = vrot.slane %v6917_v16, %v3908_v8 }
 0x4f7   : > { %v3456_v52 = vpop.f32.mrf.mxu0 }
 0x4f8   : > { %v3469_v2 = vadd.f32 %v3456_v52, %v3320_v27  ;;  %v3658_v49 = vpop.f32.mrf.mxu1 }
 0x4f9   : > { %v3458_v26 = vpop.f32.mrf.mxu0  ;;  %v3916_v49 = vsub.s32 3, %v5856_v63 }
 0x4fa   : > { %v7063_v5 = vadd.f32 %v3469_v2, %v7042_v56  ;;  %v3661_v15 = vpop.f32.mrf.mxu1  ;;  %v3963_v26 = vld [vmem:[%s5742_s15 + $0x48] sm:$0xff] }
 0x4fb   : > { %v3459_v14 = vpop.f32.mrf.mxu0 }
 0x4fc   : > { %v3470_v31 = vadd.f32 %v3459_v14, %v3323_v13  ;;  %v3663_v34 = vpop.f32.mrf.mxu1 }
 0x4fd   : > { %v3461_v39 = vpop.f32.mrf.mxu0 }
 0x4fe   : > { %v7066_v57 = vadd.f32 %v3470_v31, %v7044_v37  ;;  %v7068_v19 = vpop.f32.mrf.mxu1 }
 0x500   : > { %v3666_v22 = vpop.f32.mrf.mxu1 }
 0x502   : > { %v7070_v38 = vpop.f32.mrf.mxu1 }
 0x504   : > { %v3671_v59 = vpop.f32.mrf.mxu1 }
 0x506   : > { %v7072_v51 = vpop.f32.mrf.mxu1 }
 0x508   : > { %v3674_v20 = vpop.f32.mrf.mxu1 }
 0x50f   : > { %v3716_v28 = vpop.f32.mrf.mxu0 }
 0x510   : > { %v3717_v4 = vadd.f32 %v3716_v28, %v3645_v40 }
 0x511   : > { %v3718_v56 = vpop.f32.mrf.mxu0 }
 0x512   : > { %v3917_v56 = vrot.slane %v6917_v16, %v3916_v49 }
 0x513   : > { %v3719_v58 = vpop.f32.mrf.mxu0 }
 0x514   : > { %v3720_v54 = vadd.f32 %v3719_v58, %v3648_v47  ;;  %v3967_v58 = vld [vmem:[%s5742_s15 + $0x68] sm:$0xff] }
 0x515   : > { %v3721_v3 = vpop.f32.mrf.mxu0 }
 0x517   : > { %v3724_v46 = vpop.f32.mrf.mxu0 }
 0x518   : > { %v3725_v60 = vadd.f32 %v3724_v46, %v3653_v23 }
 0x519   : > { %v3726_v37 = vpop.f32.mrf.mxu0 }
 0x51a   : > { %v3853_v30 = vpop.f32.mrf.mxu1 }
 0x51b   : > { %v3727_v27 = vpop.f32.mrf.mxu0  ;;  %v3884_v11 = vadd.f32 %v3853_v30, %v3717_v4 }
 0x51c   : > { %v3855_v13 = vpop.f32.mrf.mxu1  ;;  %v3728_v18 = vadd.f32 %v3727_v27, %v3656_v53  ;;  %v3957_v27 = vld [vmem:[%s5742_s15 + $0x18] sm:$0xff] }
 0x51d   : > { %v3892_v32 = vadd.f32 %v3884_v11, %v3471_v55  ;;  %v3729_v44 = vpop.f32.mrf.mxu0 }
 0x51e   : > { %v3856_v9 = vpop.f32.mrf.mxu1  ;;  %v3961_v44 = vld [vmem:[%s5742_s15 + $0x38] sm:$0xff] }
 0x51f   : > { %v3923_v29 = vadd.f32 %v3909_v50, %v3892_v32  ;;  %v3732_v0 = vpop.f32.mrf.mxu0  ;;  %v3885_v10 = vadd.f32 %v3856_v9, %v3720_v54 }
 0x520   : > { %v3858_v36 = vpop.f32.mrf.mxu1  ;;  %v3733_v31 = vadd.f32 %v3732_v0, %v3661_v15 }
 0x521   : > { %v3939_v40 = vmax.f32 %v3923_v29, 0.0  ;;  %v3893_v24 = vadd.f32 %v3885_v10, %v7048_v12  ;;  %v3734_v48 = vpop.f32.mrf.mxu0 }
 0x522   : > { %v3861_v35 = vpop.f32.mrf.mxu1 }
 0x523   : > { %v3971_v61 = vadd.f32 %v3955_v25, %v3939_v40  ;;  %v3927_v21 = vadd.f32 %v3909_v50, %v3893_v24  ;;  %v3735_v47 = vpop.f32.mrf.mxu0  ;;  %v3886_v55 = vadd.f32 %v3861_v35, %v3725_v60  ;;  %v3965_v60 = vld [vmem:[%s5742_s15 + $0x58] sm:$0xff] }
 0x524   : > { %v3863_v7 = vpop.f32.mrf.mxu1  ;;  %v3736_v3 = vadd.f32 %v3735_v47, %v7068_v19 }
 0x525   : > { %3987 = vst [vmem:[%s6951_s30 + $0x8] sm:$0xff] %v3971_v61  ;;  %v3943_v42 = vmax.f32 %v3927_v21, 0.0  ;;  %v3894_v43 = vadd.f32 %v3886_v55, %v7051_v17  ;;  %v3737_v41 = vpop.f32.mrf.mxu0  ;;  %v3969_v61 = vld [vmem:[%s5742_s15 + $0x78] sm:$0xff]  ;;  %s5310_s15 = sshll.u32 %s5423_s27, 4  ;;  %s5311_s15 = int_to_ptr.vmem [resolvable:$false] %s5310_s15 }
 0x526   : > { %v3864_v23 = vpop.f32.mrf.mxu1  ;;  %s5312_s19 = scalar_lea.vmem %s5311_s15, 4096  ;;  %p5313_p7 = scmp.lt.s32.totalorder %s7110_s20, %s5311_s15 }
 0x527   : > { %v3975_v6 = vadd.f32 %v3959_v62, %v3943_v42  ;;  %v3931_v52 = vadd.f32 %v3909_v50, %v3894_v43  ;;  %v3740_v12 = vpop.f32.mrf.mxu0  ;;  %v3887_v2 = vadd.f32 %v3864_v23, %v3728_v18  ;;  %p5314_p13 = scmp.lt.s32.totalorder %s5312_s19, %s5306_s1 }
 0x528   : > { %v3866_v14 = vpop.f32.mrf.mxu1 }
 0x529   : > { %3991 = vst [vmem:[%s6951_s30 + $0x28] sm:$0xff] %v3975_v6  ;;  %v3947_v34 = vmax.f32 %v3931_v52, 0.0  ;;  %v3895_v53 = vadd.f32 %v3887_v2, %v7054_v1  ;;  %v3742_v39 = vpop.f32.mrf.mxu0  ;;  %p5315_p3 = por %p5314_p13, %p5313_p7 }
 0x52a   : > { %v3869_v22 = vpop.f32.mrf.mxu1 }
 0x52b   : > { %v3979_v17 = vadd.f32 %v3963_v26, %v3947_v34  ;;  %v3935_v59 = vadd.f32 %v3909_v50, %v3895_v53  ;;  %v3743_v20 = vpop.f32.mrf.mxu0  ;;  %v3888_v28 = vadd.f32 %v3869_v22, %v3733_v31  ;;  %v3741_v50 = vadd.f32 %v3740_v12, %v7070_v38  ;;  %p5316_p0 = pnand %p5315_p3, %p5309_p1 }
 0x52c   : > { %v3871_v63 = vpop.f32.mrf.mxu1  ;;  %v3744_v29 = vadd.f32 %v3743_v20, %v7072_v51 }
 0x52d   : > { %3995 = vst [vmem:[%s6951_s30 + $0x48] sm:$0xff] %v3979_v17  ;;  %v3951_v15 = vmax.f32 %v3935_v59, 0.0  ;;  %v3896_v46 = vadd.f32 %v3888_v28, %v7057_v45  ;;  %v3745_v1 = vpop.f32.mrf.mxu0 }
 0x52e   : > { %v3872_v8 = vpop.f32.mrf.mxu1 }
 0x52f   : > { %v3983_v4 = vadd.f32 %v3967_v58, %v3951_v15  ;;  %v3925_v37 = vadd.f32 %v3917_v56, %v3896_v46  ;;  %v3889_v30 = vadd.f32 %v3872_v8, %v3736_v3 }
 0x530   : > { %v3874_v11 = vpop.f32.mrf.mxu1 }
 0x531   : > { %3999 = vst [vmem:[%s6951_s30 + $0x68] sm:$0xff] %v3983_v4  ;;  %v3941_v16 = vmax.f32 %v3925_v37, 0.0  ;;  %v3897_v19 = vadd.f32 %v3889_v30, %v7060_v33 }
 0x532   : > { %v3877_v13 = vpop.f32.mrf.mxu1 }
 0x533   : > { %v3973_v54 = vadd.f32 %v3957_v27, %v3941_v16  ;;  %v3929_v45 = vadd.f32 %v3917_v56, %v3897_v19  ;;  %v3890_v32 = vadd.f32 %v3877_v13, %v3741_v50 }
 0x534   : > { %v3879_v9 = vpop.f32.mrf.mxu1 }
 0x535   : > { %3989 = vst [vmem:[%s6951_s30 + $0x18] sm:$0xff] %v3973_v54  ;;  %v3945_v0 = vmax.f32 %v3929_v45, 0.0  ;;  %v3898_v38 = vadd.f32 %v3890_v32, %v7063_v5 }
 0x536   : > { %v3880_v10 = vpop.f32.mrf.mxu1 }
 0x537   : > { %v3977_v25 = vadd.f32 %v3961_v44, %v3945_v0  ;;  %v3933_v33 = vadd.f32 %v3917_v56, %v3898_v38  ;;  %v3891_v36 = vadd.f32 %v3880_v10, %v3744_v29 }
 0x538   : > { %v3882_v40 = vpop.f32.mrf.mxu1 }
 0x539   : > { %3993 = vst [vmem:[%s6951_s30 + $0x38] sm:$0xff] %v3977_v25  ;;  %v3949_v24 = vmax.f32 %v3933_v33, 0.0  ;;  %v3899_v51 = vadd.f32 %v3891_v36, %v7066_v57 }
 0x53b   : > { %v3981_v48 = vadd.f32 %v3965_v60, %v3949_v24  ;;  %v3937_v35 = vadd.f32 %v3917_v56, %v3899_v51 }
 0x53d   : > { %3997 = vst [vmem:[%s6951_s30 + $0x58] sm:$0xff] %v3981_v48  ;;  %v3953_v5 = vmax.f32 %v3937_v35, 0.0 }
 0x53f   : > { %v3985_v21 = vadd.f32 %v3969_v61, %v3953_v5 }
 0x541   : > { %4001 = vst [vmem:[%s6951_s30 + $0x78] sm:$0xff] %v3985_v21 }
 0x542   : > { %5319 = shalt.err (!%p5316_p0)
}
 0x543   : > { %s5320_s17 = scalar_lea.hbm %s7108_s22, 2048  ;;  %s5324_s30 = scalar_lea.hbm %s7263_s4, 4096 }
 0x544   : > { %p5321_p4 = scmp.ne.s32.totalorder %s7108_s22, %s5320_s17  ;;  %p5325_p9 = scmp.lt.s32.totalorder %s7108_s22, %s7263_s4 }
 0x545   : > { %p5326_p10 = scmp.lt.s32.totalorder %s5324_s30, %s5320_s17 }
 0x546   : > { %p5322_p6 = pnand %p5321_p4, %p5612_p12 }
 0x547   : > { %p5327_p11 = por %p5326_p10, %p5325_p9 }
 0x548   : > { %p5323_p8 = pneg %p5322_p6 }
 0x54a   : > { %p5328_p5 = pnand %p5327_p11, %p5323_p8 }
 0x54c   : > { %5331 = shalt.err (!%p5328_p5)
}
 0x54d   : > { %s5424_s7 = smov 512   ;;  %s5425_s24 = smov 32  }
 0x54e   : > { %4897 = dma.vmem_to_hbm [thread:$0]  (%p5612_p12), %s7110_s20, 2048, %s7108_s22, %s4003_s6, %s5424_s7, %s5424_s7, %s5425_s24  }
 0x54f PF: > { %s7264_s1 = sld [smem:[#allocation22_spill]]  ;;  %p7266_p1 = scmp.ge.s32.totalorder %s5406_s29, 2 }
 0x551   : > { %p4923_p7 = pnand %p7266_p1, %p5619_p2 }
 0x553   : > { %p4924_p13 = pneg %p4923_p7 }
 0x555   : > { %s4034_s15 = sand.u32 1, %s7264_s1  }
 0x556   : > { %s4035_s19 = scalar_lea.sflag [#allocation4], %s4034_s15 }
 0x557   : > { %5381 = dma.done.wait (%p4924_p13), %s4035_s19, 2048  }
 0x558   : > { %5383 = vsyncadd (%p4924_p13), %s4035_s19, 4294965248  ;;  %s38_s29 = sadd.s32 1, %s5406_s29   ;;  %s7267_s17 = sld [smem:[#allocation23_spill]] }
 0x559   : > { %p35_p3 = scmp.ge.s32.totalorder %s38_s29, 4   ;;  %s7268_s26 = sld [smem:[#allocation26_spill]] }
 0x55a   : > { %s7269_s11 = sld [smem:[#allocation24_spill]]  ;;  %s7270_s24 = smov %s5390_s25 }
 0x55b   : > { %s7272_s27 = smov %s5402_s28 }
 0x55c   :  { %37 = sbr.rel (!%p35_p3) target bundleno = 24 (0x18), region = 180 }
 0x55e   : > { %s7271_s25 = smov %s7267_s17 }
 0x560   : > { %s7273_s28 = smov %s7269_s11 }
 0x561   :  { %4040 = vsyncpa [#allocation3], 1 }
 0x562   :  { %4042 = vsyncpa [#allocation3 + $0x1], 1 }
 0x563   :  { %4043 = vsyncpa [#allocation6], 1 }
 0x564   :  { %4045 = vsyncpa [#allocation6 + $0x1], 1 }
 0x565   :  { %4046 = vsyncpa [#allocation9], 1 }
 0x566   :  { %4047 = vsyncpa [#allocation12], 1 }
 0x567   :  { %4048 = vsyncpa [#allocation4], 1 }
 0x568   :  { %4050 = vsyncpa [#allocation4 + $0x1], 1 }

</bundles_post_ra>
